<compile_context>
chip_gen: v6e
topology: v6e:2x2x1
jax: 0.10.0
libtpu: 0.0.40
codegen_flags: <defaults>
</compile_context>

<pallas_src>
import functools

import jax
import jax.numpy as jnp
from jax.experimental import pallas as pl
from jax.experimental.pallas import tpu as pltpu

KERNEL_SIZE = 7
PAD = 3          # padding = 3 for kernel_size 7 (matches the PyTorch module)
_CCHUNK = 8      # channels accumulated per chunk block
_N_ACC = 4       # independent MAC accumulators (feeds the 4 VALU slots)
_LANE = 128
_SUBLANE = 8


def _round_up(x, m):
    return (x + m - 1) // m * m


def spatial_attention_kernel(w_ref, x_ref, o_ref, pad_ref, shift_ref, *,
                             bt, C, H, W, hp, wp):
    # w_ref    : (2*K*K,) f32 SMEM   (flattened conv weight, layout [c, kh, kw])
    # x_ref    : (bt, C, H*W) VMEM   (lane-dense flattened spatial dim)
    # o_ref    : (bt, 1, H*W) VMEM   (lane-dense flattened output)
    # pad_ref  : (2, hp, wp) f32 VMEM  zero-framed conv planes
    #            image at rows [PAD, PAD+H), cols [0, W); frame (incl. cols
    #            [W, wp) and the wrap-around region) is zero.
    # shift_ref: (2*K, hp, wp) f32 VMEM  14 lane-rolled copies of the planes.
    K = KERNEL_SIZE
    f32 = jnp.float32

    # Hoist all 98 SMEM weight scalar loads out of the MAC loops.
    ws = [w_ref[t] for t in range(2 * K * K)]
    inv_c = 1.0 / C

    # Zero only the halo frame (not the whole buffer); the interior columns
    # [0, W) of rows [PAD, PAD+H) are fully rewritten for every batch element.
    # Done every grid step (NOT keyed on program_id==0) so it stays correct
    # when the parallel batch axis is sharded across cores.
    for c in range(2):
        pad_ref[c, 0:PAD, :] = jnp.zeros((PAD, wp), f32)
        pad_ref[c, PAD + H:PAD + H + PAD, :] = jnp.zeros((PAD, wp), f32)
        pad_ref[c, PAD:PAD + H, W:wp] = jnp.zeros((H, wp - W), f32)

    def process(b):
        # ---- lane-dense channel reduction (sum & max over C) ----
        n_full = C // _CCHUNK
        rem = C % _CCHUNK
        sums, maxs = [], []
        if n_full:
            s8 = None
            m8 = None
            for t in range(n_full):
                # single f32 upcast per chunk, reused by both sum and max
                xb = x_ref[b, pl.ds(t * _CCHUNK, _CCHUNK), :].astype(f32)
                s8 = xb if s8 is None else s8 + xb
                m8 = xb if m8 is None else jnp.maximum(m8, xb)
            sums.append(jnp.sum(s8, axis=0, keepdims=True))
            maxs.append(jnp.max(m8, axis=0, keepdims=True))
        if rem:
            xr = x_ref[b, pl.ds(n_full * _CCHUNK, rem), :].astype(f32)
            sums.append(jnp.sum(xr, axis=0, keepdims=True))
            maxs.append(jnp.max(xr, axis=0, keepdims=True))
        ssum = sums[0] if len(sums) == 1 else sums[0] + sums[1]
        mmax = maxs[0] if len(maxs) == 1 else jnp.maximum(maxs[0], maxs[1])
        planes = (ssum * inv_c, mmax)            # each (1, H*W) f32

        # ---- relayout ONLY the two reduced planes into the conv scratch ----
        for c in range(2):
            pf = planes[c]
            for h in range(H):
                pad_ref[c, PAD + h:PAD + h + 1, 0:W] = pf[:, h * W:(h + 1) * W]

        # ---- hoisted lane shifts: 14 rolled planes (2 ch x 7 j-offsets) ----
        # rolled_j[r, s] = plane[r, s + (j - PAD)]; the zero frame supplies the
        # left/right padding (wrap-around lands in the never-read region).
        for c in range(2):
            plane = pad_ref[c, :, :]
            for j in range(K):
                if j == PAD:
                    shift_ref[c * K + j, :, :] = plane
                else:
                    shift_ref[c * K + j, :, :] = pltpu.roll(
                        plane, shift=(PAD - j) % wp, axis=1)

        # ---- 98-tap MAC loop: sublane-offset loads + VALU MACs only ----
        accs = [jnp.zeros((H, wp), f32) for _ in range(_N_ACC)]
        t = 0
        for c in range(2):
            for j in range(K):
                p = c * K + j
                for i in range(K):
                    tap = shift_ref[p, i:i + H, :]          # (H, wp)
                    accs[t % _N_ACC] = (accs[t % _N_ACC]
                                        + ws[c * K * K + i * K + j] * tap)
                    t += 1
        acc = (accs[0] + accs[1]) + (accs[2] + accs[3])     # (H, wp)
        sig = jax.nn.sigmoid(acc)

        # ---- relayout (H, W) result into the lane-dense flat output ----
        for h in range(H):
            o_ref[b, 0:1, pl.ds(h * W, W)] = sig[h:h + 1, 0:W].astype(o_ref.dtype)

    if bt == 1:
        process(0)
    else:
        def body(b, carry):
            process(b)
            return carry
        jax.lax.fori_loop(0, bt, body, 0, unroll=2)


def spatial_attention(x, conv_weight, *, block_bytes_target=8 << 20):
    """x: (B, C, H, W); conv_weight: (1, 2, K, K) with K == 7 (no bias)."""
    B, C, H, W = x.shape
    K = KERNEL_SIZE
    assert conv_weight.shape == (1, 2, K, K)
    HW = H * W
    w_flat = conv_weight.reshape(-1).astype(jnp.float32)   # (2*K*K,)

    # Layout-aware tile bytes: rows pad to the sublane-packing granule, lanes
    # to 128.
    itemsize = jnp.dtype(x.dtype).itemsize
    row_align = max(_SUBLANE, 32 // max(1, itemsize))       # f32:8 bf16:16 i8:32
    hwp = _round_up(HW, _LANE)
    in_elem_bytes = _round_up(C, row_align) * hwp * itemsize
    out_elem_bytes = row_align * hwp * itemsize

    # Batch elements per grid step from the byte budget; cap at B//2 so the
    # grid has >= 2 steps when B >= 2 (keeps both v7x TensorCores busy).
    bt = int(max(1, min(B, block_bytes_target // max(1, in_elem_bytes))))
    if B >= 2:
        bt = min(bt, max(1, B // 2))

    num_blocks = -(-B // bt)          # non-divisor bt handled by padding B
    b_pad = num_blocks * bt

    hp = _round_up(H + 2 * PAD, _SUBLANE)   # padded conv-plane height
    wp = _round_up(W + 2 * PAD, _LANE)      # padded conv-plane width (lanes)
    scratch_bytes = (2 + 2 * K) * hp * wp * 4

    needed = 2 * bt * (in_elem_bytes + out_elem_bytes) + scratch_bytes + (2 << 20)
    vmem_limit = int(max(16 << 20, min(48 << 20, needed)))
    # TODO(synk): if a single-element block still exceeds the v7x 64 MiB VMEM
    # budget (very large C*H*W), split C onto a second "arbitrary" grid axis
    # with running sum/max accumulators instead of one monolithic block.

    x_flat = x.reshape(B, C, HW)
    if b_pad != B:
        x_flat = jnp.pad(x_flat, ((0, b_pad - B), (0, 0), (0, 0)))

    kernel = functools.partial(spatial_attention_kernel,
                               bt=bt, C=C, H=H, W=W, hp=hp, wp=wp)

    out_flat = pl.pallas_call(
        kernel,
        out_shape=jax.ShapeDtypeStruct((b_pad, 1, HW), x.dtype),
        grid_spec=pltpu.PrefetchScalarGridSpec(
            num_scalar_prefetch=0,
            grid=(num_blocks,),
            in_specs=[
                pl.BlockSpec(memory_space=pltpu.SMEM),                # weights
                pl.BlockSpec((bt, C, HW), lambda g: (g, 0, 0)),       # x (flat)
            ],
            out_specs=pl.BlockSpec((bt, 1, HW), lambda g: (g, 0, 0)),
            scratch_shapes=[
                pltpu.VMEM((2, hp, wp), jnp.float32),        # zero-framed planes
                pltpu.VMEM((2 * K, hp, wp), jnp.float32),    # 14 rolled planes
            ],
        ),
        compiler_params=pltpu.CompilerParams(
            dimension_semantics=("parallel",),
            vmem_limit_bytes=vmem_limit),
    )(w_flat, x_flat)

    return out_flat[:B].reshape(B, 1, H, W)


def _reference(x, conv_weight):
    avg = jnp.mean(x, axis=1, keepdims=True)
    mx = jnp.max(x, axis=1, keepdims=True)
    cat = jnp.concatenate([avg, mx], axis=1)                 # (B, 2, H, W)
    y = jax.lax.conv_general_dilated(
        cat, conv_weight,
        window_strides=(1, 1),
        padding=((PAD, PAD), (PAD, PAD)),
        dimension_numbers=("NCHW", "OIHW", "NCHW"))
    return jax.nn.sigmoid(y)


if __name__ == "__main__":
    key = jax.random.PRNGKey(0)
    kx, kw = jax.random.split(key)

    B, C, H, W = 2, 4, 16, 16
    x = jax.random.normal(kx, (B, C, H, W), dtype=jnp.float32)
    # Deterministic synthetic conv weight, shape (out=1, in=2, K, K), no bias.
    conv_weight = 0.1 * jax.random.normal(
        kw, (1, 2, KERNEL_SIZE, KERNEL_SIZE), dtype=jnp.float32)

    out = spatial_attention(x, conv_weight)
    out = jax.block_until_ready(out)

    ref = _reference(x, conv_weight)
    assert out.shape == (B, 1, H, W)
    assert jnp.max(jnp.abs(out - ref)) < 2e-5

    print("KERNEL_OK")
</pallas_src>

<mosaic_0001>
module attributes {stable_mosaic.version = 11 : i64} {
  func.func @spatial_attention_kernel(%arg0: i32, %arg1: memref<98xf32, #tpu.memory_space<smem>>, %arg2: memref<1x4x256xf32, #tpu.memory_space<vmem>>, %arg3: memref<1x1x256xf32, #tpu.memory_space<vmem>>, %arg4: memref<2x24x128xf32, #tpu.memory_space<vmem>>, %arg5: memref<14x24x128xf32, #tpu.memory_space<vmem>>) attributes {dimension_semantics = [#tpu.dimension_semantics<parallel>], iteration_bounds = array<i64: 2>, scalar_prefetch = 0 : i64, scratch_operands = 2 : i64, tpu.core_type = #tpu.core_type<tc>, window_params = [{transform_indices = @transform_0, window_bounds = array<i64: 98>}, {transform_indices = @transform_1, window_bounds = array<i64: 1, 4, 256>}, {transform_indices = @transform_2, window_bounds = array<i64: 1, 1, 256>}]} {
    %c0 = arith.constant 0 : index
    %0 = memref.load %arg1[%c0] : memref<98xf32, #tpu.memory_space<smem>>
    %c1 = arith.constant 1 : index
    %1 = memref.load %arg1[%c1] : memref<98xf32, #tpu.memory_space<smem>>
    %c2 = arith.constant 2 : index
    %2 = memref.load %arg1[%c2] : memref<98xf32, #tpu.memory_space<smem>>
    %c3 = arith.constant 3 : index
    %3 = memref.load %arg1[%c3] : memref<98xf32, #tpu.memory_space<smem>>
    %c4 = arith.constant 4 : index
    %4 = memref.load %arg1[%c4] : memref<98xf32, #tpu.memory_space<smem>>
    %c5 = arith.constant 5 : index
    %5 = memref.load %arg1[%c5] : memref<98xf32, #tpu.memory_space<smem>>
    %c6 = arith.constant 6 : index
    %6 = memref.load %arg1[%c6] : memref<98xf32, #tpu.memory_space<smem>>
    %c7 = arith.constant 7 : index
    %7 = memref.load %arg1[%c7] : memref<98xf32, #tpu.memory_space<smem>>
    %c8 = arith.constant 8 : index
    %8 = memref.load %arg1[%c8] : memref<98xf32, #tpu.memory_space<smem>>
    %c9 = arith.constant 9 : index
    %9 = memref.load %arg1[%c9] : memref<98xf32, #tpu.memory_space<smem>>
    %c10 = arith.constant 10 : index
    %10 = memref.load %arg1[%c10] : memref<98xf32, #tpu.memory_space<smem>>
    %c11 = arith.constant 11 : index
    %11 = memref.load %arg1[%c11] : memref<98xf32, #tpu.memory_space<smem>>
    %c12 = arith.constant 12 : index
    %12 = memref.load %arg1[%c12] : memref<98xf32, #tpu.memory_space<smem>>
    %c13 = arith.constant 13 : index
    %13 = memref.load %arg1[%c13] : memref<98xf32, #tpu.memory_space<smem>>
    %c14 = arith.constant 14 : index
    %14 = memref.load %arg1[%c14] : memref<98xf32, #tpu.memory_space<smem>>
    %c15 = arith.constant 15 : index
    %15 = memref.load %arg1[%c15] : memref<98xf32, #tpu.memory_space<smem>>
    %c16 = arith.constant 16 : index
    %16 = memref.load %arg1[%c16] : memref<98xf32, #tpu.memory_space<smem>>
    %c17 = arith.constant 17 : index
    %17 = memref.load %arg1[%c17] : memref<98xf32, #tpu.memory_space<smem>>
    %c18 = arith.constant 18 : index
    %18 = memref.load %arg1[%c18] : memref<98xf32, #tpu.memory_space<smem>>
    %c19 = arith.constant 19 : index
    %19 = memref.load %arg1[%c19] : memref<98xf32, #tpu.memory_space<smem>>
    %c20 = arith.constant 20 : index
    %20 = memref.load %arg1[%c20] : memref<98xf32, #tpu.memory_space<smem>>
    %c21 = arith.constant 21 : index
    %21 = memref.load %arg1[%c21] : memref<98xf32, #tpu.memory_space<smem>>
    %c22 = arith.constant 22 : index
    %22 = memref.load %arg1[%c22] : memref<98xf32, #tpu.memory_space<smem>>
    %c23 = arith.constant 23 : index
    %23 = memref.load %arg1[%c23] : memref<98xf32, #tpu.memory_space<smem>>
    %c24 = arith.constant 24 : index
    %24 = memref.load %arg1[%c24] : memref<98xf32, #tpu.memory_space<smem>>
    %c25 = arith.constant 25 : index
    %25 = memref.load %arg1[%c25] : memref<98xf32, #tpu.memory_space<smem>>
    %c26 = arith.constant 26 : index
    %26 = memref.load %arg1[%c26] : memref<98xf32, #tpu.memory_space<smem>>
    %c27 = arith.constant 27 : index
    %27 = memref.load %arg1[%c27] : memref<98xf32, #tpu.memory_space<smem>>
    %c28 = arith.constant 28 : index
    %28 = memref.load %arg1[%c28] : memref<98xf32, #tpu.memory_space<smem>>
    %c29 = arith.constant 29 : index
    %29 = memref.load %arg1[%c29] : memref<98xf32, #tpu.memory_space<smem>>
    %c30 = arith.constant 30 : index
    %30 = memref.load %arg1[%c30] : memref<98xf32, #tpu.memory_space<smem>>
    %c31 = arith.constant 31 : index
    %31 = memref.load %arg1[%c31] : memref<98xf32, #tpu.memory_space<smem>>
    %c32 = arith.constant 32 : index
    %32 = memref.load %arg1[%c32] : memref<98xf32, #tpu.memory_space<smem>>
    %c33 = arith.constant 33 : index
    %33 = memref.load %arg1[%c33] : memref<98xf32, #tpu.memory_space<smem>>
    %c34 = arith.constant 34 : index
    %34 = memref.load %arg1[%c34] : memref<98xf32, #tpu.memory_space<smem>>
    %c35 = arith.constant 35 : index
    %35 = memref.load %arg1[%c35] : memref<98xf32, #tpu.memory_space<smem>>
    %c36 = arith.constant 36 : index
    %36 = memref.load %arg1[%c36] : memref<98xf32, #tpu.memory_space<smem>>
    %c37 = arith.constant 37 : index
    %37 = memref.load %arg1[%c37] : memref<98xf32, #tpu.memory_space<smem>>
    %c38 = arith.constant 38 : index
    %38 = memref.load %arg1[%c38] : memref<98xf32, #tpu.memory_space<smem>>
    %c39 = arith.constant 39 : index
    %39 = memref.load %arg1[%c39] : memref<98xf32, #tpu.memory_space<smem>>
    %c40 = arith.constant 40 : index
    %40 = memref.load %arg1[%c40] : memref<98xf32, #tpu.memory_space<smem>>
    %c41 = arith.constant 41 : index
    %41 = memref.load %arg1[%c41] : memref<98xf32, #tpu.memory_space<smem>>
    %c42 = arith.constant 42 : index
    %42 = memref.load %arg1[%c42] : memref<98xf32, #tpu.memory_space<smem>>
    %c43 = arith.constant 43 : index
    %43 = memref.load %arg1[%c43] : memref<98xf32, #tpu.memory_space<smem>>
    %c44 = arith.constant 44 : index
    %44 = memref.load %arg1[%c44] : memref<98xf32, #tpu.memory_space<smem>>
    %c45 = arith.constant 45 : index
    %45 = memref.load %arg1[%c45] : memref<98xf32, #tpu.memory_space<smem>>
    %c46 = arith.constant 46 : index
    %46 = memref.load %arg1[%c46] : memref<98xf32, #tpu.memory_space<smem>>
    %c47 = arith.constant 47 : index
    %47 = memref.load %arg1[%c47] : memref<98xf32, #tpu.memory_space<smem>>
    %c48 = arith.constant 48 : index
    %48 = memref.load %arg1[%c48] : memref<98xf32, #tpu.memory_space<smem>>
    %c49 = arith.constant 49 : index
    %49 = memref.load %arg1[%c49] : memref<98xf32, #tpu.memory_space<smem>>
    %c50 = arith.constant 50 : index
    %50 = memref.load %arg1[%c50] : memref<98xf32, #tpu.memory_space<smem>>
    %c51 = arith.constant 51 : index
    %51 = memref.load %arg1[%c51] : memref<98xf32, #tpu.memory_space<smem>>
    %c52 = arith.constant 52 : index
    %52 = memref.load %arg1[%c52] : memref<98xf32, #tpu.memory_space<smem>>
    %c53 = arith.constant 53 : index
    %53 = memref.load %arg1[%c53] : memref<98xf32, #tpu.memory_space<smem>>
    %c54 = arith.constant 54 : index
    %54 = memref.load %arg1[%c54] : memref<98xf32, #tpu.memory_space<smem>>
    %c55 = arith.constant 55 : index
    %55 = memref.load %arg1[%c55] : memref<98xf32, #tpu.memory_space<smem>>
    %c56 = arith.constant 56 : index
    %56 = memref.load %arg1[%c56] : memref<98xf32, #tpu.memory_space<smem>>
    %c57 = arith.constant 57 : index
    %57 = memref.load %arg1[%c57] : memref<98xf32, #tpu.memory_space<smem>>
    %c58 = arith.constant 58 : index
    %58 = memref.load %arg1[%c58] : memref<98xf32, #tpu.memory_space<smem>>
    %c59 = arith.constant 59 : index
    %59 = memref.load %arg1[%c59] : memref<98xf32, #tpu.memory_space<smem>>
    %c60 = arith.constant 60 : index
    %60 = memref.load %arg1[%c60] : memref<98xf32, #tpu.memory_space<smem>>
    %c61 = arith.constant 61 : index
    %61 = memref.load %arg1[%c61] : memref<98xf32, #tpu.memory_space<smem>>
    %c62 = arith.constant 62 : index
    %62 = memref.load %arg1[%c62] : memref<98xf32, #tpu.memory_space<smem>>
    %c63 = arith.constant 63 : index
    %63 = memref.load %arg1[%c63] : memref<98xf32, #tpu.memory_space<smem>>
    %c64 = arith.constant 64 : index
    %64 = memref.load %arg1[%c64] : memref<98xf32, #tpu.memory_space<smem>>
    %c65 = arith.constant 65 : index
    %65 = memref.load %arg1[%c65] : memref<98xf32, #tpu.memory_space<smem>>
    %c66 = arith.constant 66 : index
    %66 = memref.load %arg1[%c66] : memref<98xf32, #tpu.memory_space<smem>>
    %c67 = arith.constant 67 : index
    %67 = memref.load %arg1[%c67] : memref<98xf32, #tpu.memory_space<smem>>
    %c68 = arith.constant 68 : index
    %68 = memref.load %arg1[%c68] : memref<98xf32, #tpu.memory_space<smem>>
    %c69 = arith.constant 69 : index
    %69 = memref.load %arg1[%c69] : memref<98xf32, #tpu.memory_space<smem>>
    %c70 = arith.constant 70 : index
    %70 = memref.load %arg1[%c70] : memref<98xf32, #tpu.memory_space<smem>>
    %c71 = arith.constant 71 : index
    %71 = memref.load %arg1[%c71] : memref<98xf32, #tpu.memory_space<smem>>
    %c72 = arith.constant 72 : index
    %72 = memref.load %arg1[%c72] : memref<98xf32, #tpu.memory_space<smem>>
    %c73 = arith.constant 73 : index
    %73 = memref.load %arg1[%c73] : memref<98xf32, #tpu.memory_space<smem>>
    %c74 = arith.constant 74 : index
    %74 = memref.load %arg1[%c74] : memref<98xf32, #tpu.memory_space<smem>>
    %c75 = arith.constant 75 : index
    %75 = memref.load %arg1[%c75] : memref<98xf32, #tpu.memory_space<smem>>
    %c76 = arith.constant 76 : index
    %76 = memref.load %arg1[%c76] : memref<98xf32, #tpu.memory_space<smem>>
    %c77 = arith.constant 77 : index
    %77 = memref.load %arg1[%c77] : memref<98xf32, #tpu.memory_space<smem>>
    %c78 = arith.constant 78 : index
    %78 = memref.load %arg1[%c78] : memref<98xf32, #tpu.memory_space<smem>>
    %c79 = arith.constant 79 : index
    %79 = memref.load %arg1[%c79] : memref<98xf32, #tpu.memory_space<smem>>
    %c80 = arith.constant 80 : index
    %80 = memref.load %arg1[%c80] : memref<98xf32, #tpu.memory_space<smem>>
    %c81 = arith.constant 81 : index
    %81 = memref.load %arg1[%c81] : memref<98xf32, #tpu.memory_space<smem>>
    %c82 = arith.constant 82 : index
    %82 = memref.load %arg1[%c82] : memref<98xf32, #tpu.memory_space<smem>>
    %c83 = arith.constant 83 : index
    %83 = memref.load %arg1[%c83] : memref<98xf32, #tpu.memory_space<smem>>
    %c84 = arith.constant 84 : index
    %84 = memref.load %arg1[%c84] : memref<98xf32, #tpu.memory_space<smem>>
    %c85 = arith.constant 85 : index
    %85 = memref.load %arg1[%c85] : memref<98xf32, #tpu.memory_space<smem>>
    %c86 = arith.constant 86 : index
    %86 = memref.load %arg1[%c86] : memref<98xf32, #tpu.memory_space<smem>>
    %c87 = arith.constant 87 : index
    %87 = memref.load %arg1[%c87] : memref<98xf32, #tpu.memory_space<smem>>
    %c88 = arith.constant 88 : index
    %88 = memref.load %arg1[%c88] : memref<98xf32, #tpu.memory_space<smem>>
    %c89 = arith.constant 89 : index
    %89 = memref.load %arg1[%c89] : memref<98xf32, #tpu.memory_space<smem>>
    %c90 = arith.constant 90 : index
    %90 = memref.load %arg1[%c90] : memref<98xf32, #tpu.memory_space<smem>>
    %c91 = arith.constant 91 : index
    %91 = memref.load %arg1[%c91] : memref<98xf32, #tpu.memory_space<smem>>
    %c92 = arith.constant 92 : index
    %92 = memref.load %arg1[%c92] : memref<98xf32, #tpu.memory_space<smem>>
    %c93 = arith.constant 93 : index
    %93 = memref.load %arg1[%c93] : memref<98xf32, #tpu.memory_space<smem>>
    %c94 = arith.constant 94 : index
    %94 = memref.load %arg1[%c94] : memref<98xf32, #tpu.memory_space<smem>>
    %c95 = arith.constant 95 : index
    %95 = memref.load %arg1[%c95] : memref<98xf32, #tpu.memory_space<smem>>
    %c96 = arith.constant 96 : index
    %96 = memref.load %arg1[%c96] : memref<98xf32, #tpu.memory_space<smem>>
    %c97 = arith.constant 97 : index
    %97 = memref.load %arg1[%c97] : memref<98xf32, #tpu.memory_space<smem>>
    %cst = arith.constant 0.000000e+00 : f32
    %98 = vector.broadcast %cst : f32 to vector<3x128xf32>
    %c0_0 = arith.constant 0 : index
    %c0_1 = arith.constant 0 : index
    %c0_2 = arith.constant 0 : index
    %99 = vector.load %arg4[%c0_0, %c0_1, %c0_2] : memref<2x24x128xf32, #tpu.memory_space<vmem>>, vector<1x3x128xf32>
    %100 = vector.shape_cast %99 : vector<1x3x128xf32> to vector<3x128xf32>
    %101 = vector.shape_cast %98 : vector<3x128xf32> to vector<1x3x128xf32>
    tpu.vector_store %arg4[%c0_0, %c0_1, %c0_2], %101 {strides = array<i32>} : memref<2x24x128xf32, #tpu.memory_space<vmem>>, vector<1x3x128xf32>,
    %cst_3 = arith.constant 0.000000e+00 : f32
    %102 = vector.broadcast %cst_3 : f32 to vector<3x128xf32>
    %c0_4 = arith.constant 0 : index
    %c19_5 = arith.constant 19 : index
    %c0_6 = arith.constant 0 : index
    %103 = vector.load %arg4[%c0_4, %c19_5, %c0_6] : memref<2x24x128xf32, #tpu.memory_space<vmem>>, vector<1x3x128xf32>
    %104 = vector.shape_cast %103 : vector<1x3x128xf32> to vector<3x128xf32>
    %105 = vector.shape_cast %102 : vector<3x128xf32> to vector<1x3x128xf32>
    tpu.vector_store %arg4[%c0_4, %c19_5, %c0_6], %105 {strides = array<i32>} : memref<2x24x128xf32, #tpu.memory_space<vmem>>, vector<1x3x128xf32>,
    %cst_7 = arith.constant 0.000000e+00 : f32
    %106 = vector.broadcast %cst_7 : f32 to vector<16x112xf32>
    %c0_8 = arith.constant 0 : index
    %c3_9 = arith.constant 3 : index
    %c16_10 = arith.constant 16 : index
    %107 = vector.load %arg4[%c0_8, %c3_9, %c16_10] : memref<2x24x128xf32, #tpu.memory_space<vmem>>, vector<1x16x112xf32>
    %108 = vector.shape_cast %107 : vector<1x16x112xf32> to vector<16x112xf32>
    %109 = vector.shape_cast %106 : vector<16x112xf32> to vector<1x16x112xf32>
    tpu.vector_store %arg4[%c0_8, %c3_9, %c16_10], %109 {strides = array<i32>} : memref<2x24x128xf32, #tpu.memory_space<vmem>>, vector<1x16x112xf32>,
    %cst_11 = arith.constant 0.000000e+00 : f32
    %110 = vector.broadcast %cst_11 : f32 to vector<3x128xf32>
    %c1_12 = arith.constant 1 : index
    %c0_13 = arith.constant 0 : index
    %c0_14 = arith.constant 0 : index
    %111 = vector.load %arg4[%c1_12, %c0_13, %c0_14] : memref<2x24x128xf32, #tpu.memory_space<vmem>>, vector<1x3x128xf32>
    %112 = vector.shape_cast %111 : vector<1x3x128xf32> to vector<3x128xf32>
    %113 = vector.shape_cast %110 : vector<3x128xf32> to vector<1x3x128xf32>
    tpu.vector_store %arg4[%c1_12, %c0_13, %c0_14], %113 {strides = array<i32>} : memref<2x24x128xf32, #tpu.memory_space<vmem>>, vector<1x3x128xf32>,
    %cst_15 = arith.constant 0.000000e+00 : f32
    %114 = vector.broadcast %cst_15 : f32 to vector<3x128xf32>
    %c1_16 = arith.constant 1 : index
    %c19_17 = arith.constant 19 : index
    %c0_18 = arith.constant 0 : index
    %115 = vector.load %arg4[%c1_16, %c19_17, %c0_18] : memref<2x24x128xf32, #tpu.memory_space<vmem>>, vector<1x3x128xf32>
    %116 = vector.shape_cast %115 : vector<1x3x128xf32> to vector<3x128xf32>
    %117 = vector.shape_cast %114 : vector<3x128xf32> to vector<1x3x128xf32>
    tpu.vector_store %arg4[%c1_16, %c19_17, %c0_18], %117 {strides = array<i32>} : memref<2x24x128xf32, #tpu.memory_space<vmem>>, vector<1x3x128xf32>,
    %cst_19 = arith.constant 0.000000e+00 : f32
    %118 = vector.broadcast %cst_19 : f32 to vector<16x112xf32>
    %c1_20 = arith.constant 1 : index
    %c3_21 = arith.constant 3 : index
    %c16_22 = arith.constant 16 : index
    %119 = vector.load %arg4[%c1_20, %c3_21, %c16_22] : memref<2x24x128xf32, #tpu.memory_space<vmem>>, vector<1x16x112xf32>
    %120 = vector.shape_cast %119 : vector<1x16x112xf32> to vector<16x112xf32>
    %121 = vector.shape_cast %118 : vector<16x112xf32> to vector<1x16x112xf32>
    tpu.vector_store %arg4[%c1_20, %c3_21, %c16_22], %121 {strides = array<i32>} : memref<2x24x128xf32, #tpu.memory_space<vmem>>, vector<1x16x112xf32>,
    %c0_23 = arith.constant 0 : index
    %c0_24 = arith.constant 0 : index
    %c0_25 = arith.constant 0 : index
    %122 = vector.load %arg2[%c0_23, %c0_24, %c0_25] : memref<1x4x256xf32, #tpu.memory_space<vmem>>, vector<1x4x256xf32>
    %123 = vector.shape_cast %122 : vector<1x4x256xf32> to vector<4x256xf32>
    %cst_26 = arith.constant dense<0.000000e+00> : vector<256xf32>
    %124 = vector.multi_reduction <add>, %123, %cst_26 [0] : vector<4x256xf32> to vector<256xf32>
    %125 = vector.shape_cast %124 : vector<256xf32> to vector<1x256xf32>
    %cst_27 = arith.constant dense<0xFF800000> : vector<256xf32>
    %126 = vector.multi_reduction <maximumf>, %123, %cst_27 [0] : vector<4x256xf32> to vector<256xf32>
    %127 = vector.shape_cast %126 : vector<256xf32> to vector<1x256xf32>
    %cst_28 = arith.constant 2.500000e-01 : f32
    %128 = vector.broadcast %cst_28 : f32 to vector<1x256xf32>
    %129 = arith.mulf %125, %128 : vector<1x256xf32>
    %130 = vector.extract_strided_slice %129 {offsets = [0, 0], sizes = [1, 16], strides = [1, 1]} : vector<1x256xf32> to vector<1x16xf32>
    %c0_29 = arith.constant 0 : index
    %c3_30 = arith.constant 3 : index
    %c0_31 = arith.constant 0 : index
    %131 = vector.load %arg4[%c0_29, %c3_30, %c0_31] : memref<2x24x128xf32, #tpu.memory_space<vmem>>, vector<1x1x16xf32>
    %132 = vector.shape_cast %131 : vector<1x1x16xf32> to vector<1x16xf32>
    %133 = vector.shape_cast %130 : vector<1x16xf32> to vector<1x1x16xf32>
    tpu.vector_store %arg4[%c0_29, %c3_30, %c0_31], %133 {strides = array<i32>} : memref<2x24x128xf32, #tpu.memory_space<vmem>>, vector<1x1x16xf32>,
    %134 = vector.extract_strided_slice %129 {offsets = [0, 16], sizes = [1, 16], strides = [1, 1]} : vector<1x256xf32> to vector<1x16xf32>
    %c0_32 = arith.constant 0 : index
    %c4_33 = arith.constant 4 : index
    %c0_34 = arith.constant 0 : index
    %135 = vector.load %arg4[%c0_32, %c4_33, %c0_34] : memref<2x24x128xf32, #tpu.memory_space<vmem>>, vector<1x1x16xf32>
    %136 = vector.shape_cast %135 : vector<1x1x16xf32> to vector<1x16xf32>
    %137 = vector.shape_cast %134 : vector<1x16xf32> to vector<1x1x16xf32>
    tpu.vector_store %arg4[%c0_32, %c4_33, %c0_34], %137 {strides = array<i32>} : memref<2x24x128xf32, #tpu.memory_space<vmem>>, vector<1x1x16xf32>,
    %138 = vector.extract_strided_slice %129 {offsets = [0, 32], sizes = [1, 16], strides = [1, 1]} : vector<1x256xf32> to vector<1x16xf32>
    %c0_35 = arith.constant 0 : index
    %c5_36 = arith.constant 5 : index
    %c0_37 = arith.constant 0 : index
    %139 = vector.load %arg4[%c0_35, %c5_36, %c0_37] : memref<2x24x128xf32, #tpu.memory_space<vmem>>, vector<1x1x16xf32>
    %140 = vector.shape_cast %139 : vector<1x1x16xf32> to vector<1x16xf32>
    %141 = vector.shape_cast %138 : vector<1x16xf32> to vector<1x1x16xf32>
    tpu.vector_store %arg4[%c0_35, %c5_36, %c0_37], %141 {strides = array<i32>} : memref<2x24x128xf32, #tpu.memory_space<vmem>>, vector<1x1x16xf32>,
    %142 = vector.extract_strided_slice %129 {offsets = [0, 48], sizes = [1, 16], strides = [1, 1]} : vector<1x256xf32> to vector<1x16xf32>
    %c0_38 = arith.constant 0 : index
    %c6_39 = arith.constant 6 : index
    %c0_40 = arith.constant 0 : index
    %143 = vector.load %arg4[%c0_38, %c6_39, %c0_40] : memref<2x24x128xf32, #tpu.memory_space<vmem>>, vector<1x1x16xf32>
    %144 = vector.shape_cast %143 : vector<1x1x16xf32> to vector<1x16xf32>
    %145 = vector.shape_cast %142 : vector<1x16xf32> to vector<1x1x16xf32>
    tpu.vector_store %arg4[%c0_38, %c6_39, %c0_40], %145 {strides = array<i32>} : memref<2x24x128xf32, #tpu.memory_space<vmem>>, vector<1x1x16xf32>,
    %146 = vector.extract_strided_slice %129 {offsets = [0, 64], sizes = [1, 16], strides = [1, 1]} : vector<1x256xf32> to vector<1x16xf32>
    %c0_41 = arith.constant 0 : index
    %c7_42 = arith.constant 7 : index
    %c0_43 = arith.constant 0 : index
    %147 = vector.load %arg4[%c0_41, %c7_42, %c0_43] : memref<2x24x128xf32, #tpu.memory_space<vmem>>, vector<1x1x16xf32>
    %148 = vector.shape_cast %147 : vector<1x1x16xf32> to vector<1x16xf32>
    %149 = vector.shape_cast %146 : vector<1x16xf32> to vector<1x1x16xf32>
    tpu.vector_store %arg4[%c0_41, %c7_42, %c0_43], %149 {strides = array<i32>} : memref<2x24x128xf32, #tpu.memory_space<vmem>>, vector<1x1x16xf32>,
    %150 = vector.extract_strided_slice %129 {offsets = [0, 80], sizes = [1, 16], strides = [1, 1]} : vector<1x256xf32> to vector<1x16xf32>
    %c0_44 = arith.constant 0 : index
    %c8_45 = arith.constant 8 : index
    %c0_46 = arith.constant 0 : index
    %151 = vector.load %arg4[%c0_44, %c8_45, %c0_46] : memref<2x24x128xf32, #tpu.memory_space<vmem>>, vector<1x1x16xf32>
    %152 = vector.shape_cast %151 : vector<1x1x16xf32> to vector<1x16xf32>
    %153 = vector.shape_cast %150 : vector<1x16xf32> to vector<1x1x16xf32>
    tpu.vector_store %arg4[%c0_44, %c8_45, %c0_46], %153 {strides = array<i32>} : memref<2x24x128xf32, #tpu.memory_space<vmem>>, vector<1x1x16xf32>,
    %154 = vector.extract_strided_slice %129 {offsets = [0, 96], sizes = [1, 16], strides = [1, 1]} : vector<1x256xf32> to vector<1x16xf32>
    %c0_47 = arith.constant 0 : index
    %c9_48 = arith.constant 9 : index
    %c0_49 = arith.constant 0 : index
    %155 = vector.load %arg4[%c0_47, %c9_48, %c0_49] : memref<2x24x128xf32, #tpu.memory_space<vmem>>, vector<1x1x16xf32>
    %156 = vector.shape_cast %155 : vector<1x1x16xf32> to vector<1x16xf32>
    %157 = vector.shape_cast %154 : vector<1x16xf32> to vector<1x1x16xf32>
    tpu.vector_store %arg4[%c0_47, %c9_48, %c0_49], %157 {strides = array<i32>} : memref<2x24x128xf32, #tpu.memory_space<vmem>>, vector<1x1x16xf32>,
    %158 = vector.extract_strided_slice %129 {offsets = [0, 112], sizes = [1, 16], strides = [1, 1]} : vector<1x256xf32> to vector<1x16xf32>
    %c0_50 = arith.constant 0 : index
    %c10_51 = arith.constant 10 : index
    %c0_52 = arith.constant 0 : index
    %159 = vector.load %arg4[%c0_50, %c10_51, %c0_52] : memref<2x24x128xf32, #tpu.memory_space<vmem>>, vector<1x1x16xf32>
    %160 = vector.shape_cast %159 : vector<1x1x16xf32> to vector<1x16xf32>
    %161 = vector.shape_cast %158 : vector<1x16xf32> to vector<1x1x16xf32>
    tpu.vector_store %arg4[%c0_50, %c10_51, %c0_52], %161 {strides = array<i32>} : memref<2x24x128xf32, #tpu.memory_space<vmem>>, vector<1x1x16xf32>,
    %162 = vector.extract_strided_slice %129 {offsets = [0, 128], sizes = [1, 16], strides = [1, 1]} : vector<1x256xf32> to vector<1x16xf32>
    %c0_53 = arith.constant 0 : index
    %c11_54 = arith.constant 11 : index
    %c0_55 = arith.constant 0 : index
    %163 = vector.load %arg4[%c0_53, %c11_54, %c0_55] : memref<2x24x128xf32, #tpu.memory_space<vmem>>, vector<1x1x16xf32>
    %164 = vector.shape_cast %163 : vector<1x1x16xf32> to vector<1x16xf32>
    %165 = vector.shape_cast %162 : vector<1x16xf32> to vector<1x1x16xf32>
    tpu.vector_store %arg4[%c0_53, %c11_54, %c0_55], %165 {strides = array<i32>} : memref<2x24x128xf32, #tpu.memory_space<vmem>>, vector<1x1x16xf32>,
    %166 = vector.extract_strided_slice %129 {offsets = [0, 144], sizes = [1, 16], strides = [1, 1]} : vector<1x256xf32> to vector<1x16xf32>
    %c0_56 = arith.constant 0 : index
    %c12_57 = arith.constant 12 : index
    %c0_58 = arith.constant 0 : index
    %167 = vector.load %arg4[%c0_56, %c12_57, %c0_58] : memref<2x24x128xf32, #tpu.memory_space<vmem>>, vector<1x1x16xf32>
    %168 = vector.shape_cast %167 : vector<1x1x16xf32> to vector<1x16xf32>
    %169 = vector.shape_cast %166 : vector<1x16xf32> to vector<1x1x16xf32>
    tpu.vector_store %arg4[%c0_56, %c12_57, %c0_58], %169 {strides = array<i32>} : memref<2x24x128xf32, #tpu.memory_space<vmem>>, vector<1x1x16xf32>,
    %170 = vector.extract_strided_slice %129 {offsets = [0, 160], sizes = [1, 16], strides = [1, 1]} : vector<1x256xf32> to vector<1x16xf32>
    %c0_59 = arith.constant 0 : index
    %c13_60 = arith.constant 13 : index
    %c0_61 = arith.constant 0 : index
    %171 = vector.load %arg4[%c0_59, %c13_60, %c0_61] : memref<2x24x128xf32, #tpu.memory_space<vmem>>, vector<1x1x16xf32>
    %172 = vector.shape_cast %171 : vector<1x1x16xf32> to vector<1x16xf32>
    %173 = vector.shape_cast %170 : vector<1x16xf32> to vector<1x1x16xf32>
    tpu.vector_store %arg4[%c0_59, %c13_60, %c0_61], %173 {strides = array<i32>} : memref<2x24x128xf32, #tpu.memory_space<vmem>>, vector<1x1x16xf32>,
    %174 = vector.extract_strided_slice %129 {offsets = [0, 176], sizes = [1, 16], strides = [1, 1]} : vector<1x256xf32> to vector<1x16xf32>
    %c0_62 = arith.constant 0 : index
    %c14_63 = arith.constant 14 : index
    %c0_64 = arith.constant 0 : index
    %175 = vector.load %arg4[%c0_62, %c14_63, %c0_64] : memref<2x24x128xf32, #tpu.memory_space<vmem>>, vector<1x1x16xf32>
    %176 = vector.shape_cast %175 : vector<1x1x16xf32> to vector<1x16xf32>
    %177 = vector.shape_cast %174 : vector<1x16xf32> to vector<1x1x16xf32>
    tpu.vector_store %arg4[%c0_62, %c14_63, %c0_64], %177 {strides = array<i32>} : memref<2x24x128xf32, #tpu.memory_space<vmem>>, vector<1x1x16xf32>,
    %178 = vector.extract_strided_slice %129 {offsets = [0, 192], sizes = [1, 16], strides = [1, 1]} : vector<1x256xf32> to vector<1x16xf32>
    %c0_65 = arith.constant 0 : index
    %c15_66 = arith.constant 15 : index
    %c0_67 = arith.constant 0 : index
    %179 = vector.load %arg4[%c0_65, %c15_66, %c0_67] : memref<2x24x128xf32, #tpu.memory_space<vmem>>, vector<1x1x16xf32>
    %180 = vector.shape_cast %179 : vector<1x1x16xf32> to vector<1x16xf32>
    %181 = vector.shape_cast %178 : vector<1x16xf32> to vector<1x1x16xf32>
    tpu.vector_store %arg4[%c0_65, %c15_66, %c0_67], %181 {strides = array<i32>} : memref<2x24x128xf32, #tpu.memory_space<vmem>>, vector<1x1x16xf32>,
    %182 = vector.extract_strided_slice %129 {offsets = [0, 208], sizes = [1, 16], strides = [1, 1]} : vector<1x256xf32> to vector<1x16xf32>
    %c0_68 = arith.constant 0 : index
    %c16_69 = arith.constant 16 : index
    %c0_70 = arith.constant 0 : index
    %183 = vector.load %arg4[%c0_68, %c16_69, %c0_70] : memref<2x24x128xf32, #tpu.memory_space<vmem>>, vector<1x1x16xf32>
    %184 = vector.shape_cast %183 : vector<1x1x16xf32> to vector<1x16xf32>
    %185 = vector.shape_cast %182 : vector<1x16xf32> to vector<1x1x16xf32>
    tpu.vector_store %arg4[%c0_68, %c16_69, %c0_70], %185 {strides = array<i32>} : memref<2x24x128xf32, #tpu.memory_space<vmem>>, vector<1x1x16xf32>,
    %186 = vector.extract_strided_slice %129 {offsets = [0, 224], sizes = [1, 16], strides = [1, 1]} : vector<1x256xf32> to vector<1x16xf32>
    %c0_71 = arith.constant 0 : index
    %c17_72 = arith.constant 17 : index
    %c0_73 = arith.constant 0 : index
    %187 = vector.load %arg4[%c0_71, %c17_72, %c0_73] : memref<2x24x128xf32, #tpu.memory_space<vmem>>, vector<1x1x16xf32>
    %188 = vector.shape_cast %187 : vector<1x1x16xf32> to vector<1x16xf32>
    %189 = vector.shape_cast %186 : vector<1x16xf32> to vector<1x1x16xf32>
    tpu.vector_store %arg4[%c0_71, %c17_72, %c0_73], %189 {strides = array<i32>} : memref<2x24x128xf32, #tpu.memory_space<vmem>>, vector<1x1x16xf32>,
    %190 = vector.extract_strided_slice %129 {offsets = [0, 240], sizes = [1, 16], strides = [1, 1]} : vector<1x256xf32> to vector<1x16xf32>
    %c0_74 = arith.constant 0 : index
    %c18_75 = arith.constant 18 : index
    %c0_76 = arith.constant 0 : index
    %191 = vector.load %arg4[%c0_74, %c18_75, %c0_76] : memref<2x24x128xf32, #tpu.memory_space<vmem>>, vector<1x1x16xf32>
    %192 = vector.shape_cast %191 : vector<1x1x16xf32> to vector<1x16xf32>
    %193 = vector.shape_cast %190 : vector<1x16xf32> to vector<1x1x16xf32>
    tpu.vector_store %arg4[%c0_74, %c18_75, %c0_76], %193 {strides = array<i32>} : memref<2x24x128xf32, #tpu.memory_space<vmem>>, vector<1x1x16xf32>,
    %194 = vector.extract_strided_slice %127 {offsets = [0, 0], sizes = [1, 16], strides = [1, 1]} : vector<1x256xf32> to vector<1x16xf32>
    %c1_77 = arith.constant 1 : index
    %c3_78 = arith.constant 3 : index
    %c0_79 = arith.constant 0 : index
    %195 = vector.load %arg4[%c1_77, %c3_78, %c0_79] : memref<2x24x128xf32, #tpu.memory_space<vmem>>, vector<1x1x16xf32>
    %196 = vector.shape_cast %195 : vector<1x1x16xf32> to vector<1x16xf32>
    %197 = vector.shape_cast %194 : vector<1x16xf32> to vector<1x1x16xf32>
    tpu.vector_store %arg4[%c1_77, %c3_78, %c0_79], %197 {strides = array<i32>} : memref<2x24x128xf32, #tpu.memory_space<vmem>>, vector<1x1x16xf32>,
    %198 = vector.extract_strided_slice %127 {offsets = [0, 16], sizes = [1, 16], strides = [1, 1]} : vector<1x256xf32> to vector<1x16xf32>
    %c1_80 = arith.constant 1 : index
    %c4_81 = arith.constant 4 : index
    %c0_82 = arith.constant 0 : index
    %199 = vector.load %arg4[%c1_80, %c4_81, %c0_82] : memref<2x24x128xf32, #tpu.memory_space<vmem>>, vector<1x1x16xf32>
    %200 = vector.shape_cast %199 : vector<1x1x16xf32> to vector<1x16xf32>
    %201 = vector.shape_cast %198 : vector<1x16xf32> to vector<1x1x16xf32>
    tpu.vector_store %arg4[%c1_80, %c4_81, %c0_82], %201 {strides = array<i32>} : memref<2x24x128xf32, #tpu.memory_space<vmem>>, vector<1x1x16xf32>,
    %202 = vector.extract_strided_slice %127 {offsets = [0, 32], sizes = [1, 16], strides = [1, 1]} : vector<1x256xf32> to vector<1x16xf32>
    %c1_83 = arith.constant 1 : index
    %c5_84 = arith.constant 5 : index
    %c0_85 = arith.constant 0 : index
    %203 = vector.load %arg4[%c1_83, %c5_84, %c0_85] : memref<2x24x128xf32, #tpu.memory_space<vmem>>, vector<1x1x16xf32>
    %204 = vector.shape_cast %203 : vector<1x1x16xf32> to vector<1x16xf32>
    %205 = vector.shape_cast %202 : vector<1x16xf32> to vector<1x1x16xf32>
    tpu.vector_store %arg4[%c1_83, %c5_84, %c0_85], %205 {strides = array<i32>} : memref<2x24x128xf32, #tpu.memory_space<vmem>>, vector<1x1x16xf32>,
    %206 = vector.extract_strided_slice %127 {offsets = [0, 48], sizes = [1, 16], strides = [1, 1]} : vector<1x256xf32> to vector<1x16xf32>
    %c1_86 = arith.constant 1 : index
    %c6_87 = arith.constant 6 : index
    %c0_88 = arith.constant 0 : index
    %207 = vector.load %arg4[%c1_86, %c6_87, %c0_88] : memref<2x24x128xf32, #tpu.memory_space<vmem>>, vector<1x1x16xf32>
    %208 = vector.shape_cast %207 : vector<1x1x16xf32> to vector<1x16xf32>
    %209 = vector.shape_cast %206 : vector<1x16xf32> to vector<1x1x16xf32>
    tpu.vector_store %arg4[%c1_86, %c6_87, %c0_88], %209 {strides = array<i32>} : memref<2x24x128xf32, #tpu.memory_space<vmem>>, vector<1x1x16xf32>,
    %210 = vector.extract_strided_slice %127 {offsets = [0, 64], sizes = [1, 16], strides = [1, 1]} : vector<1x256xf32> to vector<1x16xf32>
    %c1_89 = arith.constant 1 : index
    %c7_90 = arith.constant 7 : index
    %c0_91 = arith.constant 0 : index
    %211 = vector.load %arg4[%c1_89, %c7_90, %c0_91] : memref<2x24x128xf32, #tpu.memory_space<vmem>>, vector<1x1x16xf32>
    %212 = vector.shape_cast %211 : vector<1x1x16xf32> to vector<1x16xf32>
    %213 = vector.shape_cast %210 : vector<1x16xf32> to vector<1x1x16xf32>
    tpu.vector_store %arg4[%c1_89, %c7_90, %c0_91], %213 {strides = array<i32>} : memref<2x24x128xf32, #tpu.memory_space<vmem>>, vector<1x1x16xf32>,
    %214 = vector.extract_strided_slice %127 {offsets = [0, 80], sizes = [1, 16], strides = [1, 1]} : vector<1x256xf32> to vector<1x16xf32>
    %c1_92 = arith.constant 1 : index
    %c8_93 = arith.constant 8 : index
    %c0_94 = arith.constant 0 : index
    %215 = vector.load %arg4[%c1_92, %c8_93, %c0_94] : memref<2x24x128xf32, #tpu.memory_space<vmem>>, vector<1x1x16xf32>
    %216 = vector.shape_cast %215 : vector<1x1x16xf32> to vector<1x16xf32>
    %217 = vector.shape_cast %214 : vector<1x16xf32> to vector<1x1x16xf32>
    tpu.vector_store %arg4[%c1_92, %c8_93, %c0_94], %217 {strides = array<i32>} : memref<2x24x128xf32, #tpu.memory_space<vmem>>, vector<1x1x16xf32>,
    %218 = vector.extract_strided_slice %127 {offsets = [0, 96], sizes = [1, 16], strides = [1, 1]} : vector<1x256xf32> to vector<1x16xf32>
    %c1_95 = arith.constant 1 : index
    %c9_96 = arith.constant 9 : index
    %c0_97 = arith.constant 0 : index
    %219 = vector.load %arg4[%c1_95, %c9_96, %c0_97] : memref<2x24x128xf32, #tpu.memory_space<vmem>>, vector<1x1x16xf32>
    %220 = vector.shape_cast %219 : vector<1x1x16xf32> to vector<1x16xf32>
    %221 = vector.shape_cast %218 : vector<1x16xf32> to vector<1x1x16xf32>
    tpu.vector_store %arg4[%c1_95, %c9_96, %c0_97], %221 {strides = array<i32>} : memref<2x24x128xf32, #tpu.memory_space<vmem>>, vector<1x1x16xf32>,
    %222 = vector.extract_strided_slice %127 {offsets = [0, 112], sizes = [1, 16], strides = [1, 1]} : vector<1x256xf32> to vector<1x16xf32>
    %c1_98 = arith.constant 1 : index
    %c10_99 = arith.constant 10 : index
    %c0_100 = arith.constant 0 : index
    %223 = vector.load %arg4[%c1_98, %c10_99, %c0_100] : memref<2x24x128xf32, #tpu.memory_space<vmem>>, vector<1x1x16xf32>
    %224 = vector.shape_cast %223 : vector<1x1x16xf32> to vector<1x16xf32>
    %225 = vector.shape_cast %222 : vector<1x16xf32> to vector<1x1x16xf32>
    tpu.vector_store %arg4[%c1_98, %c10_99, %c0_100], %225 {strides = array<i32>} : memref<2x24x128xf32, #tpu.memory_space<vmem>>, vector<1x1x16xf32>,
    %226 = vector.extract_strided_slice %127 {offsets = [0, 128], sizes = [1, 16], strides = [1, 1]} : vector<1x256xf32> to vector<1x16xf32>
    %c1_101 = arith.constant 1 : index
    %c11_102 = arith.constant 11 : index
    %c0_103 = arith.constant 0 : index
    %227 = vector.load %arg4[%c1_101, %c11_102, %c0_103] : memref<2x24x128xf32, #tpu.memory_space<vmem>>, vector<1x1x16xf32>
    %228 = vector.shape_cast %227 : vector<1x1x16xf32> to vector<1x16xf32>
    %229 = vector.shape_cast %226 : vector<1x16xf32> to vector<1x1x16xf32>
    tpu.vector_store %arg4[%c1_101, %c11_102, %c0_103], %229 {strides = array<i32>} : memref<2x24x128xf32, #tpu.memory_space<vmem>>, vector<1x1x16xf32>,
    %230 = vector.extract_strided_slice %127 {offsets = [0, 144], sizes = [1, 16], strides = [1, 1]} : vector<1x256xf32> to vector<1x16xf32>
    %c1_104 = arith.constant 1 : index
    %c12_105 = arith.constant 12 : index
    %c0_106 = arith.constant 0 : index
    %231 = vector.load %arg4[%c1_104, %c12_105, %c0_106] : memref<2x24x128xf32, #tpu.memory_space<vmem>>, vector<1x1x16xf32>
    %232 = vector.shape_cast %231 : vector<1x1x16xf32> to vector<1x16xf32>
    %233 = vector.shape_cast %230 : vector<1x16xf32> to vector<1x1x16xf32>
    tpu.vector_store %arg4[%c1_104, %c12_105, %c0_106], %233 {strides = array<i32>} : memref<2x24x128xf32, #tpu.memory_space<vmem>>, vector<1x1x16xf32>,
    %234 = vector.extract_strided_slice %127 {offsets = [0, 160], sizes = [1, 16], strides = [1, 1]} : vector<1x256xf32> to vector<1x16xf32>
    %c1_107 = arith.constant 1 : index
    %c13_108 = arith.constant 13 : index
    %c0_109 = arith.constant 0 : index
    %235 = vector.load %arg4[%c1_107, %c13_108, %c0_109] : memref<2x24x128xf32, #tpu.memory_space<vmem>>, vector<1x1x16xf32>
    %236 = vector.shape_cast %235 : vector<1x1x16xf32> to vector<1x16xf32>
    %237 = vector.shape_cast %234 : vector<1x16xf32> to vector<1x1x16xf32>
    tpu.vector_store %arg4[%c1_107, %c13_108, %c0_109], %237 {strides = array<i32>} : memref<2x24x128xf32, #tpu.memory_space<vmem>>, vector<1x1x16xf32>,
    %238 = vector.extract_strided_slice %127 {offsets = [0, 176], sizes = [1, 16], strides = [1, 1]} : vector<1x256xf32> to vector<1x16xf32>
    %c1_110 = arith.constant 1 : index
    %c14_111 = arith.constant 14 : index
    %c0_112 = arith.constant 0 : index
    %239 = vector.load %arg4[%c1_110, %c14_111, %c0_112] : memref<2x24x128xf32, #tpu.memory_space<vmem>>, vector<1x1x16xf32>
    %240 = vector.shape_cast %239 : vector<1x1x16xf32> to vector<1x16xf32>
    %241 = vector.shape_cast %238 : vector<1x16xf32> to vector<1x1x16xf32>
    tpu.vector_store %arg4[%c1_110, %c14_111, %c0_112], %241 {strides = array<i32>} : memref<2x24x128xf32, #tpu.memory_space<vmem>>, vector<1x1x16xf32>,
    %242 = vector.extract_strided_slice %127 {offsets = [0, 192], sizes = [1, 16], strides = [1, 1]} : vector<1x256xf32> to vector<1x16xf32>
    %c1_113 = arith.constant 1 : index
    %c15_114 = arith.constant 15 : index
    %c0_115 = arith.constant 0 : index
    %243 = vector.load %arg4[%c1_113, %c15_114, %c0_115] : memref<2x24x128xf32, #tpu.memory_space<vmem>>, vector<1x1x16xf32>
    %244 = vector.shape_cast %243 : vector<1x1x16xf32> to vector<1x16xf32>
    %245 = vector.shape_cast %242 : vector<1x16xf32> to vector<1x1x16xf32>
    tpu.vector_store %arg4[%c1_113, %c15_114, %c0_115], %245 {strides = array<i32>} : memref<2x24x128xf32, #tpu.memory_space<vmem>>, vector<1x1x16xf32>,
    %246 = vector.extract_strided_slice %127 {offsets = [0, 208], sizes = [1, 16], strides = [1, 1]} : vector<1x256xf32> to vector<1x16xf32>
    %c1_116 = arith.constant 1 : index
    %c16_117 = arith.constant 16 : index
    %c0_118 = arith.constant 0 : index
    %247 = vector.load %arg4[%c1_116, %c16_117, %c0_118] : memref<2x24x128xf32, #tpu.memory_space<vmem>>, vector<1x1x16xf32>
    %248 = vector.shape_cast %247 : vector<1x1x16xf32> to vector<1x16xf32>
    %249 = vector.shape_cast %246 : vector<1x16xf32> to vector<1x1x16xf32>
    tpu.vector_store %arg4[%c1_116, %c16_117, %c0_118], %249 {strides = array<i32>} : memref<2x24x128xf32, #tpu.memory_space<vmem>>, vector<1x1x16xf32>,
    %250 = vector.extract_strided_slice %127 {offsets = [0, 224], sizes = [1, 16], strides = [1, 1]} : vector<1x256xf32> to vector<1x16xf32>
    %c1_119 = arith.constant 1 : index
    %c17_120 = arith.constant 17 : index
    %c0_121 = arith.constant 0 : index
    %251 = vector.load %arg4[%c1_119, %c17_120, %c0_121] : memref<2x24x128xf32, #tpu.memory_space<vmem>>, vector<1x1x16xf32>
    %252 = vector.shape_cast %251 : vector<1x1x16xf32> to vector<1x16xf32>
    %253 = vector.shape_cast %250 : vector<1x16xf32> to vector<1x1x16xf32>
    tpu.vector_store %arg4[%c1_119, %c17_120, %c0_121], %253 {strides = array<i32>} : memref<2x24x128xf32, #tpu.memory_space<vmem>>, vector<1x1x16xf32>,
    %254 = vector.extract_strided_slice %127 {offsets = [0, 240], sizes = [1, 16], strides = [1, 1]} : vector<1x256xf32> to vector<1x16xf32>
    %c1_122 = arith.constant 1 : index
    %c18_123 = arith.constant 18 : index
    %c0_124 = arith.constant 0 : index
    %255 = vector.load %arg4[%c1_122, %c18_123, %c0_124] : memref<2x24x128xf32, #tpu.memory_space<vmem>>, vector<1x1x16xf32>
    %256 = vector.shape_cast %255 : vector<1x1x16xf32> to vector<1x16xf32>
    %257 = vector.shape_cast %254 : vector<1x16xf32> to vector<1x1x16xf32>
    tpu.vector_store %arg4[%c1_122, %c18_123, %c0_124], %257 {strides = array<i32>} : memref<2x24x128xf32, #tpu.memory_space<vmem>>, vector<1x1x16xf32>,
    %c0_125 = arith.constant 0 : index
    %c0_126 = arith.constant 0 : index
    %c0_127 = arith.constant 0 : index
    %258 = vector.load %arg4[%c0_125, %c0_126, %c0_127] : memref<2x24x128xf32, #tpu.memory_space<vmem>>, vector<1x24x128xf32>
    %259 = vector.shape_cast %258 : vector<1x24x128xf32> to vector<24x128xf32>
    %c3_i32 = arith.constant 3 : i32
    %260 = tpu.dynamic_rotate %259 by %c3_i32 dim 1 : vector<24x128xf32>, i32 -> vector<24x128xf32>
    %c0_128 = arith.constant 0 : index
    %c0_129 = arith.constant 0 : index
    %c0_130 = arith.constant 0 : index
    %261 = vector.load %arg5[%c0_128, %c0_129, %c0_130] : memref<14x24x128xf32, #tpu.memory_space<vmem>>, vector<1x24x128xf32>
    %262 = vector.shape_cast %261 : vector<1x24x128xf32> to vector<24x128xf32>
    %263 = vector.shape_cast %260 : vector<24x128xf32> to vector<1x24x128xf32>
    tpu.vector_store %arg5[%c0_128, %c0_129, %c0_130], %263 {strides = array<i32>} : memref<14x24x128xf32, #tpu.memory_space<vmem>>, vector<1x24x128xf32>,
    %c2_i32 = arith.constant 2 : i32
    %264 = tpu.dynamic_rotate %259 by %c2_i32 dim 1 : vector<24x128xf32>, i32 -> vector<24x128xf32>
    %c1_131 = arith.constant 1 : index
    %c0_132 = arith.constant 0 : index
    %c0_133 = arith.constant 0 : index
    %265 = vector.load %arg5[%c1_131, %c0_132, %c0_133] : memref<14x24x128xf32, #tpu.memory_space<vmem>>, vector<1x24x128xf32>
    %266 = vector.shape_cast %265 : vector<1x24x128xf32> to vector<24x128xf32>
    %267 = vector.shape_cast %264 : vector<24x128xf32> to vector<1x24x128xf32>
    tpu.vector_store %arg5[%c1_131, %c0_132, %c0_133], %267 {strides = array<i32>} : memref<14x24x128xf32, #tpu.memory_space<vmem>>, vector<1x24x128xf32>,
    %c1_i32 = arith.constant 1 : i32
    %268 = tpu.dynamic_rotate %259 by %c1_i32 dim 1 : vector<24x128xf32>, i32 -> vector<24x128xf32>
    %c2_134 = arith.constant 2 : index
    %c0_135 = arith.constant 0 : index
    %c0_136 = arith.constant 0 : index
    %269 = vector.load %arg5[%c2_134, %c0_135, %c0_136] : memref<14x24x128xf32, #tpu.memory_space<vmem>>, vector<1x24x128xf32>
    %270 = vector.shape_cast %269 : vector<1x24x128xf32> to vector<24x128xf32>
    %271 = vector.shape_cast %268 : vector<24x128xf32> to vector<1x24x128xf32>
    tpu.vector_store %arg5[%c2_134, %c0_135, %c0_136], %271 {strides = array<i32>} : memref<14x24x128xf32, #tpu.memory_space<vmem>>, vector<1x24x128xf32>,
    %c3_137 = arith.constant 3 : index
    %c0_138 = arith.constant 0 : index
    %c0_139 = arith.constant 0 : index
    %272 = vector.load %arg5[%c3_137, %c0_138, %c0_139] : memref<14x24x128xf32, #tpu.memory_space<vmem>>, vector<1x24x128xf32>
    %273 = vector.shape_cast %272 : vector<1x24x128xf32> to vector<24x128xf32>
    %274 = vector.shape_cast %259 : vector<24x128xf32> to vector<1x24x128xf32>
    tpu.vector_store %arg5[%c3_137, %c0_138, %c0_139], %274 {strides = array<i32>} : memref<14x24x128xf32, #tpu.memory_space<vmem>>, vector<1x24x128xf32>,
    %c127_i32 = arith.constant 127 : i32
    %275 = tpu.dynamic_rotate %259 by %c127_i32 dim 1 : vector<24x128xf32>, i32 -> vector<24x128xf32>
    %c4_140 = arith.constant 4 : index
    %c0_141 = arith.constant 0 : index
    %c0_142 = arith.constant 0 : index
    %276 = vector.load %arg5[%c4_140, %c0_141, %c0_142] : memref<14x24x128xf32, #tpu.memory_space<vmem>>, vector<1x24x128xf32>
    %277 = vector.shape_cast %276 : vector<1x24x128xf32> to vector<24x128xf32>
    %278 = vector.shape_cast %275 : vector<24x128xf32> to vector<1x24x128xf32>
    tpu.vector_store %arg5[%c4_140, %c0_141, %c0_142], %278 {strides = array<i32>} : memref<14x24x128xf32, #tpu.memory_space<vmem>>, vector<1x24x128xf32>,
    %c126_i32 = arith.constant 126 : i32
    %279 = tpu.dynamic_rotate %259 by %c126_i32 dim 1 : vector<24x128xf32>, i32 -> vector<24x128xf32>
    %c5_143 = arith.constant 5 : index
    %c0_144 = arith.constant 0 : index
    %c0_145 = arith.constant 0 : index
    %280 = vector.load %arg5[%c5_143, %c0_144, %c0_145] : memref<14x24x128xf32, #tpu.memory_space<vmem>>, vector<1x24x128xf32>
    %281 = vector.shape_cast %280 : vector<1x24x128xf32> to vector<24x128xf32>
    %282 = vector.shape_cast %279 : vector<24x128xf32> to vector<1x24x128xf32>
    tpu.vector_store %arg5[%c5_143, %c0_144, %c0_145], %282 {strides = array<i32>} : memref<14x24x128xf32, #tpu.memory_space<vmem>>, vector<1x24x128xf32>,
    %c125_i32 = arith.constant 125 : i32
    %283 = tpu.dynamic_rotate %259 by %c125_i32 dim 1 : vector<24x128xf32>, i32 -> vector<24x128xf32>
    %c6_146 = arith.constant 6 : index
    %c0_147 = arith.constant 0 : index
    %c0_148 = arith.constant 0 : index
    %284 = vector.load %arg5[%c6_146, %c0_147, %c0_148] : memref<14x24x128xf32, #tpu.memory_space<vmem>>, vector<1x24x128xf32>
    %285 = vector.shape_cast %284 : vector<1x24x128xf32> to vector<24x128xf32>
    %286 = vector.shape_cast %283 : vector<24x128xf32> to vector<1x24x128xf32>
    tpu.vector_store %arg5[%c6_146, %c0_147, %c0_148], %286 {strides = array<i32>} : memref<14x24x128xf32, #tpu.memory_space<vmem>>, vector<1x24x128xf32>,
    %c1_149 = arith.constant 1 : index
    %c0_150 = arith.constant 0 : index
    %c0_151 = arith.constant 0 : index
    %287 = vector.load %arg4[%c1_149, %c0_150, %c0_151] : memref<2x24x128xf32, #tpu.memory_space<vmem>>, vector<1x24x128xf32>
    %288 = vector.shape_cast %287 : vector<1x24x128xf32> to vector<24x128xf32>
    %c3_i32_152 = arith.constant 3 : i32
    %289 = tpu.dynamic_rotate %288 by %c3_i32_152 dim 1 : vector<24x128xf32>, i32 -> vector<24x128xf32>
    %c7_153 = arith.constant 7 : index
    %c0_154 = arith.constant 0 : index
    %c0_155 = arith.constant 0 : index
    %290 = vector.load %arg5[%c7_153, %c0_154, %c0_155] : memref<14x24x128xf32, #tpu.memory_space<vmem>>, vector<1x24x128xf32>
    %291 = vector.shape_cast %290 : vector<1x24x128xf32> to vector<24x128xf32>
    %292 = vector.shape_cast %289 : vector<24x128xf32> to vector<1x24x128xf32>
    tpu.vector_store %arg5[%c7_153, %c0_154, %c0_155], %292 {strides = array<i32>} : memref<14x24x128xf32, #tpu.memory_space<vmem>>, vector<1x24x128xf32>,
    %c2_i32_156 = arith.constant 2 : i32
    %293 = tpu.dynamic_rotate %288 by %c2_i32_156 dim 1 : vector<24x128xf32>, i32 -> vector<24x128xf32>
    %c8_157 = arith.constant 8 : index
    %c0_158 = arith.constant 0 : index
    %c0_159 = arith.constant 0 : index
    %294 = vector.load %arg5[%c8_157, %c0_158, %c0_159] : memref<14x24x128xf32, #tpu.memory_space<vmem>>, vector<1x24x128xf32>
    %295 = vector.shape_cast %294 : vector<1x24x128xf32> to vector<24x128xf32>
    %296 = vector.shape_cast %293 : vector<24x128xf32> to vector<1x24x128xf32>
    tpu.vector_store %arg5[%c8_157, %c0_158, %c0_159], %296 {strides = array<i32>} : memref<14x24x128xf32, #tpu.memory_space<vmem>>, vector<1x24x128xf32>,
    %c1_i32_160 = arith.constant 1 : i32
    %297 = tpu.dynamic_rotate %288 by %c1_i32_160 dim 1 : vector<24x128xf32>, i32 -> vector<24x128xf32>
    %c9_161 = arith.constant 9 : index
    %c0_162 = arith.constant 0 : index
    %c0_163 = arith.constant 0 : index
    %298 = vector.load %arg5[%c9_161, %c0_162, %c0_163] : memref<14x24x128xf32, #tpu.memory_space<vmem>>, vector<1x24x128xf32>
    %299 = vector.shape_cast %298 : vector<1x24x128xf32> to vector<24x128xf32>
    %300 = vector.shape_cast %297 : vector<24x128xf32> to vector<1x24x128xf32>
    tpu.vector_store %arg5[%c9_161, %c0_162, %c0_163], %300 {strides = array<i32>} : memref<14x24x128xf32, #tpu.memory_space<vmem>>, vector<1x24x128xf32>,
    %c10_164 = arith.constant 10 : index
    %c0_165 = arith.constant 0 : index
    %c0_166 = arith.constant 0 : index
    %301 = vector.load %arg5[%c10_164, %c0_165, %c0_166] : memref<14x24x128xf32, #tpu.memory_space<vmem>>, vector<1x24x128xf32>
    %302 = vector.shape_cast %301 : vector<1x24x128xf32> to vector<24x128xf32>
    %303 = vector.shape_cast %288 : vector<24x128xf32> to vector<1x24x128xf32>
    tpu.vector_store %arg5[%c10_164, %c0_165, %c0_166], %303 {strides = array<i32>} : memref<14x24x128xf32, #tpu.memory_space<vmem>>, vector<1x24x128xf32>,
    %c127_i32_167 = arith.constant 127 : i32
    %304 = tpu.dynamic_rotate %288 by %c127_i32_167 dim 1 : vector<24x128xf32>, i32 -> vector<24x128xf32>
    %c11_168 = arith.constant 11 : index
    %c0_169 = arith.constant 0 : index
    %c0_170 = arith.constant 0 : index
    %305 = vector.load %arg5[%c11_168, %c0_169, %c0_170] : memref<14x24x128xf32, #tpu.memory_space<vmem>>, vector<1x24x128xf32>
    %306 = vector.shape_cast %305 : vector<1x24x128xf32> to vector<24x128xf32>
    %307 = vector.shape_cast %304 : vector<24x128xf32> to vector<1x24x128xf32>
    tpu.vector_store %arg5[%c11_168, %c0_169, %c0_170], %307 {strides = array<i32>} : memref<14x24x128xf32, #tpu.memory_space<vmem>>, vector<1x24x128xf32>,
    %c126_i32_171 = arith.constant 126 : i32
    %308 = tpu.dynamic_rotate %288 by %c126_i32_171 dim 1 : vector<24x128xf32>, i32 -> vector<24x128xf32>
    %c12_172 = arith.constant 12 : index
    %c0_173 = arith.constant 0 : index
    %c0_174 = arith.constant 0 : index
    %309 = vector.load %arg5[%c12_172, %c0_173, %c0_174] : memref<14x24x128xf32, #tpu.memory_space<vmem>>, vector<1x24x128xf32>
    %310 = vector.shape_cast %309 : vector<1x24x128xf32> to vector<24x128xf32>
    %311 = vector.shape_cast %308 : vector<24x128xf32> to vector<1x24x128xf32>
    tpu.vector_store %arg5[%c12_172, %c0_173, %c0_174], %311 {strides = array<i32>} : memref<14x24x128xf32, #tpu.memory_space<vmem>>, vector<1x24x128xf32>,
    %c125_i32_175 = arith.constant 125 : i32
    %312 = tpu.dynamic_rotate %288 by %c125_i32_175 dim 1 : vector<24x128xf32>, i32 -> vector<24x128xf32>
    %c13_176 = arith.constant 13 : index
    %c0_177 = arith.constant 0 : index
    %c0_178 = arith.constant 0 : index
    %313 = vector.load %arg5[%c13_176, %c0_177, %c0_178] : memref<14x24x128xf32, #tpu.memory_space<vmem>>, vector<1x24x128xf32>
    %314 = vector.shape_cast %313 : vector<1x24x128xf32> to vector<24x128xf32>
    %315 = vector.shape_cast %312 : vector<24x128xf32> to vector<1x24x128xf32>
    tpu.vector_store %arg5[%c13_176, %c0_177, %c0_178], %315 {strides = array<i32>} : memref<14x24x128xf32, #tpu.memory_space<vmem>>, vector<1x24x128xf32>,
    %cst_179 = arith.constant 0.000000e+00 : f32
    %316 = vector.broadcast %cst_179 : f32 to vector<16x128xf32>
    %cst_180 = arith.constant 0.000000e+00 : f32
    %317 = vector.broadcast %cst_180 : f32 to vector<16x128xf32>
    %cst_181 = arith.constant 0.000000e+00 : f32
    %318 = vector.broadcast %cst_181 : f32 to vector<16x128xf32>
    %cst_182 = arith.constant 0.000000e+00 : f32
    %319 = vector.broadcast %cst_182 : f32 to vector<16x128xf32>
    %c0_183 = arith.constant 0 : index
    %c0_184 = arith.constant 0 : index
    %c0_185 = arith.constant 0 : index
    %320 = vector.load %arg5[%c0_183, %c0_184, %c0_185] : memref<14x24x128xf32, #tpu.memory_space<vmem>>, vector<1x16x128xf32>
    %321 = vector.shape_cast %320 : vector<1x16x128xf32> to vector<16x128xf32>
    %322 = vector.broadcast %0 : f32 to vector<16x128xf32>
    %323 = arith.mulf %322, %321 : vector<16x128xf32>
    %324 = arith.addf %316, %323 : vector<16x128xf32>
    %c0_186 = arith.constant 0 : index
    %c1_187 = arith.constant 1 : index
    %c0_188 = arith.constant 0 : index
    %325 = vector.load %arg5[%c0_186, %c1_187, %c0_188] : memref<14x24x128xf32, #tpu.memory_space<vmem>>, vector<1x16x128xf32>
    %326 = vector.shape_cast %325 : vector<1x16x128xf32> to vector<16x128xf32>
    %327 = vector.broadcast %7 : f32 to vector<16x128xf32>
    %328 = arith.mulf %327, %326 : vector<16x128xf32>
    %329 = arith.addf %317, %328 : vector<16x128xf32>
    %c0_189 = arith.constant 0 : index
    %c2_190 = arith.constant 2 : index
    %c0_191 = arith.constant 0 : index
    %330 = vector.load %arg5[%c0_189, %c2_190, %c0_191] : memref<14x24x128xf32, #tpu.memory_space<vmem>>, vector<1x16x128xf32>
    %331 = vector.shape_cast %330 : vector<1x16x128xf32> to vector<16x128xf32>
    %332 = vector.broadcast %14 : f32 to vector<16x128xf32>
    %333 = arith.mulf %332, %331 : vector<16x128xf32>
    %334 = arith.addf %318, %333 : vector<16x128xf32>
    %c0_192 = arith.constant 0 : index
    %c3_193 = arith.constant 3 : index
    %c0_194 = arith.constant 0 : index
    %335 = vector.load %arg5[%c0_192, %c3_193, %c0_194] : memref<14x24x128xf32, #tpu.memory_space<vmem>>, vector<1x16x128xf32>
    %336 = vector.shape_cast %335 : vector<1x16x128xf32> to vector<16x128xf32>
    %337 = vector.broadcast %21 : f32 to vector<16x128xf32>
    %338 = arith.mulf %337, %336 : vector<16x128xf32>
    %339 = arith.addf %319, %338 : vector<16x128xf32>
    %c0_195 = arith.constant 0 : index
    %c4_196 = arith.constant 4 : index
    %c0_197 = arith.constant 0 : index
    %340 = vector.load %arg5[%c0_195, %c4_196, %c0_197] : memref<14x24x128xf32, #tpu.memory_space<vmem>>, vector<1x16x128xf32>
    %341 = vector.shape_cast %340 : vector<1x16x128xf32> to vector<16x128xf32>
    %342 = vector.broadcast %28 : f32 to vector<16x128xf32>
    %343 = arith.mulf %342, %341 : vector<16x128xf32>
    %344 = arith.addf %324, %343 : vector<16x128xf32>
    %c0_198 = arith.constant 0 : index
    %c5_199 = arith.constant 5 : index
    %c0_200 = arith.constant 0 : index
    %345 = vector.load %arg5[%c0_198, %c5_199, %c0_200] : memref<14x24x128xf32, #tpu.memory_space<vmem>>, vector<1x16x128xf32>
    %346 = vector.shape_cast %345 : vector<1x16x128xf32> to vector<16x128xf32>
    %347 = vector.broadcast %35 : f32 to vector<16x128xf32>
    %348 = arith.mulf %347, %346 : vector<16x128xf32>
    %349 = arith.addf %329, %348 : vector<16x128xf32>
    %c0_201 = arith.constant 0 : index
    %c6_202 = arith.constant 6 : index
    %c0_203 = arith.constant 0 : index
    %350 = vector.load %arg5[%c0_201, %c6_202, %c0_203] : memref<14x24x128xf32, #tpu.memory_space<vmem>>, vector<1x16x128xf32>
    %351 = vector.shape_cast %350 : vector<1x16x128xf32> to vector<16x128xf32>
    %352 = vector.broadcast %42 : f32 to vector<16x128xf32>
    %353 = arith.mulf %352, %351 : vector<16x128xf32>
    %354 = arith.addf %334, %353 : vector<16x128xf32>
    %c1_204 = arith.constant 1 : index
    %c0_205 = arith.constant 0 : index
    %c0_206 = arith.constant 0 : index
    %355 = vector.load %arg5[%c1_204, %c0_205, %c0_206] : memref<14x24x128xf32, #tpu.memory_space<vmem>>, vector<1x16x128xf32>
    %356 = vector.shape_cast %355 : vector<1x16x128xf32> to vector<16x128xf32>
    %357 = vector.broadcast %1 : f32 to vector<16x128xf32>
    %358 = arith.mulf %357, %356 : vector<16x128xf32>
    %359 = arith.addf %339, %358 : vector<16x128xf32>
    %c1_207 = arith.constant 1 : index
    %c1_208 = arith.constant 1 : index
    %c0_209 = arith.constant 0 : index
    %360 = vector.load %arg5[%c1_207, %c1_208, %c0_209] : memref<14x24x128xf32, #tpu.memory_space<vmem>>, vector<1x16x128xf32>
    %361 = vector.shape_cast %360 : vector<1x16x128xf32> to vector<16x128xf32>
    %362 = vector.broadcast %8 : f32 to vector<16x128xf32>
    %363 = arith.mulf %362, %361 : vector<16x128xf32>
    %364 = arith.addf %344, %363 : vector<16x128xf32>
    %c1_210 = arith.constant 1 : index
    %c2_211 = arith.constant 2 : index
    %c0_212 = arith.constant 0 : index
    %365 = vector.load %arg5[%c1_210, %c2_211, %c0_212] : memref<14x24x128xf32, #tpu.memory_space<vmem>>, vector<1x16x128xf32>
    %366 = vector.shape_cast %365 : vector<1x16x128xf32> to vector<16x128xf32>
    %367 = vector.broadcast %15 : f32 to vector<16x128xf32>
    %368 = arith.mulf %367, %366 : vector<16x128xf32>
    %369 = arith.addf %349, %368 : vector<16x128xf32>
    %c1_213 = arith.constant 1 : index
    %c3_214 = arith.constant 3 : index
    %c0_215 = arith.constant 0 : index
    %370 = vector.load %arg5[%c1_213, %c3_214, %c0_215] : memref<14x24x128xf32, #tpu.memory_space<vmem>>, vector<1x16x128xf32>
    %371 = vector.shape_cast %370 : vector<1x16x128xf32> to vector<16x128xf32>
    %372 = vector.broadcast %22 : f32 to vector<16x128xf32>
    %373 = arith.mulf %372, %371 : vector<16x128xf32>
    %374 = arith.addf %354, %373 : vector<16x128xf32>
    %c1_216 = arith.constant 1 : index
    %c4_217 = arith.constant 4 : index
    %c0_218 = arith.constant 0 : index
    %375 = vector.load %arg5[%c1_216, %c4_217, %c0_218] : memref<14x24x128xf32, #tpu.memory_space<vmem>>, vector<1x16x128xf32>
    %376 = vector.shape_cast %375 : vector<1x16x128xf32> to vector<16x128xf32>
    %377 = vector.broadcast %29 : f32 to vector<16x128xf32>
    %378 = arith.mulf %377, %376 : vector<16x128xf32>
    %379 = arith.addf %359, %378 : vector<16x128xf32>
    %c1_219 = arith.constant 1 : index
    %c5_220 = arith.constant 5 : index
    %c0_221 = arith.constant 0 : index
    %380 = vector.load %arg5[%c1_219, %c5_220, %c0_221] : memref<14x24x128xf32, #tpu.memory_space<vmem>>, vector<1x16x128xf32>
    %381 = vector.shape_cast %380 : vector<1x16x128xf32> to vector<16x128xf32>
    %382 = vector.broadcast %36 : f32 to vector<16x128xf32>
    %383 = arith.mulf %382, %381 : vector<16x128xf32>
    %384 = arith.addf %364, %383 : vector<16x128xf32>
    %c1_222 = arith.constant 1 : index
    %c6_223 = arith.constant 6 : index
    %c0_224 = arith.constant 0 : index
    %385 = vector.load %arg5[%c1_222, %c6_223, %c0_224] : memref<14x24x128xf32, #tpu.memory_space<vmem>>, vector<1x16x128xf32>
    %386 = vector.shape_cast %385 : vector<1x16x128xf32> to vector<16x128xf32>
    %387 = vector.broadcast %43 : f32 to vector<16x128xf32>
    %388 = arith.mulf %387, %386 : vector<16x128xf32>
    %389 = arith.addf %369, %388 : vector<16x128xf32>
    %c2_225 = arith.constant 2 : index
    %c0_226 = arith.constant 0 : index
    %c0_227 = arith.constant 0 : index
    %390 = vector.load %arg5[%c2_225, %c0_226, %c0_227] : memref<14x24x128xf32, #tpu.memory_space<vmem>>, vector<1x16x128xf32>
    %391 = vector.shape_cast %390 : vector<1x16x128xf32> to vector<16x128xf32>
    %392 = vector.broadcast %2 : f32 to vector<16x128xf32>
    %393 = arith.mulf %392, %391 : vector<16x128xf32>
    %394 = arith.addf %374, %393 : vector<16x128xf32>
    %c2_228 = arith.constant 2 : index
    %c1_229 = arith.constant 1 : index
    %c0_230 = arith.constant 0 : index
    %395 = vector.load %arg5[%c2_228, %c1_229, %c0_230] : memref<14x24x128xf32, #tpu.memory_space<vmem>>, vector<1x16x128xf32>
    %396 = vector.shape_cast %395 : vector<1x16x128xf32> to vector<16x128xf32>
    %397 = vector.broadcast %9 : f32 to vector<16x128xf32>
    %398 = arith.mulf %397, %396 : vector<16x128xf32>
    %399 = arith.addf %379, %398 : vector<16x128xf32>
    %c2_231 = arith.constant 2 : index
    %c2_232 = arith.constant 2 : index
    %c0_233 = arith.constant 0 : index
    %400 = vector.load %arg5[%c2_231, %c2_232, %c0_233] : memref<14x24x128xf32, #tpu.memory_space<vmem>>, vector<1x16x128xf32>
    %401 = vector.shape_cast %400 : vector<1x16x128xf32> to vector<16x128xf32>
    %402 = vector.broadcast %16 : f32 to vector<16x128xf32>
    %403 = arith.mulf %402, %401 : vector<16x128xf32>
    %404 = arith.addf %384, %403 : vector<16x128xf32>
    %c2_234 = arith.constant 2 : index
    %c3_235 = arith.constant 3 : index
    %c0_236 = arith.constant 0 : index
    %405 = vector.load %arg5[%c2_234, %c3_235, %c0_236] : memref<14x24x128xf32, #tpu.memory_space<vmem>>, vector<1x16x128xf32>
    %406 = vector.shape_cast %405 : vector<1x16x128xf32> to vector<16x128xf32>
    %407 = vector.broadcast %23 : f32 to vector<16x128xf32>
    %408 = arith.mulf %407, %406 : vector<16x128xf32>
    %409 = arith.addf %389, %408 : vector<16x128xf32>
    %c2_237 = arith.constant 2 : index
    %c4_238 = arith.constant 4 : index
    %c0_239 = arith.constant 0 : index
    %410 = vector.load %arg5[%c2_237, %c4_238, %c0_239] : memref<14x24x128xf32, #tpu.memory_space<vmem>>, vector<1x16x128xf32>
    %411 = vector.shape_cast %410 : vector<1x16x128xf32> to vector<16x128xf32>
    %412 = vector.broadcast %30 : f32 to vector<16x128xf32>
    %413 = arith.mulf %412, %411 : vector<16x128xf32>
    %414 = arith.addf %394, %413 : vector<16x128xf32>
    %c2_240 = arith.constant 2 : index
    %c5_241 = arith.constant 5 : index
    %c0_242 = arith.constant 0 : index
    %415 = vector.load %arg5[%c2_240, %c5_241, %c0_242] : memref<14x24x128xf32, #tpu.memory_space<vmem>>, vector<1x16x128xf32>
    %416 = vector.shape_cast %415 : vector<1x16x128xf32> to vector<16x128xf32>
    %417 = vector.broadcast %37 : f32 to vector<16x128xf32>
    %418 = arith.mulf %417, %416 : vector<16x128xf32>
    %419 = arith.addf %399, %418 : vector<16x128xf32>
    %c2_243 = arith.constant 2 : index
    %c6_244 = arith.constant 6 : index
    %c0_245 = arith.constant 0 : index
    %420 = vector.load %arg5[%c2_243, %c6_244, %c0_245] : memref<14x24x128xf32, #tpu.memory_space<vmem>>, vector<1x16x128xf32>
    %421 = vector.shape_cast %420 : vector<1x16x128xf32> to vector<16x128xf32>
    %422 = vector.broadcast %44 : f32 to vector<16x128xf32>
    %423 = arith.mulf %422, %421 : vector<16x128xf32>
    %424 = arith.addf %404, %423 : vector<16x128xf32>
    %c3_246 = arith.constant 3 : index
    %c0_247 = arith.constant 0 : index
    %c0_248 = arith.constant 0 : index
    %425 = vector.load %arg5[%c3_246, %c0_247, %c0_248] : memref<14x24x128xf32, #tpu.memory_space<vmem>>, vector<1x16x128xf32>
    %426 = vector.shape_cast %425 : vector<1x16x128xf32> to vector<16x128xf32>
    %427 = vector.broadcast %3 : f32 to vector<16x128xf32>
    %428 = arith.mulf %427, %426 : vector<16x128xf32>
    %429 = arith.addf %409, %428 : vector<16x128xf32>
    %c3_249 = arith.constant 3 : index
    %c1_250 = arith.constant 1 : index
    %c0_251 = arith.constant 0 : index
    %430 = vector.load %arg5[%c3_249, %c1_250, %c0_251] : memref<14x24x128xf32, #tpu.memory_space<vmem>>, vector<1x16x128xf32>
    %431 = vector.shape_cast %430 : vector<1x16x128xf32> to vector<16x128xf32>
    %432 = vector.broadcast %10 : f32 to vector<16x128xf32>
    %433 = arith.mulf %432, %431 : vector<16x128xf32>
    %434 = arith.addf %414, %433 : vector<16x128xf32>
    %c3_252 = arith.constant 3 : index
    %c2_253 = arith.constant 2 : index
    %c0_254 = arith.constant 0 : index
    %435 = vector.load %arg5[%c3_252, %c2_253, %c0_254] : memref<14x24x128xf32, #tpu.memory_space<vmem>>, vector<1x16x128xf32>
    %436 = vector.shape_cast %435 : vector<1x16x128xf32> to vector<16x128xf32>
    %437 = vector.broadcast %17 : f32 to vector<16x128xf32>
    %438 = arith.mulf %437, %436 : vector<16x128xf32>
    %439 = arith.addf %419, %438 : vector<16x128xf32>
    %c3_255 = arith.constant 3 : index
    %c3_256 = arith.constant 3 : index
    %c0_257 = arith.constant 0 : index
    %440 = vector.load %arg5[%c3_255, %c3_256, %c0_257] : memref<14x24x128xf32, #tpu.memory_space<vmem>>, vector<1x16x128xf32>
    %441 = vector.shape_cast %440 : vector<1x16x128xf32> to vector<16x128xf32>
    %442 = vector.broadcast %24 : f32 to vector<16x128xf32>
    %443 = arith.mulf %442, %441 : vector<16x128xf32>
    %444 = arith.addf %424, %443 : vector<16x128xf32>
    %c3_258 = arith.constant 3 : index
    %c4_259 = arith.constant 4 : index
    %c0_260 = arith.constant 0 : index
    %445 = vector.load %arg5[%c3_258, %c4_259, %c0_260] : memref<14x24x128xf32, #tpu.memory_space<vmem>>, vector<1x16x128xf32>
    %446 = vector.shape_cast %445 : vector<1x16x128xf32> to vector<16x128xf32>
    %447 = vector.broadcast %31 : f32 to vector<16x128xf32>
    %448 = arith.mulf %447, %446 : vector<16x128xf32>
    %449 = arith.addf %429, %448 : vector<16x128xf32>
    %c3_261 = arith.constant 3 : index
    %c5_262 = arith.constant 5 : index
    %c0_263 = arith.constant 0 : index
    %450 = vector.load %arg5[%c3_261, %c5_262, %c0_263] : memref<14x24x128xf32, #tpu.memory_space<vmem>>, vector<1x16x128xf32>
    %451 = vector.shape_cast %450 : vector<1x16x128xf32> to vector<16x128xf32>
    %452 = vector.broadcast %38 : f32 to vector<16x128xf32>
    %453 = arith.mulf %452, %451 : vector<16x128xf32>
    %454 = arith.addf %434, %453 : vector<16x128xf32>
    %c3_264 = arith.constant 3 : index
    %c6_265 = arith.constant 6 : index
    %c0_266 = arith.constant 0 : index
    %455 = vector.load %arg5[%c3_264, %c6_265, %c0_266] : memref<14x24x128xf32, #tpu.memory_space<vmem>>, vector<1x16x128xf32>
    %456 = vector.shape_cast %455 : vector<1x16x128xf32> to vector<16x128xf32>
    %457 = vector.broadcast %45 : f32 to vector<16x128xf32>
    %458 = arith.mulf %457, %456 : vector<16x128xf32>
    %459 = arith.addf %439, %458 : vector<16x128xf32>
    %c4_267 = arith.constant 4 : index
    %c0_268 = arith.constant 0 : index
    %c0_269 = arith.constant 0 : index
    %460 = vector.load %arg5[%c4_267, %c0_268, %c0_269] : memref<14x24x128xf32, #tpu.memory_space<vmem>>, vector<1x16x128xf32>
    %461 = vector.shape_cast %460 : vector<1x16x128xf32> to vector<16x128xf32>
    %462 = vector.broadcast %4 : f32 to vector<16x128xf32>
    %463 = arith.mulf %462, %461 : vector<16x128xf32>
    %464 = arith.addf %444, %463 : vector<16x128xf32>
    %c4_270 = arith.constant 4 : index
    %c1_271 = arith.constant 1 : index
    %c0_272 = arith.constant 0 : index
    %465 = vector.load %arg5[%c4_270, %c1_271, %c0_272] : memref<14x24x128xf32, #tpu.memory_space<vmem>>, vector<1x16x128xf32>
    %466 = vector.shape_cast %465 : vector<1x16x128xf32> to vector<16x128xf32>
    %467 = vector.broadcast %11 : f32 to vector<16x128xf32>
    %468 = arith.mulf %467, %466 : vector<16x128xf32>
    %469 = arith.addf %449, %468 : vector<16x128xf32>
    %c4_273 = arith.constant 4 : index
    %c2_274 = arith.constant 2 : index
    %c0_275 = arith.constant 0 : index
    %470 = vector.load %arg5[%c4_273, %c2_274, %c0_275] : memref<14x24x128xf32, #tpu.memory_space<vmem>>, vector<1x16x128xf32>
    %471 = vector.shape_cast %470 : vector<1x16x128xf32> to vector<16x128xf32>
    %472 = vector.broadcast %18 : f32 to vector<16x128xf32>
    %473 = arith.mulf %472, %471 : vector<16x128xf32>
    %474 = arith.addf %454, %473 : vector<16x128xf32>
    %c4_276 = arith.constant 4 : index
    %c3_277 = arith.constant 3 : index
    %c0_278 = arith.constant 0 : index
    %475 = vector.load %arg5[%c4_276, %c3_277, %c0_278] : memref<14x24x128xf32, #tpu.memory_space<vmem>>, vector<1x16x128xf32>
    %476 = vector.shape_cast %475 : vector<1x16x128xf32> to vector<16x128xf32>
    %477 = vector.broadcast %25 : f32 to vector<16x128xf32>
    %478 = arith.mulf %477, %476 : vector<16x128xf32>
    %479 = arith.addf %459, %478 : vector<16x128xf32>
    %c4_279 = arith.constant 4 : index
    %c4_280 = arith.constant 4 : index
    %c0_281 = arith.constant 0 : index
    %480 = vector.load %arg5[%c4_279, %c4_280, %c0_281] : memref<14x24x128xf32, #tpu.memory_space<vmem>>, vector<1x16x128xf32>
    %481 = vector.shape_cast %480 : vector<1x16x128xf32> to vector<16x128xf32>
    %482 = vector.broadcast %32 : f32 to vector<16x128xf32>
    %483 = arith.mulf %482, %481 : vector<16x128xf32>
    %484 = arith.addf %464, %483 : vector<16x128xf32>
    %c4_282 = arith.constant 4 : index
    %c5_283 = arith.constant 5 : index
    %c0_284 = arith.constant 0 : index
    %485 = vector.load %arg5[%c4_282, %c5_283, %c0_284] : memref<14x24x128xf32, #tpu.memory_space<vmem>>, vector<1x16x128xf32>
    %486 = vector.shape_cast %485 : vector<1x16x128xf32> to vector<16x128xf32>
    %487 = vector.broadcast %39 : f32 to vector<16x128xf32>
    %488 = arith.mulf %487, %486 : vector<16x128xf32>
    %489 = arith.addf %469, %488 : vector<16x128xf32>
    %c4_285 = arith.constant 4 : index
    %c6_286 = arith.constant 6 : index
    %c0_287 = arith.constant 0 : index
    %490 = vector.load %arg5[%c4_285, %c6_286, %c0_287] : memref<14x24x128xf32, #tpu.memory_space<vmem>>, vector<1x16x128xf32>
    %491 = vector.shape_cast %490 : vector<1x16x128xf32> to vector<16x128xf32>
    %492 = vector.broadcast %46 : f32 to vector<16x128xf32>
    %493 = arith.mulf %492, %491 : vector<16x128xf32>
    %494 = arith.addf %474, %493 : vector<16x128xf32>
    %c5_288 = arith.constant 5 : index
    %c0_289 = arith.constant 0 : index
    %c0_290 = arith.constant 0 : index
    %495 = vector.load %arg5[%c5_288, %c0_289, %c0_290] : memref<14x24x128xf32, #tpu.memory_space<vmem>>, vector<1x16x128xf32>
    %496 = vector.shape_cast %495 : vector<1x16x128xf32> to vector<16x128xf32>
    %497 = vector.broadcast %5 : f32 to vector<16x128xf32>
    %498 = arith.mulf %497, %496 : vector<16x128xf32>
    %499 = arith.addf %479, %498 : vector<16x128xf32>
    %c5_291 = arith.constant 5 : index
    %c1_292 = arith.constant 1 : index
    %c0_293 = arith.constant 0 : index
    %500 = vector.load %arg5[%c5_291, %c1_292, %c0_293] : memref<14x24x128xf32, #tpu.memory_space<vmem>>, vector<1x16x128xf32>
    %501 = vector.shape_cast %500 : vector<1x16x128xf32> to vector<16x128xf32>
    %502 = vector.broadcast %12 : f32 to vector<16x128xf32>
    %503 = arith.mulf %502, %501 : vector<16x128xf32>
    %504 = arith.addf %484, %503 : vector<16x128xf32>
    %c5_294 = arith.constant 5 : index
    %c2_295 = arith.constant 2 : index
    %c0_296 = arith.constant 0 : index
    %505 = vector.load %arg5[%c5_294, %c2_295, %c0_296] : memref<14x24x128xf32, #tpu.memory_space<vmem>>, vector<1x16x128xf32>
    %506 = vector.shape_cast %505 : vector<1x16x128xf32> to vector<16x128xf32>
    %507 = vector.broadcast %19 : f32 to vector<16x128xf32>
    %508 = arith.mulf %507, %506 : vector<16x128xf32>
    %509 = arith.addf %489, %508 : vector<16x128xf32>
    %c5_297 = arith.constant 5 : index
    %c3_298 = arith.constant 3 : index
    %c0_299 = arith.constant 0 : index
    %510 = vector.load %arg5[%c5_297, %c3_298, %c0_299] : memref<14x24x128xf32, #tpu.memory_space<vmem>>, vector<1x16x128xf32>
    %511 = vector.shape_cast %510 : vector<1x16x128xf32> to vector<16x128xf32>
    %512 = vector.broadcast %26 : f32 to vector<16x128xf32>
    %513 = arith.mulf %512, %511 : vector<16x128xf32>
    %514 = arith.addf %494, %513 : vector<16x128xf32>
    %c5_300 = arith.constant 5 : index
    %c4_301 = arith.constant 4 : index
    %c0_302 = arith.constant 0 : index
    %515 = vector.load %arg5[%c5_300, %c4_301, %c0_302] : memref<14x24x128xf32, #tpu.memory_space<vmem>>, vector<1x16x128xf32>
    %516 = vector.shape_cast %515 : vector<1x16x128xf32> to vector<16x128xf32>
    %517 = vector.broadcast %33 : f32 to vector<16x128xf32>
    %518 = arith.mulf %517, %516 : vector<16x128xf32>
    %519 = arith.addf %499, %518 : vector<16x128xf32>
    %c5_303 = arith.constant 5 : index
    %c5_304 = arith.constant 5 : index
    %c0_305 = arith.constant 0 : index
    %520 = vector.load %arg5[%c5_303, %c5_304, %c0_305] : memref<14x24x128xf32, #tpu.memory_space<vmem>>, vector<1x16x128xf32>
    %521 = vector.shape_cast %520 : vector<1x16x128xf32> to vector<16x128xf32>
    %522 = vector.broadcast %40 : f32 to vector<16x128xf32>
    %523 = arith.mulf %522, %521 : vector<16x128xf32>
    %524 = arith.addf %504, %523 : vector<16x128xf32>
    %c5_306 = arith.constant 5 : index
    %c6_307 = arith.constant 6 : index
    %c0_308 = arith.constant 0 : index
    %525 = vector.load %arg5[%c5_306, %c6_307, %c0_308] : memref<14x24x128xf32, #tpu.memory_space<vmem>>, vector<1x16x128xf32>
    %526 = vector.shape_cast %525 : vector<1x16x128xf32> to vector<16x128xf32>
    %527 = vector.broadcast %47 : f32 to vector<16x128xf32>
    %528 = arith.mulf %527, %526 : vector<16x128xf32>
    %529 = arith.addf %509, %528 : vector<16x128xf32>
    %c6_309 = arith.constant 6 : index
    %c0_310 = arith.constant 0 : index
    %c0_311 = arith.constant 0 : index
    %530 = vector.load %arg5[%c6_309, %c0_310, %c0_311] : memref<14x24x128xf32, #tpu.memory_space<vmem>>, vector<1x16x128xf32>
    %531 = vector.shape_cast %530 : vector<1x16x128xf32> to vector<16x128xf32>
    %532 = vector.broadcast %6 : f32 to vector<16x128xf32>
    %533 = arith.mulf %532, %531 : vector<16x128xf32>
    %534 = arith.addf %514, %533 : vector<16x128xf32>
    %c6_312 = arith.constant 6 : index
    %c1_313 = arith.constant 1 : index
    %c0_314 = arith.constant 0 : index
    %535 = vector.load %arg5[%c6_312, %c1_313, %c0_314] : memref<14x24x128xf32, #tpu.memory_space<vmem>>, vector<1x16x128xf32>
    %536 = vector.shape_cast %535 : vector<1x16x128xf32> to vector<16x128xf32>
    %537 = vector.broadcast %13 : f32 to vector<16x128xf32>
    %538 = arith.mulf %537, %536 : vector<16x128xf32>
    %539 = arith.addf %519, %538 : vector<16x128xf32>
    %c6_315 = arith.constant 6 : index
    %c2_316 = arith.constant 2 : index
    %c0_317 = arith.constant 0 : index
    %540 = vector.load %arg5[%c6_315, %c2_316, %c0_317] : memref<14x24x128xf32, #tpu.memory_space<vmem>>, vector<1x16x128xf32>
    %541 = vector.shape_cast %540 : vector<1x16x128xf32> to vector<16x128xf32>
    %542 = vector.broadcast %20 : f32 to vector<16x128xf32>
    %543 = arith.mulf %542, %541 : vector<16x128xf32>
    %544 = arith.addf %524, %543 : vector<16x128xf32>
    %c6_318 = arith.constant 6 : index
    %c3_319 = arith.constant 3 : index
    %c0_320 = arith.constant 0 : index
    %545 = vector.load %arg5[%c6_318, %c3_319, %c0_320] : memref<14x24x128xf32, #tpu.memory_space<vmem>>, vector<1x16x128xf32>
    %546 = vector.shape_cast %545 : vector<1x16x128xf32> to vector<16x128xf32>
    %547 = vector.broadcast %27 : f32 to vector<16x128xf32>
    %548 = arith.mulf %547, %546 : vector<16x128xf32>
    %549 = arith.addf %529, %548 : vector<16x128xf32>
    %c6_321 = arith.constant 6 : index
    %c4_322 = arith.constant 4 : index
    %c0_323 = arith.constant 0 : index
    %550 = vector.load %arg5[%c6_321, %c4_322, %c0_323] : memref<14x24x128xf32, #tpu.memory_space<vmem>>, vector<1x16x128xf32>
    %551 = vector.shape_cast %550 : vector<1x16x128xf32> to vector<16x128xf32>
    %552 = vector.broadcast %34 : f32 to vector<16x128xf32>
    %553 = arith.mulf %552, %551 : vector<16x128xf32>
    %554 = arith.addf %534, %553 : vector<16x128xf32>
    %c6_324 = arith.constant 6 : index
    %c5_325 = arith.constant 5 : index
    %c0_326 = arith.constant 0 : index
    %555 = vector.load %arg5[%c6_324, %c5_325, %c0_326] : memref<14x24x128xf32, #tpu.memory_space<vmem>>, vector<1x16x128xf32>
    %556 = vector.shape_cast %555 : vector<1x16x128xf32> to vector<16x128xf32>
    %557 = vector.broadcast %41 : f32 to vector<16x128xf32>
    %558 = arith.mulf %557, %556 : vector<16x128xf32>
    %559 = arith.addf %539, %558 : vector<16x128xf32>
    %c6_327 = arith.constant 6 : index
    %c6_328 = arith.constant 6 : index
    %c0_329 = arith.constant 0 : index
    %560 = vector.load %arg5[%c6_327, %c6_328, %c0_329] : memref<14x24x128xf32, #tpu.memory_space<vmem>>, vector<1x16x128xf32>
    %561 = vector.shape_cast %560 : vector<1x16x128xf32> to vector<16x128xf32>
    %562 = vector.broadcast %48 : f32 to vector<16x128xf32>
    %563 = arith.mulf %562, %561 : vector<16x128xf32>
    %564 = arith.addf %544, %563 : vector<16x128xf32>
    %c7_330 = arith.constant 7 : index
    %c0_331 = arith.constant 0 : index
    %c0_332 = arith.constant 0 : index
    %565 = vector.load %arg5[%c7_330, %c0_331, %c0_332] : memref<14x24x128xf32, #tpu.memory_space<vmem>>, vector<1x16x128xf32>
    %566 = vector.shape_cast %565 : vector<1x16x128xf32> to vector<16x128xf32>
    %567 = vector.broadcast %49 : f32 to vector<16x128xf32>
    %568 = arith.mulf %567, %566 : vector<16x128xf32>
    %569 = arith.addf %549, %568 : vector<16x128xf32>
    %c7_333 = arith.constant 7 : index
    %c1_334 = arith.constant 1 : index
    %c0_335 = arith.constant 0 : index
    %570 = vector.load %arg5[%c7_333, %c1_334, %c0_335] : memref<14x24x128xf32, #tpu.memory_space<vmem>>, vector<1x16x128xf32>
    %571 = vector.shape_cast %570 : vector<1x16x128xf32> to vector<16x128xf32>
    %572 = vector.broadcast %56 : f32 to vector<16x128xf32>
    %573 = arith.mulf %572, %571 : vector<16x128xf32>
    %574 = arith.addf %554, %573 : vector<16x128xf32>
    %c7_336 = arith.constant 7 : index
    %c2_337 = arith.constant 2 : index
    %c0_338 = arith.constant 0 : index
    %575 = vector.load %arg5[%c7_336, %c2_337, %c0_338] : memref<14x24x128xf32, #tpu.memory_space<vmem>>, vector<1x16x128xf32>
    %576 = vector.shape_cast %575 : vector<1x16x128xf32> to vector<16x128xf32>
    %577 = vector.broadcast %63 : f32 to vector<16x128xf32>
    %578 = arith.mulf %577, %576 : vector<16x128xf32>
    %579 = arith.addf %559, %578 : vector<16x128xf32>
    %c7_339 = arith.constant 7 : index
    %c3_340 = arith.constant 3 : index
    %c0_341 = arith.constant 0 : index
    %580 = vector.load %arg5[%c7_339, %c3_340, %c0_341] : memref<14x24x128xf32, #tpu.memory_space<vmem>>, vector<1x16x128xf32>
    %581 = vector.shape_cast %580 : vector<1x16x128xf32> to vector<16x128xf32>
    %582 = vector.broadcast %70 : f32 to vector<16x128xf32>
    %583 = arith.mulf %582, %581 : vector<16x128xf32>
    %584 = arith.addf %564, %583 : vector<16x128xf32>
    %c7_342 = arith.constant 7 : index
    %c4_343 = arith.constant 4 : index
    %c0_344 = arith.constant 0 : index
    %585 = vector.load %arg5[%c7_342, %c4_343, %c0_344] : memref<14x24x128xf32, #tpu.memory_space<vmem>>, vector<1x16x128xf32>
    %586 = vector.shape_cast %585 : vector<1x16x128xf32> to vector<16x128xf32>
    %587 = vector.broadcast %77 : f32 to vector<16x128xf32>
    %588 = arith.mulf %587, %586 : vector<16x128xf32>
    %589 = arith.addf %569, %588 : vector<16x128xf32>
    %c7_345 = arith.constant 7 : index
    %c5_346 = arith.constant 5 : index
    %c0_347 = arith.constant 0 : index
    %590 = vector.load %arg5[%c7_345, %c5_346, %c0_347] : memref<14x24x128xf32, #tpu.memory_space<vmem>>, vector<1x16x128xf32>
    %591 = vector.shape_cast %590 : vector<1x16x128xf32> to vector<16x128xf32>
    %592 = vector.broadcast %84 : f32 to vector<16x128xf32>
    %593 = arith.mulf %592, %591 : vector<16x128xf32>
    %594 = arith.addf %574, %593 : vector<16x128xf32>
    %c7_348 = arith.constant 7 : index
    %c6_349 = arith.constant 6 : index
    %c0_350 = arith.constant 0 : index
    %595 = vector.load %arg5[%c7_348, %c6_349, %c0_350] : memref<14x24x128xf32, #tpu.memory_space<vmem>>, vector<1x16x128xf32>
    %596 = vector.shape_cast %595 : vector<1x16x128xf32> to vector<16x128xf32>
    %597 = vector.broadcast %91 : f32 to vector<16x128xf32>
    %598 = arith.mulf %597, %596 : vector<16x128xf32>
    %599 = arith.addf %579, %598 : vector<16x128xf32>
    %c8_351 = arith.constant 8 : index
    %c0_352 = arith.constant 0 : index
    %c0_353 = arith.constant 0 : index
    %600 = vector.load %arg5[%c8_351, %c0_352, %c0_353] : memref<14x24x128xf32, #tpu.memory_space<vmem>>, vector<1x16x128xf32>
    %601 = vector.shape_cast %600 : vector<1x16x128xf32> to vector<16x128xf32>
    %602 = vector.broadcast %50 : f32 to vector<16x128xf32>
    %603 = arith.mulf %602, %601 : vector<16x128xf32>
    %604 = arith.addf %584, %603 : vector<16x128xf32>
    %c8_354 = arith.constant 8 : index
    %c1_355 = arith.constant 1 : index
    %c0_356 = arith.constant 0 : index
    %605 = vector.load %arg5[%c8_354, %c1_355, %c0_356] : memref<14x24x128xf32, #tpu.memory_space<vmem>>, vector<1x16x128xf32>
    %606 = vector.shape_cast %605 : vector<1x16x128xf32> to vector<16x128xf32>
    %607 = vector.broadcast %57 : f32 to vector<16x128xf32>
    %608 = arith.mulf %607, %606 : vector<16x128xf32>
    %609 = arith.addf %589, %608 : vector<16x128xf32>
    %c8_357 = arith.constant 8 : index
    %c2_358 = arith.constant 2 : index
    %c0_359 = arith.constant 0 : index
    %610 = vector.load %arg5[%c8_357, %c2_358, %c0_359] : memref<14x24x128xf32, #tpu.memory_space<vmem>>, vector<1x16x128xf32>
    %611 = vector.shape_cast %610 : vector<1x16x128xf32> to vector<16x128xf32>
    %612 = vector.broadcast %64 : f32 to vector<16x128xf32>
    %613 = arith.mulf %612, %611 : vector<16x128xf32>
    %614 = arith.addf %594, %613 : vector<16x128xf32>
    %c8_360 = arith.constant 8 : index
    %c3_361 = arith.constant 3 : index
    %c0_362 = arith.constant 0 : index
    %615 = vector.load %arg5[%c8_360, %c3_361, %c0_362] : memref<14x24x128xf32, #tpu.memory_space<vmem>>, vector<1x16x128xf32>
    %616 = vector.shape_cast %615 : vector<1x16x128xf32> to vector<16x128xf32>
    %617 = vector.broadcast %71 : f32 to vector<16x128xf32>
    %618 = arith.mulf %617, %616 : vector<16x128xf32>
    %619 = arith.addf %599, %618 : vector<16x128xf32>
    %c8_363 = arith.constant 8 : index
    %c4_364 = arith.constant 4 : index
    %c0_365 = arith.constant 0 : index
    %620 = vector.load %arg5[%c8_363, %c4_364, %c0_365] : memref<14x24x128xf32, #tpu.memory_space<vmem>>, vector<1x16x128xf32>
    %621 = vector.shape_cast %620 : vector<1x16x128xf32> to vector<16x128xf32>
    %622 = vector.broadcast %78 : f32 to vector<16x128xf32>
    %623 = arith.mulf %622, %621 : vector<16x128xf32>
    %624 = arith.addf %604, %623 : vector<16x128xf32>
    %c8_366 = arith.constant 8 : index
    %c5_367 = arith.constant 5 : index
    %c0_368 = arith.constant 0 : index
    %625 = vector.load %arg5[%c8_366, %c5_367, %c0_368] : memref<14x24x128xf32, #tpu.memory_space<vmem>>, vector<1x16x128xf32>
    %626 = vector.shape_cast %625 : vector<1x16x128xf32> to vector<16x128xf32>
    %627 = vector.broadcast %85 : f32 to vector<16x128xf32>
    %628 = arith.mulf %627, %626 : vector<16x128xf32>
    %629 = arith.addf %609, %628 : vector<16x128xf32>
    %c8_369 = arith.constant 8 : index
    %c6_370 = arith.constant 6 : index
    %c0_371 = arith.constant 0 : index
    %630 = vector.load %arg5[%c8_369, %c6_370, %c0_371] : memref<14x24x128xf32, #tpu.memory_space<vmem>>, vector<1x16x128xf32>
    %631 = vector.shape_cast %630 : vector<1x16x128xf32> to vector<16x128xf32>
    %632 = vector.broadcast %92 : f32 to vector<16x128xf32>
    %633 = arith.mulf %632, %631 : vector<16x128xf32>
    %634 = arith.addf %614, %633 : vector<16x128xf32>
    %c9_372 = arith.constant 9 : index
    %c0_373 = arith.constant 0 : index
    %c0_374 = arith.constant 0 : index
    %635 = vector.load %arg5[%c9_372, %c0_373, %c0_374] : memref<14x24x128xf32, #tpu.memory_space<vmem>>, vector<1x16x128xf32>
    %636 = vector.shape_cast %635 : vector<1x16x128xf32> to vector<16x128xf32>
    %637 = vector.broadcast %51 : f32 to vector<16x128xf32>
    %638 = arith.mulf %637, %636 : vector<16x128xf32>
    %639 = arith.addf %619, %638 : vector<16x128xf32>
    %c9_375 = arith.constant 9 : index
    %c1_376 = arith.constant 1 : index
    %c0_377 = arith.constant 0 : index
    %640 = vector.load %arg5[%c9_375, %c1_376, %c0_377] : memref<14x24x128xf32, #tpu.memory_space<vmem>>, vector<1x16x128xf32>
    %641 = vector.shape_cast %640 : vector<1x16x128xf32> to vector<16x128xf32>
    %642 = vector.broadcast %58 : f32 to vector<16x128xf32>
    %643 = arith.mulf %642, %641 : vector<16x128xf32>
    %644 = arith.addf %624, %643 : vector<16x128xf32>
    %c9_378 = arith.constant 9 : index
    %c2_379 = arith.constant 2 : index
    %c0_380 = arith.constant 0 : index
    %645 = vector.load %arg5[%c9_378, %c2_379, %c0_380] : memref<14x24x128xf32, #tpu.memory_space<vmem>>, vector<1x16x128xf32>
    %646 = vector.shape_cast %645 : vector<1x16x128xf32> to vector<16x128xf32>
    %647 = vector.broadcast %65 : f32 to vector<16x128xf32>
    %648 = arith.mulf %647, %646 : vector<16x128xf32>
    %649 = arith.addf %629, %648 : vector<16x128xf32>
    %c9_381 = arith.constant 9 : index
    %c3_382 = arith.constant 3 : index
    %c0_383 = arith.constant 0 : index
    %650 = vector.load %arg5[%c9_381, %c3_382, %c0_383] : memref<14x24x128xf32, #tpu.memory_space<vmem>>, vector<1x16x128xf32>
    %651 = vector.shape_cast %650 : vector<1x16x128xf32> to vector<16x128xf32>
    %652 = vector.broadcast %72 : f32 to vector<16x128xf32>
    %653 = arith.mulf %652, %651 : vector<16x128xf32>
    %654 = arith.addf %634, %653 : vector<16x128xf32>
    %c9_384 = arith.constant 9 : index
    %c4_385 = arith.constant 4 : index
    %c0_386 = arith.constant 0 : index
    %655 = vector.load %arg5[%c9_384, %c4_385, %c0_386] : memref<14x24x128xf32, #tpu.memory_space<vmem>>, vector<1x16x128xf32>
    %656 = vector.shape_cast %655 : vector<1x16x128xf32> to vector<16x128xf32>
    %657 = vector.broadcast %79 : f32 to vector<16x128xf32>
    %658 = arith.mulf %657, %656 : vector<16x128xf32>
    %659 = arith.addf %639, %658 : vector<16x128xf32>
    %c9_387 = arith.constant 9 : index
    %c5_388 = arith.constant 5 : index
    %c0_389 = arith.constant 0 : index
    %660 = vector.load %arg5[%c9_387, %c5_388, %c0_389] : memref<14x24x128xf32, #tpu.memory_space<vmem>>, vector<1x16x128xf32>
    %661 = vector.shape_cast %660 : vector<1x16x128xf32> to vector<16x128xf32>
    %662 = vector.broadcast %86 : f32 to vector<16x128xf32>
    %663 = arith.mulf %662, %661 : vector<16x128xf32>
    %664 = arith.addf %644, %663 : vector<16x128xf32>
    %c9_390 = arith.constant 9 : index
    %c6_391 = arith.constant 6 : index
    %c0_392 = arith.constant 0 : index
    %665 = vector.load %arg5[%c9_390, %c6_391, %c0_392] : memref<14x24x128xf32, #tpu.memory_space<vmem>>, vector<1x16x128xf32>
    %666 = vector.shape_cast %665 : vector<1x16x128xf32> to vector<16x128xf32>
    %667 = vector.broadcast %93 : f32 to vector<16x128xf32>
    %668 = arith.mulf %667, %666 : vector<16x128xf32>
    %669 = arith.addf %649, %668 : vector<16x128xf32>
    %c10_393 = arith.constant 10 : index
    %c0_394 = arith.constant 0 : index
    %c0_395 = arith.constant 0 : index
    %670 = vector.load %arg5[%c10_393, %c0_394, %c0_395] : memref<14x24x128xf32, #tpu.memory_space<vmem>>, vector<1x16x128xf32>
    %671 = vector.shape_cast %670 : vector<1x16x128xf32> to vector<16x128xf32>
    %672 = vector.broadcast %52 : f32 to vector<16x128xf32>
    %673 = arith.mulf %672, %671 : vector<16x128xf32>
    %674 = arith.addf %654, %673 : vector<16x128xf32>
    %c10_396 = arith.constant 10 : index
    %c1_397 = arith.constant 1 : index
    %c0_398 = arith.constant 0 : index
    %675 = vector.load %arg5[%c10_396, %c1_397, %c0_398] : memref<14x24x128xf32, #tpu.memory_space<vmem>>, vector<1x16x128xf32>
    %676 = vector.shape_cast %675 : vector<1x16x128xf32> to vector<16x128xf32>
    %677 = vector.broadcast %59 : f32 to vector<16x128xf32>
    %678 = arith.mulf %677, %676 : vector<16x128xf32>
    %679 = arith.addf %659, %678 : vector<16x128xf32>
    %c10_399 = arith.constant 10 : index
    %c2_400 = arith.constant 2 : index
    %c0_401 = arith.constant 0 : index
    %680 = vector.load %arg5[%c10_399, %c2_400, %c0_401] : memref<14x24x128xf32, #tpu.memory_space<vmem>>, vector<1x16x128xf32>
    %681 = vector.shape_cast %680 : vector<1x16x128xf32> to vector<16x128xf32>
    %682 = vector.broadcast %66 : f32 to vector<16x128xf32>
    %683 = arith.mulf %682, %681 : vector<16x128xf32>
    %684 = arith.addf %664, %683 : vector<16x128xf32>
    %c10_402 = arith.constant 10 : index
    %c3_403 = arith.constant 3 : index
    %c0_404 = arith.constant 0 : index
    %685 = vector.load %arg5[%c10_402, %c3_403, %c0_404] : memref<14x24x128xf32, #tpu.memory_space<vmem>>, vector<1x16x128xf32>
    %686 = vector.shape_cast %685 : vector<1x16x128xf32> to vector<16x128xf32>
    %687 = vector.broadcast %73 : f32 to vector<16x128xf32>
    %688 = arith.mulf %687, %686 : vector<16x128xf32>
    %689 = arith.addf %669, %688 : vector<16x128xf32>
    %c10_405 = arith.constant 10 : index
    %c4_406 = arith.constant 4 : index
    %c0_407 = arith.constant 0 : index
    %690 = vector.load %arg5[%c10_405, %c4_406, %c0_407] : memref<14x24x128xf32, #tpu.memory_space<vmem>>, vector<1x16x128xf32>
    %691 = vector.shape_cast %690 : vector<1x16x128xf32> to vector<16x128xf32>
    %692 = vector.broadcast %80 : f32 to vector<16x128xf32>
    %693 = arith.mulf %692, %691 : vector<16x128xf32>
    %694 = arith.addf %674, %693 : vector<16x128xf32>
    %c10_408 = arith.constant 10 : index
    %c5_409 = arith.constant 5 : index
    %c0_410 = arith.constant 0 : index
    %695 = vector.load %arg5[%c10_408, %c5_409, %c0_410] : memref<14x24x128xf32, #tpu.memory_space<vmem>>, vector<1x16x128xf32>
    %696 = vector.shape_cast %695 : vector<1x16x128xf32> to vector<16x128xf32>
    %697 = vector.broadcast %87 : f32 to vector<16x128xf32>
    %698 = arith.mulf %697, %696 : vector<16x128xf32>
    %699 = arith.addf %679, %698 : vector<16x128xf32>
    %c10_411 = arith.constant 10 : index
    %c6_412 = arith.constant 6 : index
    %c0_413 = arith.constant 0 : index
    %700 = vector.load %arg5[%c10_411, %c6_412, %c0_413] : memref<14x24x128xf32, #tpu.memory_space<vmem>>, vector<1x16x128xf32>
    %701 = vector.shape_cast %700 : vector<1x16x128xf32> to vector<16x128xf32>
    %702 = vector.broadcast %94 : f32 to vector<16x128xf32>
    %703 = arith.mulf %702, %701 : vector<16x128xf32>
    %704 = arith.addf %684, %703 : vector<16x128xf32>
    %c11_414 = arith.constant 11 : index
    %c0_415 = arith.constant 0 : index
    %c0_416 = arith.constant 0 : index
    %705 = vector.load %arg5[%c11_414, %c0_415, %c0_416] : memref<14x24x128xf32, #tpu.memory_space<vmem>>, vector<1x16x128xf32>
    %706 = vector.shape_cast %705 : vector<1x16x128xf32> to vector<16x128xf32>
    %707 = vector.broadcast %53 : f32 to vector<16x128xf32>
    %708 = arith.mulf %707, %706 : vector<16x128xf32>
    %709 = arith.addf %689, %708 : vector<16x128xf32>
    %c11_417 = arith.constant 11 : index
    %c1_418 = arith.constant 1 : index
    %c0_419 = arith.constant 0 : index
    %710 = vector.load %arg5[%c11_417, %c1_418, %c0_419] : memref<14x24x128xf32, #tpu.memory_space<vmem>>, vector<1x16x128xf32>
    %711 = vector.shape_cast %710 : vector<1x16x128xf32> to vector<16x128xf32>
    %712 = vector.broadcast %60 : f32 to vector<16x128xf32>
    %713 = arith.mulf %712, %711 : vector<16x128xf32>
    %714 = arith.addf %694, %713 : vector<16x128xf32>
    %c11_420 = arith.constant 11 : index
    %c2_421 = arith.constant 2 : index
    %c0_422 = arith.constant 0 : index
    %715 = vector.load %arg5[%c11_420, %c2_421, %c0_422] : memref<14x24x128xf32, #tpu.memory_space<vmem>>, vector<1x16x128xf32>
    %716 = vector.shape_cast %715 : vector<1x16x128xf32> to vector<16x128xf32>
    %717 = vector.broadcast %67 : f32 to vector<16x128xf32>
    %718 = arith.mulf %717, %716 : vector<16x128xf32>
    %719 = arith.addf %699, %718 : vector<16x128xf32>
    %c11_423 = arith.constant 11 : index
    %c3_424 = arith.constant 3 : index
    %c0_425 = arith.constant 0 : index
    %720 = vector.load %arg5[%c11_423, %c3_424, %c0_425] : memref<14x24x128xf32, #tpu.memory_space<vmem>>, vector<1x16x128xf32>
    %721 = vector.shape_cast %720 : vector<1x16x128xf32> to vector<16x128xf32>
    %722 = vector.broadcast %74 : f32 to vector<16x128xf32>
    %723 = arith.mulf %722, %721 : vector<16x128xf32>
    %724 = arith.addf %704, %723 : vector<16x128xf32>
    %c11_426 = arith.constant 11 : index
    %c4_427 = arith.constant 4 : index
    %c0_428 = arith.constant 0 : index
    %725 = vector.load %arg5[%c11_426, %c4_427, %c0_428] : memref<14x24x128xf32, #tpu.memory_space<vmem>>, vector<1x16x128xf32>
    %726 = vector.shape_cast %725 : vector<1x16x128xf32> to vector<16x128xf32>
    %727 = vector.broadcast %81 : f32 to vector<16x128xf32>
    %728 = arith.mulf %727, %726 : vector<16x128xf32>
    %729 = arith.addf %709, %728 : vector<16x128xf32>
    %c11_429 = arith.constant 11 : index
    %c5_430 = arith.constant 5 : index
    %c0_431 = arith.constant 0 : index
    %730 = vector.load %arg5[%c11_429, %c5_430, %c0_431] : memref<14x24x128xf32, #tpu.memory_space<vmem>>, vector<1x16x128xf32>
    %731 = vector.shape_cast %730 : vector<1x16x128xf32> to vector<16x128xf32>
    %732 = vector.broadcast %88 : f32 to vector<16x128xf32>
    %733 = arith.mulf %732, %731 : vector<16x128xf32>
    %734 = arith.addf %714, %733 : vector<16x128xf32>
    %c11_432 = arith.constant 11 : index
    %c6_433 = arith.constant 6 : index
    %c0_434 = arith.constant 0 : index
    %735 = vector.load %arg5[%c11_432, %c6_433, %c0_434] : memref<14x24x128xf32, #tpu.memory_space<vmem>>, vector<1x16x128xf32>
    %736 = vector.shape_cast %735 : vector<1x16x128xf32> to vector<16x128xf32>
    %737 = vector.broadcast %95 : f32 to vector<16x128xf32>
    %738 = arith.mulf %737, %736 : vector<16x128xf32>
    %739 = arith.addf %719, %738 : vector<16x128xf32>
    %c12_435 = arith.constant 12 : index
    %c0_436 = arith.constant 0 : index
    %c0_437 = arith.constant 0 : index
    %740 = vector.load %arg5[%c12_435, %c0_436, %c0_437] : memref<14x24x128xf32, #tpu.memory_space<vmem>>, vector<1x16x128xf32>
    %741 = vector.shape_cast %740 : vector<1x16x128xf32> to vector<16x128xf32>
    %742 = vector.broadcast %54 : f32 to vector<16x128xf32>
    %743 = arith.mulf %742, %741 : vector<16x128xf32>
    %744 = arith.addf %724, %743 : vector<16x128xf32>
    %c12_438 = arith.constant 12 : index
    %c1_439 = arith.constant 1 : index
    %c0_440 = arith.constant 0 : index
    %745 = vector.load %arg5[%c12_438, %c1_439, %c0_440] : memref<14x24x128xf32, #tpu.memory_space<vmem>>, vector<1x16x128xf32>
    %746 = vector.shape_cast %745 : vector<1x16x128xf32> to vector<16x128xf32>
    %747 = vector.broadcast %61 : f32 to vector<16x128xf32>
    %748 = arith.mulf %747, %746 : vector<16x128xf32>
    %749 = arith.addf %729, %748 : vector<16x128xf32>
    %c12_441 = arith.constant 12 : index
    %c2_442 = arith.constant 2 : index
    %c0_443 = arith.constant 0 : index
    %750 = vector.load %arg5[%c12_441, %c2_442, %c0_443] : memref<14x24x128xf32, #tpu.memory_space<vmem>>, vector<1x16x128xf32>
    %751 = vector.shape_cast %750 : vector<1x16x128xf32> to vector<16x128xf32>
    %752 = vector.broadcast %68 : f32 to vector<16x128xf32>
    %753 = arith.mulf %752, %751 : vector<16x128xf32>
    %754 = arith.addf %734, %753 : vector<16x128xf32>
    %c12_444 = arith.constant 12 : index
    %c3_445 = arith.constant 3 : index
    %c0_446 = arith.constant 0 : index
    %755 = vector.load %arg5[%c12_444, %c3_445, %c0_446] : memref<14x24x128xf32, #tpu.memory_space<vmem>>, vector<1x16x128xf32>
    %756 = vector.shape_cast %755 : vector<1x16x128xf32> to vector<16x128xf32>
    %757 = vector.broadcast %75 : f32 to vector<16x128xf32>
    %758 = arith.mulf %757, %756 : vector<16x128xf32>
    %759 = arith.addf %739, %758 : vector<16x128xf32>
    %c12_447 = arith.constant 12 : index
    %c4_448 = arith.constant 4 : index
    %c0_449 = arith.constant 0 : index
    %760 = vector.load %arg5[%c12_447, %c4_448, %c0_449] : memref<14x24x128xf32, #tpu.memory_space<vmem>>, vector<1x16x128xf32>
    %761 = vector.shape_cast %760 : vector<1x16x128xf32> to vector<16x128xf32>
    %762 = vector.broadcast %82 : f32 to vector<16x128xf32>
    %763 = arith.mulf %762, %761 : vector<16x128xf32>
    %764 = arith.addf %744, %763 : vector<16x128xf32>
    %c12_450 = arith.constant 12 : index
    %c5_451 = arith.constant 5 : index
    %c0_452 = arith.constant 0 : index
    %765 = vector.load %arg5[%c12_450, %c5_451, %c0_452] : memref<14x24x128xf32, #tpu.memory_space<vmem>>, vector<1x16x128xf32>
    %766 = vector.shape_cast %765 : vector<1x16x128xf32> to vector<16x128xf32>
    %767 = vector.broadcast %89 : f32 to vector<16x128xf32>
    %768 = arith.mulf %767, %766 : vector<16x128xf32>
    %769 = arith.addf %749, %768 : vector<16x128xf32>
    %c12_453 = arith.constant 12 : index
    %c6_454 = arith.constant 6 : index
    %c0_455 = arith.constant 0 : index
    %770 = vector.load %arg5[%c12_453, %c6_454, %c0_455] : memref<14x24x128xf32, #tpu.memory_space<vmem>>, vector<1x16x128xf32>
    %771 = vector.shape_cast %770 : vector<1x16x128xf32> to vector<16x128xf32>
    %772 = vector.broadcast %96 : f32 to vector<16x128xf32>
    %773 = arith.mulf %772, %771 : vector<16x128xf32>
    %774 = arith.addf %754, %773 : vector<16x128xf32>
    %c13_456 = arith.constant 13 : index
    %c0_457 = arith.constant 0 : index
    %c0_458 = arith.constant 0 : index
    %775 = vector.load %arg5[%c13_456, %c0_457, %c0_458] : memref<14x24x128xf32, #tpu.memory_space<vmem>>, vector<1x16x128xf32>
    %776 = vector.shape_cast %775 : vector<1x16x128xf32> to vector<16x128xf32>
    %777 = vector.broadcast %55 : f32 to vector<16x128xf32>
    %778 = arith.mulf %777, %776 : vector<16x128xf32>
    %779 = arith.addf %759, %778 : vector<16x128xf32>
    %c13_459 = arith.constant 13 : index
    %c1_460 = arith.constant 1 : index
    %c0_461 = arith.constant 0 : index
    %780 = vector.load %arg5[%c13_459, %c1_460, %c0_461] : memref<14x24x128xf32, #tpu.memory_space<vmem>>, vector<1x16x128xf32>
    %781 = vector.shape_cast %780 : vector<1x16x128xf32> to vector<16x128xf32>
    %782 = vector.broadcast %62 : f32 to vector<16x128xf32>
    %783 = arith.mulf %782, %781 : vector<16x128xf32>
    %784 = arith.addf %764, %783 : vector<16x128xf32>
    %c13_462 = arith.constant 13 : index
    %c2_463 = arith.constant 2 : index
    %c0_464 = arith.constant 0 : index
    %785 = vector.load %arg5[%c13_462, %c2_463, %c0_464] : memref<14x24x128xf32, #tpu.memory_space<vmem>>, vector<1x16x128xf32>
    %786 = vector.shape_cast %785 : vector<1x16x128xf32> to vector<16x128xf32>
    %787 = vector.broadcast %69 : f32 to vector<16x128xf32>
    %788 = arith.mulf %787, %786 : vector<16x128xf32>
    %789 = arith.addf %769, %788 : vector<16x128xf32>
    %c13_465 = arith.constant 13 : index
    %c3_466 = arith.constant 3 : index
    %c0_467 = arith.constant 0 : index
    %790 = vector.load %arg5[%c13_465, %c3_466, %c0_467] : memref<14x24x128xf32, #tpu.memory_space<vmem>>, vector<1x16x128xf32>
    %791 = vector.shape_cast %790 : vector<1x16x128xf32> to vector<16x128xf32>
    %792 = vector.broadcast %76 : f32 to vector<16x128xf32>
    %793 = arith.mulf %792, %791 : vector<16x128xf32>
    %794 = arith.addf %774, %793 : vector<16x128xf32>
    %c13_468 = arith.constant 13 : index
    %c4_469 = arith.constant 4 : index
    %c0_470 = arith.constant 0 : index
    %795 = vector.load %arg5[%c13_468, %c4_469, %c0_470] : memref<14x24x128xf32, #tpu.memory_space<vmem>>, vector<1x16x128xf32>
    %796 = vector.shape_cast %795 : vector<1x16x128xf32> to vector<16x128xf32>
    %797 = vector.broadcast %83 : f32 to vector<16x128xf32>
    %798 = arith.mulf %797, %796 : vector<16x128xf32>
    %799 = arith.addf %779, %798 : vector<16x128xf32>
    %c13_471 = arith.constant 13 : index
    %c5_472 = arith.constant 5 : index
    %c0_473 = arith.constant 0 : index
    %800 = vector.load %arg5[%c13_471, %c5_472, %c0_473] : memref<14x24x128xf32, #tpu.memory_space<vmem>>, vector<1x16x128xf32>
    %801 = vector.shape_cast %800 : vector<1x16x128xf32> to vector<16x128xf32>
    %802 = vector.broadcast %90 : f32 to vector<16x128xf32>
    %803 = arith.mulf %802, %801 : vector<16x128xf32>
    %804 = arith.addf %784, %803 : vector<16x128xf32>
    %c13_474 = arith.constant 13 : index
    %c6_475 = arith.constant 6 : index
    %c0_476 = arith.constant 0 : index
    %805 = vector.load %arg5[%c13_474, %c6_475, %c0_476] : memref<14x24x128xf32, #tpu.memory_space<vmem>>, vector<1x16x128xf32>
    %806 = vector.shape_cast %805 : vector<1x16x128xf32> to vector<16x128xf32>
    %807 = vector.broadcast %97 : f32 to vector<16x128xf32>
    %808 = arith.mulf %807, %806 : vector<16x128xf32>
    %809 = arith.addf %789, %808 : vector<16x128xf32>
    %810 = arith.addf %804, %809 : vector<16x128xf32>
    %811 = arith.addf %794, %799 : vector<16x128xf32>
    %812 = arith.addf %810, %811 : vector<16x128xf32>
    %813 = arith.negf %812 : vector<16x128xf32>
    %814 = math.exp %813 : vector<16x128xf32>
    %cst_477 = arith.constant 1.000000e+00 : f32
    %815 = vector.broadcast %cst_477 : f32 to vector<16x128xf32>
    %816 = arith.addf %815, %814 : vector<16x128xf32>
    %817 = arith.divf %815, %816 : vector<16x128xf32>
    %818 = vector.extract_strided_slice %817 {offsets = [0, 0], sizes = [1, 16], strides = [1, 1]} : vector<16x128xf32> to vector<1x16xf32>
    %c0_478 = arith.constant 0 : index
    %c0_479 = arith.constant 0 : index
    %c0_480 = arith.constant 0 : index
    %819 = vector.load %arg3[%c0_478, %c0_479, %c0_480] : memref<1x1x256xf32, #tpu.memory_space<vmem>>, vector<1x1x16xf32>
    %820 = vector.shape_cast %819 : vector<1x1x16xf32> to vector<1x16xf32>
    %821 = vector.shape_cast %818 : vector<1x16xf32> to vector<1x1x16xf32>
    tpu.vector_store %arg3[%c0_478, %c0_479, %c0_480], %821 {strides = array<i32>} : memref<1x1x256xf32, #tpu.memory_space<vmem>>, vector<1x1x16xf32>,
    %822 = vector.extract_strided_slice %817 {offsets = [1, 0], sizes = [1, 16], strides = [1, 1]} : vector<16x128xf32> to vector<1x16xf32>
    %c0_481 = arith.constant 0 : index
    %c0_482 = arith.constant 0 : index
    %c16_483 = arith.constant 16 : index
    %823 = vector.load %arg3[%c0_481, %c0_482, %c16_483] : memref<1x1x256xf32, #tpu.memory_space<vmem>>, vector<1x1x16xf32>
    %824 = vector.shape_cast %823 : vector<1x1x16xf32> to vector<1x16xf32>
    %825 = vector.shape_cast %822 : vector<1x16xf32> to vector<1x1x16xf32>
    tpu.vector_store %arg3[%c0_481, %c0_482, %c16_483], %825 {strides = array<i32>} : memref<1x1x256xf32, #tpu.memory_space<vmem>>, vector<1x1x16xf32>,
    %826 = vector.extract_strided_slice %817 {offsets = [2, 0], sizes = [1, 16], strides = [1, 1]} : vector<16x128xf32> to vector<1x16xf32>
    %c0_484 = arith.constant 0 : index
    %c0_485 = arith.constant 0 : index
    %c32_486 = arith.constant 32 : index
    %827 = vector.load %arg3[%c0_484, %c0_485, %c32_486] : memref<1x1x256xf32, #tpu.memory_space<vmem>>, vector<1x1x16xf32>
    %828 = vector.shape_cast %827 : vector<1x1x16xf32> to vector<1x16xf32>
    %829 = vector.shape_cast %826 : vector<1x16xf32> to vector<1x1x16xf32>
    tpu.vector_store %arg3[%c0_484, %c0_485, %c32_486], %829 {strides = array<i32>} : memref<1x1x256xf32, #tpu.memory_space<vmem>>, vector<1x1x16xf32>,
    %830 = vector.extract_strided_slice %817 {offsets = [3, 0], sizes = [1, 16], strides = [1, 1]} : vector<16x128xf32> to vector<1x16xf32>
    %c0_487 = arith.constant 0 : index
    %c0_488 = arith.constant 0 : index
    %c48_489 = arith.constant 48 : index
    %831 = vector.load %arg3[%c0_487, %c0_488, %c48_489] : memref<1x1x256xf32, #tpu.memory_space<vmem>>, vector<1x1x16xf32>
    %832 = vector.shape_cast %831 : vector<1x1x16xf32> to vector<1x16xf32>
    %833 = vector.shape_cast %830 : vector<1x16xf32> to vector<1x1x16xf32>
    tpu.vector_store %arg3[%c0_487, %c0_488, %c48_489], %833 {strides = array<i32>} : memref<1x1x256xf32, #tpu.memory_space<vmem>>, vector<1x1x16xf32>,
    %834 = vector.extract_strided_slice %817 {offsets = [4, 0], sizes = [1, 16], strides = [1, 1]} : vector<16x128xf32> to vector<1x16xf32>
    %c0_490 = arith.constant 0 : index
    %c0_491 = arith.constant 0 : index
    %c64_492 = arith.constant 64 : index
    %835 = vector.load %arg3[%c0_490, %c0_491, %c64_492] : memref<1x1x256xf32, #tpu.memory_space<vmem>>, vector<1x1x16xf32>
    %836 = vector.shape_cast %835 : vector<1x1x16xf32> to vector<1x16xf32>
    %837 = vector.shape_cast %834 : vector<1x16xf32> to vector<1x1x16xf32>
    tpu.vector_store %arg3[%c0_490, %c0_491, %c64_492], %837 {strides = array<i32>} : memref<1x1x256xf32, #tpu.memory_space<vmem>>, vector<1x1x16xf32>,
    %838 = vector.extract_strided_slice %817 {offsets = [5, 0], sizes = [1, 16], strides = [1, 1]} : vector<16x128xf32> to vector<1x16xf32>
    %c0_493 = arith.constant 0 : index
    %c0_494 = arith.constant 0 : index
    %c80_495 = arith.constant 80 : index
    %839 = vector.load %arg3[%c0_493, %c0_494, %c80_495] : memref<1x1x256xf32, #tpu.memory_space<vmem>>, vector<1x1x16xf32>
    %840 = vector.shape_cast %839 : vector<1x1x16xf32> to vector<1x16xf32>
    %841 = vector.shape_cast %838 : vector<1x16xf32> to vector<1x1x16xf32>
    tpu.vector_store %arg3[%c0_493, %c0_494, %c80_495], %841 {strides = array<i32>} : memref<1x1x256xf32, #tpu.memory_space<vmem>>, vector<1x1x16xf32>,
    %842 = vector.extract_strided_slice %817 {offsets = [6, 0], sizes = [1, 16], strides = [1, 1]} : vector<16x128xf32> to vector<1x16xf32>
    %c0_496 = arith.constant 0 : index
    %c0_497 = arith.constant 0 : index
    %c96_498 = arith.constant 96 : index
    %843 = vector.load %arg3[%c0_496, %c0_497, %c96_498] : memref<1x1x256xf32, #tpu.memory_space<vmem>>, vector<1x1x16xf32>
    %844 = vector.shape_cast %843 : vector<1x1x16xf32> to vector<1x16xf32>
    %845 = vector.shape_cast %842 : vector<1x16xf32> to vector<1x1x16xf32>
    tpu.vector_store %arg3[%c0_496, %c0_497, %c96_498], %845 {strides = array<i32>} : memref<1x1x256xf32, #tpu.memory_space<vmem>>, vector<1x1x16xf32>,
    %846 = vector.extract_strided_slice %817 {offsets = [7, 0], sizes = [1, 16], strides = [1, 1]} : vector<16x128xf32> to vector<1x16xf32>
    %c0_499 = arith.constant 0 : index
    %c0_500 = arith.constant 0 : index
    %c112 = arith.constant 112 : index
    %847 = vector.load %arg3[%c0_499, %c0_500, %c112] : memref<1x1x256xf32, #tpu.memory_space<vmem>>, vector<1x1x16xf32>
    %848 = vector.shape_cast %847 : vector<1x1x16xf32> to vector<1x16xf32>
    %849 = vector.shape_cast %846 : vector<1x16xf32> to vector<1x1x16xf32>
    tpu.vector_store %arg3[%c0_499, %c0_500, %c112], %849 {strides = array<i32>} : memref<1x1x256xf32, #tpu.memory_space<vmem>>, vector<1x1x16xf32>,
    %850 = vector.extract_strided_slice %817 {offsets = [8, 0], sizes = [1, 16], strides = [1, 1]} : vector<16x128xf32> to vector<1x16xf32>
    %c0_501 = arith.constant 0 : index
    %c0_502 = arith.constant 0 : index
    %c128 = arith.constant 128 : index
    %851 = vector.load %arg3[%c0_501, %c0_502, %c128] : memref<1x1x256xf32, #tpu.memory_space<vmem>>, vector<1x1x16xf32>
    %852 = vector.shape_cast %851 : vector<1x1x16xf32> to vector<1x16xf32>
    %853 = vector.shape_cast %850 : vector<1x16xf32> to vector<1x1x16xf32>
    tpu.vector_store %arg3[%c0_501, %c0_502, %c128], %853 {strides = array<i32>} : memref<1x1x256xf32, #tpu.memory_space<vmem>>, vector<1x1x16xf32>,
    %854 = vector.extract_strided_slice %817 {offsets = [9, 0], sizes = [1, 16], strides = [1, 1]} : vector<16x128xf32> to vector<1x16xf32>
    %c0_503 = arith.constant 0 : index
    %c0_504 = arith.constant 0 : index
    %c144 = arith.constant 144 : index
    %855 = vector.load %arg3[%c0_503, %c0_504, %c144] : memref<1x1x256xf32, #tpu.memory_space<vmem>>, vector<1x1x16xf32>
    %856 = vector.shape_cast %855 : vector<1x1x16xf32> to vector<1x16xf32>
    %857 = vector.shape_cast %854 : vector<1x16xf32> to vector<1x1x16xf32>
    tpu.vector_store %arg3[%c0_503, %c0_504, %c144], %857 {strides = array<i32>} : memref<1x1x256xf32, #tpu.memory_space<vmem>>, vector<1x1x16xf32>,
    %858 = vector.extract_strided_slice %817 {offsets = [10, 0], sizes = [1, 16], strides = [1, 1]} : vector<16x128xf32> to vector<1x16xf32>
    %c0_505 = arith.constant 0 : index
    %c0_506 = arith.constant 0 : index
    %c160 = arith.constant 160 : index
    %859 = vector.load %arg3[%c0_505, %c0_506, %c160] : memref<1x1x256xf32, #tpu.memory_space<vmem>>, vector<1x1x16xf32>
    %860 = vector.shape_cast %859 : vector<1x1x16xf32> to vector<1x16xf32>
    %861 = vector.shape_cast %858 : vector<1x16xf32> to vector<1x1x16xf32>
    tpu.vector_store %arg3[%c0_505, %c0_506, %c160], %861 {strides = array<i32>} : memref<1x1x256xf32, #tpu.memory_space<vmem>>, vector<1x1x16xf32>,
    %862 = vector.extract_strided_slice %817 {offsets = [11, 0], sizes = [1, 16], strides = [1, 1]} : vector<16x128xf32> to vector<1x16xf32>
    %c0_507 = arith.constant 0 : index
    %c0_508 = arith.constant 0 : index
    %c176 = arith.constant 176 : index
    %863 = vector.load %arg3[%c0_507, %c0_508, %c176] : memref<1x1x256xf32, #tpu.memory_space<vmem>>, vector<1x1x16xf32>
    %864 = vector.shape_cast %863 : vector<1x1x16xf32> to vector<1x16xf32>
    %865 = vector.shape_cast %862 : vector<1x16xf32> to vector<1x1x16xf32>
    tpu.vector_store %arg3[%c0_507, %c0_508, %c176], %865 {strides = array<i32>} : memref<1x1x256xf32, #tpu.memory_space<vmem>>, vector<1x1x16xf32>,
    %866 = vector.extract_strided_slice %817 {offsets = [12, 0], sizes = [1, 16], strides = [1, 1]} : vector<16x128xf32> to vector<1x16xf32>
    %c0_509 = arith.constant 0 : index
    %c0_510 = arith.constant 0 : index
    %c192 = arith.constant 192 : index
    %867 = vector.load %arg3[%c0_509, %c0_510, %c192] : memref<1x1x256xf32, #tpu.memory_space<vmem>>, vector<1x1x16xf32>
    %868 = vector.shape_cast %867 : vector<1x1x16xf32> to vector<1x16xf32>
    %869 = vector.shape_cast %866 : vector<1x16xf32> to vector<1x1x16xf32>
    tpu.vector_store %arg3[%c0_509, %c0_510, %c192], %869 {strides = array<i32>} : memref<1x1x256xf32, #tpu.memory_space<vmem>>, vector<1x1x16xf32>,
    %870 = vector.extract_strided_slice %817 {offsets = [13, 0], sizes = [1, 16], strides = [1, 1]} : vector<16x128xf32> to vector<1x16xf32>
    %c0_511 = arith.constant 0 : index
    %c0_512 = arith.constant 0 : index
    %c208 = arith.constant 208 : index
    %871 = vector.load %arg3[%c0_511, %c0_512, %c208] : memref<1x1x256xf32, #tpu.memory_space<vmem>>, vector<1x1x16xf32>
    %872 = vector.shape_cast %871 : vector<1x1x16xf32> to vector<1x16xf32>
    %873 = vector.shape_cast %870 : vector<1x16xf32> to vector<1x1x16xf32>
    tpu.vector_store %arg3[%c0_511, %c0_512, %c208], %873 {strides = array<i32>} : memref<1x1x256xf32, #tpu.memory_space<vmem>>, vector<1x1x16xf32>,
    %874 = vector.extract_strided_slice %817 {offsets = [14, 0], sizes = [1, 16], strides = [1, 1]} : vector<16x128xf32> to vector<1x16xf32>
    %c0_513 = arith.constant 0 : index
    %c0_514 = arith.constant 0 : index
    %c224 = arith.constant 224 : index
    %875 = vector.load %arg3[%c0_513, %c0_514, %c224] : memref<1x1x256xf32, #tpu.memory_space<vmem>>, vector<1x1x16xf32>
    %876 = vector.shape_cast %875 : vector<1x1x16xf32> to vector<1x16xf32>
    %877 = vector.shape_cast %874 : vector<1x16xf32> to vector<1x1x16xf32>
    tpu.vector_store %arg3[%c0_513, %c0_514, %c224], %877 {strides = array<i32>} : memref<1x1x256xf32, #tpu.memory_space<vmem>>, vector<1x1x16xf32>,
    %878 = vector.extract_strided_slice %817 {offsets = [15, 0], sizes = [1, 16], strides = [1, 1]} : vector<16x128xf32> to vector<1x16xf32>
    %c0_515 = arith.constant 0 : index
    %c0_516 = arith.constant 0 : index
    %c240 = arith.constant 240 : index
    %879 = vector.load %arg3[%c0_515, %c0_516, %c240] : memref<1x1x256xf32, #tpu.memory_space<vmem>>, vector<1x1x16xf32>
    %880 = vector.shape_cast %879 : vector<1x1x16xf32> to vector<1x16xf32>
    %881 = vector.shape_cast %878 : vector<1x16xf32> to vector<1x1x16xf32>
    tpu.vector_store %arg3[%c0_515, %c0_516, %c240], %881 {strides = array<i32>} : memref<1x1x256xf32, #tpu.memory_space<vmem>>, vector<1x1x16xf32>,
    return
  }
  func.func @transform_0(%arg0: i32) -> i32 {
    %c0_i32 = arith.constant 0 : i32
    %c0_i32_0 = arith.constant 0 : i32
    return %c0_i32 : i32
  }
  func.func @transform_1(%arg0: i32) -> (i32, i32, i32) {
    %c0_i32 = arith.constant 0 : i32
    %c0_i32_0 = arith.constant 0 : i32
    %c0_i32_1 = arith.constant 0 : i32
    return %arg0, %c0_i32, %c0_i32_0 : i32, i32, i32
  }
  func.func @transform_2(%arg0: i32) -> (i32, i32, i32) {
    %c0_i32 = arith.constant 0 : i32
    %c0_i32_0 = arith.constant 0 : i32
    %c0_i32_1 = arith.constant 0 : i32
    return %arg0, %c0_i32, %c0_i32_0 : i32, i32, i32
  }
}

</mosaic_0001>

<bundles_post_ra>
// kernel: tpu_custom_call.1
= control target key start
LH: loop header
LB: loop body
LE: loop exit
PB: predicated region body
PF: predicated region fallthrough
CT: control target
= control target key end

     0   :  { %s3210_s0 = inlined_call_operand.hbm [shape: f32[98], index: 0, kind: input, shape index: {}]   ;;  %s3211_s1 = inlined_call_operand.hbm [shape: f32[2,4,256], index: 1, kind: input, shape index: {}]   ;;  %s3212_s2 = inlined_call_operand.hbm [shape: f32[2,1,256], index: 2, kind: output, shape index: {}]  }
   0x1   :  { %3361 = sst [smem:[#allocation126_spill]] %s3210_s0 }
   0x2   :  { %3362 = sst [smem:[#allocation127_spill]] %s3211_s1 }
   0x3   :  { %3363 = sst [smem:[#allocation128_spill]] %s3212_s2 }
   0x4   :  { %7 = vsyncpa [#allocation7], 0 }
   0x5   :  { %8 = vsyncpa [#allocation5], 0 }
   0x6   :  { %10 = vsyncpa [#allocation5 + $0x1], 0 }
   0x7   :  { %11 = vsyncpa [#allocation6], 0 }
   0x8   :  { %13 = vsyncpa [#allocation6 + $0x1], 0  ;;  %s1893_s9 = smov 0   ;;  %s1895_s10 = smov 0  }
   0x9   :  { %s1897_s11 = smov 0   ;;  %s1899_s12 = smov 0  }
   0xa LB: > { %3364 = sst [smem:[#allocation13_spill]] %s1846_s9  ;;  %s1914_s13 = sadd.s32 4294967295, %s1858_s12   ;;  %s1858_s12 = sphi %s1899_s12, %s3827_s12   ;;  %s1854_s11 = sphi %s1897_s11, %s3830_s11   ;;  %s1850_s10 = sphi %s1895_s10, %s3829_s10   ;;  %s1846_s9 = sphi %s1893_s9, %s3828_s9  }
   0xb   : > { %3365 = sst [smem:[#allocation14_spill]] %s1850_s10  ;;  %s1553_s14 = sadd.s32 4294967294, %s1858_s12  }
   0xc   : > { %3366 = sst [smem:[#allocation15_spill]] %s1854_s11  ;;  %p60_p0 = scmp.ne.s32.totalorder %s1850_s10, %s1846_s9 }
   0xd   : > { %3367 = sst [smem:[#allocation16_spill]] %s1858_s12  ;;  %p3213_p1 = scmp.eq.s32.totalorder %s1914_s13, 0 }
   0xe   : > { %3368 = sst [smem:[#allocation17_spill]] %s1914_s13  ;;  %p84_p2 = scmp.eq.s32.totalorder %s1914_s13, 1 }
   0xf   : > { %p90_p3 = scmp.eq.s32.totalorder %s1553_s14, 1  ;;  %p1923_p4 = por %p3213_p1, %p60_p0 }
  0x10   : > { %p1554_p5 = scmp.ge.s32.totalorder %s1858_s12, 1  ;;  %p97_p7 = scmp.lt.s32.totalorder %s1858_s12, 3 }
  0x11   : > { %s3369_s15 = scalar_select %p1923_p4, 1, 0 }
  0x12   : > { %p1928_p6 = por %p90_p3, %p60_p0  ;;  %p1933_p8 = pnand %p1554_p5, %p97_p7 }
  0x13   : > { %s1939_s18 = sadd.s32 1, %s1858_s12   ;;  %s47_s20 = sadd.s32 1, %s1854_s11 }
  0x14   : > { %s3370_s16 = scalar_select %p1928_p6, 1, 0 }
  0x15   : > { %s3372_s17 = scalar_select %p1933_p8, 1, 0 }
  0x16   : > { %3371 = sst [smem:[#allocation18_spill]] %s3370_s16  ;;  %p1678_p10 = pneg %p1933_p8 }
  0x17   : > { %3373 = sst [smem:[#allocation19_spill]] %s1939_s18  ;;  %s44_s19 = ssub.s32 %s1858_s12, %s1939_s18 }
  0x18   : > { %p1679_p11 = pnand %p1678_p10, %p3213_p1  ;;  %p45_p12 = scmp.eq.s32.totalorder %s44_s19, 0 }
  0x19   : > { %p54_p13 = scmp.ne.s32.totalorder %s1854_s11, %s1850_s10  ;;  %p55_p0 = scmp.eq.s32.totalorder %s1858_s12, 0 }
  0x1a   : > { %p1691_p3 = scmp.lt.s32.totalorder %s1858_s12, 2  ;;  %s1860_s21 = smov [#allocation4]  }
  0x1b   : > { %s3374_s0 = sld [smem:[#allocation126_spill]]  ;;  %p56_p5 = por %p55_p0, %p54_p13 }
  0x1c   : > { %s1956_s24 = scalar_select %p45_p12, %s1854_s11, %s47_s20  }
  0x1d   : > { %p1960_p7 = por %p84_p2, %p54_p13  ;;  %s119_s26 = sand.u32 1, %s1854_s11  }
  0x1e   : > { %3375 = sst [smem:[#allocation20_spill]] %s1956_s24  ;;  %s1668_s27 = sshll.u32 %s1858_s12, 7 }
  0x1f   : > { %s3376_s25 = scalar_select %p1960_p7, 1, 0 }
  0x20   : > { %s1557_s28 = sshll.u32 %s119_s26, 3  ;;  %s3378_s1 = sld [smem:[#allocation127_spill]] }
  0x21   : > { %1681 = dma.hbm_to_smem (!%p1679_p11), %s3374_s0, 16, %s1860_s21, [#allocation7]  }
  0x22   : > { %3377 = sst [smem:[#allocation21_spill]] %s3376_s25  ;;  %s123_s4 = scalar_lea.vmem [#allocation8], %s1557_s28 }
  0x23   : > { %s131_s5 = sshll.u32 %s123_s4, 4  ;;  %p1971_p10 = pnand %p1691_p3, %p56_p5  ;;  %s132_s5 = int_to_ptr.vmem [resolvable:$true] %s131_s5 }
  0x24   : > { %s120_s7 = scalar_lea.sflag [#allocation5], %s119_s26 }
  0x25   : > { %p1764_p11 = pneg %p1971_p10 }
  0x26   : > { %s1969_s3 = scalar_lea.hbm %s3378_s1, %s1668_s27  ;;  %s1767_s20 = scalar_lea.hbm %s3378_s1, 256 }
  0x27   : > { %s1762_s8 = scalar_lea.hbm %s1969_s3, 128  ;;  %p1768_p0 = scmp.lt.s32.totalorder %s1969_s3, %s3378_s1 }
  0x28   : > { %p1763_p2 = scmp.ne.s32.totalorder %s1969_s3, %s1762_s8  ;;  %p1769_p3 = scmp.lt.s32.totalorder %s1767_s20, %s1762_s8 }
  0x2a   : > { %p1765_p12 = pnand %p1764_p11, %p1763_p2  ;;  %p1770_p5 = por %p1769_p3, %p1768_p0 }
  0x2c   : > { %p1766_p13 = pneg %p1765_p12 }
  0x2e   : > { %p1771_p9 = pnand %p1770_p5, %p1766_p13 }
  0x30   : > { %1774 = shalt.err (!%p1771_p9)
}
  0x31   : > { %s1775_s23 = scalar_lea.vmem %s132_s5, 128  ;;  %s1861_s26 = smov [#allocation8]  }
  0x32   : > { %p1776_p1 = scmp.ne.s32.totalorder %s132_s5, %s1775_s23  ;;  %s1780_s27 = sshll.u32 %s1861_s26, 4  ;;  %s1781_s27 = int_to_ptr.vmem [resolvable:$false] %s1780_s27 }
  0x33   : > { %s1782_s28 = scalar_lea.vmem %s1781_s27, 256  ;;  %p1783_p2 = scmp.lt.s32.totalorder %s132_s5, %s1781_s27 }
  0x34   : > { %p1778_p6 = pnand %p1776_p1, %p1764_p11  ;;  %p1784_p12 = scmp.lt.s32.totalorder %s1782_s28, %s1775_s23 }
  0x36   : > { %p1779_p7 = pneg %p1778_p6  ;;  %p1785_p4 = por %p1784_p12, %p1783_p2 }
  0x38   : > { %p1786_p8 = pnand %p1785_p4, %p1779_p7 }
  0x3a   : > { %1789 = shalt.err (!%p1786_p8)
}
  0x3b   : > { %1685 = dma.hbm_to_vmem [thread:$0]  (!%p1971_p10), %s1969_s3, 128, %s132_s5, %s120_s7  }
  0x3c   : > { %p3380_p13 = scmp.ne.s32.totalorder %s3372_s17, 0 }
  0x3e   : > { %140 = sbr.rel (%p3380_p13) target bundleno = 709 (0x2c5), region = 28 }
  0x43   : > { %p3381_p9 = scmp.eq.s32.totalorder %s1914_s13, 0 }
  0x45   : > { %1833 = dma.done.wait (%p3381_p9), [#allocation7], 16   ;;  %p3382_p1 = pmov %p3381_p9 }
  0x46   : > { %s1996_s29 = sand.u32 1, %s1850_s10   ;;  %p3384_p4 = scmp.ne.s32.totalorder %s3369_s15, 0 }
  0x47   : > { %1835 = vsyncadd (%p3382_p1), [#allocation7], 4294967280  ;;  %3383 = sst [smem:[#allocation22_spill]] %s1996_s29  ;;  %s1562_s30 = sshll.u32 %s1996_s29, 3 }
  0x48   : > { %s147_s4 = scalar_lea.sflag [#allocation5], %s1996_s29  ;;  %s150_s6 = scalar_lea.vmem [#allocation8], %s1562_s30 }
  0x49   : > { %1837 = dma.done.wait (%p3384_p4), %s147_s4, 128  }
  0x4a   : > { %1839 = vsyncadd (%p3384_p4), %s147_s4, 4294967168 }
  0x4b   : > { %155 = sfence }
  0x4c   : > { %v280_v0 = vld [vmem:[%s150_s6] sm:$0xff]  ;;  %vm284_vm0 = vcmask 1043456   ;;  %vm272_vm1 = vcmask 1047680   ;;  %v1862_v6 = vmov 0.0   ;;  %vm315_vm2 = vcmask 122880   ;;  %s3221_s15 = smov 80  }
  0x4d   : > { %v285_v1 = vsel %vm284_vm0, %v280_v0, 0.0  ;;  %v282_v2 = vcombine.high %v280_v0, %v280_v0  ;;  %v299_v3 = vsel %vm284_vm0, %v280_v0, -inf  ;;  %270 = vst [vmem:[#allocation2] sm:$0x7] %v1862_v6  ;;  %271 = vst [vmem:[#allocation2 + $0x13] sm:$0x7] %v1862_v6 }
  0x4e   : > { %v286_v4 = vrot.slane %v285_v1, 4  ;;  %v300_v5 = vrot.slane %v299_v3, 4  ;;  %276 = vst [vmem:[#allocation2 + $0x18] sm:$0x7] %v1862_v6  ;;  %277 = vst [vmem:[#allocation2 + $0x2b] sm:$0x7] %v1862_v6 }
  0x4f   : > { %v292_v7 = vsel %vm284_vm0, %v282_v2, 0.0  ;;  %v306_v8 = vsel %vm284_vm0, %v282_v2, -inf  ;;  %273 = vst.msk [vmem:[#allocation2 + $0x3] sm:$0xff] %vm272_vm1, %v1862_v6  ;;  %274 = vst.msk [vmem:[#allocation2 + $0xb] sm:$0xff] %vm272_vm1, %v1862_v6  ;;  %s3217_s17 = smov 112   ;;  %s3225_s3 = smov 64  }
  0x50   : > { %278 = vst.msk [vmem:[#allocation2 + $0x1b] sm:$0xff] %vm272_vm1, %v1862_v6  ;;  %279 = vst.msk [vmem:[#allocation2 + $0x23] sm:$0xff] %vm272_vm1, %v1862_v6  ;;  %v287_v9 = vadd.f32 %v286_v4, %v285_v1  ;;  %v293_v10 = vrot.slane %v292_v7, 4  ;;  %v301_v11 = vmax.f32 %v299_v3, %v300_v5  ;;  %v307_v12 = vrot.slane %v306_v8, 4  ;;  %s3219_s5 = smov 96   ;;  %s3227_s7 = smov 32  }
  0x51   : > { %s3223_s8 = smov 48   ;;  %s3229_s14 = smov 16  }
  0x52   : > { %v288_v13 = vrot.slane %v287_v9, 2  ;;  %v294_v14 = vadd.f32 %v293_v10, %v292_v7  ;;  %v302_v15 = vrot.slane %v301_v11, 2  ;;  %v308_v16 = vmax.f32 %v306_v8, %v307_v12  ;;  %s1870_s19 = smov 2   ;;  %s1871_s20 = smov 3  }
  0x53   : > { %s3231_s21 = smov 127   ;;  %s1873_s22 = smov 1  }
  0x54   : > { %v289_v17 = vadd.f32 %v288_v13, %v287_v9  ;;  %v295_v18 = vrot.slane %v294_v14, 2  ;;  %v303_v19 = vmax.f32 %v301_v11, %v302_v15  ;;  %v309_v20 = vrot.slane %v308_v16, 2  ;;  %s3237_s23 = smov 125   ;;  %s3233_s26 = smov 126  }
  0x55   : > { %s2111_s27 = sld [smem:[#allocation4 + $0x3]]  ;;  %s3388_s1 = smov 127  }
  0x56   : > { %v290_v21 = vrot.slane %v289_v17, 1  ;;  %v296_v22 = vadd.f32 %v295_v18, %v294_v14  ;;  %v304_v23 = vrot.slane %v303_v19, 1  ;;  %v310_v24 = vmax.f32 %v308_v16, %v309_v20  ;;  %s2117_s28 = sld [smem:[#allocation4 + $0xa]]  ;;  %s3397_s2 = smov 126  }
  0x57   : > { %s2119_s30 = sld [smem:[#allocation4 + $0x11]] }
  0x58   : > { %v291_v25 = vadd.f32 %v290_v21, %v289_v17  ;;  %v297_v26 = vrot.slane %v296_v22, 1  ;;  %v305_v27 = vmax.f32 %v303_v19, %v304_v23  ;;  %v311_v28 = vrot.slane %v310_v24, 1  ;;  %s2121_s4 = sld [smem:[#allocation4 + $0x18]] }
  0x59   : > { %s2123_s6 = sld [smem:[#allocation4 + $0x1f]] }
  0x5a   : > { %v313_v29 = vmul.f32 0.25, %v291_v25  ;;  %v298_v30 = vadd.f32 %v297_v26, %v296_v22  ;;  %v312_v31 = vmax.f32 %v310_v24, %v311_v28  ;;  %376 = vst.msk [vmem:[#allocation2 + $0x1b] sm:$0x1] %vm315_vm2, %v305_v27  ;;  %s2157_s0 = sld [smem:[#allocation4 + $0x31]] }
  0x5b   : > { %s2165_s24 = sld [smem:[#allocation4]]  ;;  %v718_v3 = vstv %s2111_s27 }
  0x5c   : > { %326 = vrot.lane.b32.xlu1 %v313_v29, %s3221_s15  ;;  %318 = vrot.lane.b32.xlu0 %v313_v29, %s3217_s17  ;;  %v314_v32 = vmul.f32 0.25, %v298_v30  ;;  %316 = vst.msk [vmem:[#allocation2 + $0x3] sm:$0x1] %vm315_vm2, %v313_v29  ;;  %406 = vst.msk [vmem:[#allocation2 + $0x23] sm:$0x1] %vm315_vm2, %v312_v31  ;;  %s2167_s11 = sld [smem:[#allocation4 + $0x4]]  ;;  %v725_v4 = vstv %s2117_s28 }
  0x5d   : > { %s2169_s10 = sld [smem:[#allocation4 + $0x2]]  ;;  %v732_v5 = vstv %s2119_s30 }
  0x5e   : > { %346 = vst.msk [vmem:[#allocation2 + $0xb] sm:$0x1] %vm315_vm2, %v314_v32  ;;  %s2175_s18 = sld [smem:[#allocation4 + $0x5]]  ;;  %v739_v6 = vstv %s2121_s4 }
  0x5f   : > { %s2177_s12 = sld [smem:[#allocation4 + $0x38]]  ;;  %v746_v7 = vstv %s2123_s6 }
  0x60   : > { %330 = vrot.lane.b32.xlu1 %v313_v29, %s3225_s3  ;;  %322 = vrot.lane.b32.xlu0 %v313_v29, %s3219_s5  ;;  %3386 = sst [smem:[#allocation24_spill]] %s2157_s0  ;;  %v914_v24 = vstv %s2157_s0 }
  0x61   : > { %3389 = sst [smem:[#allocation26_spill]] %s2165_s24 }
  0x62   : > { %3390 = sst [smem:[#allocation27_spill]] %s2167_s11 }
  0x63   : > { %3391 = sst [smem:[#allocation28_spill]] %s2169_s10 }
  0x64   : > { %338 = vrot.lane.b32.xlu1 %v313_v29, %s3227_s7  ;;  %334 = vrot.lane.b32.xlu0 %v313_v29, %s3223_s8  ;;  %3393 = sst [smem:[#allocation30_spill]] %s2175_s18  ;;  %s3402_s18 = smov 125  }
  0x65   : > { %3394 = sst [smem:[#allocation31_spill]] %s2177_s12 }
  0x66   : > { %s2179_s16 = sld [smem:[#allocation4 + $0x3f]] }
  0x67   : > { %s2181_s9 = sld [smem:[#allocation4 + $0x46]] }
  0x68   : > { %342 = vrot.lane.b32.xlu0 %v313_v29, %s3229_s14  ;;  %348 = vrot.lane.b32.xlu1 %v314_v32, %s3217_s17  ;;  %s2187_s25 = sld [smem:[#allocation4 + $0x4d]] }
  0x69   : > { %s2189_s13 = sld [smem:[#allocation4 + $0x54]] }
  0x6a   : > { %s2191_s29 = sld [smem:[#allocation4 + $0x5b]] }
  0x6b   : > { %s2203_s12 = sld [smem:[#allocation4 + $0x1c]] }
  0x6c   : > { %352 = vrot.lane.b32.xlu0 %v314_v32, %s3219_s5  ;;  %356 = vrot.lane.b32.xlu1 %v314_v32, %s3221_s15  ;;  %3395 = sst [smem:[#allocation32_spill]] %s2179_s16 }
  0x6d   : > { %3396 = sst [smem:[#allocation33_spill]] %s2181_s9 }
  0x6e   : > { %3398 = sst [smem:[#allocation34_spill]] %s2187_s25 }
  0x6f   : > { %3399 = sst [smem:[#allocation35_spill]] %s2189_s13 }
  0x70   : > { %360 = vrot.lane.b32.xlu0 %v314_v32, %s3225_s3  ;;  %364 = vrot.lane.b32.xlu1 %v314_v32, %s3223_s8  ;;  %3400 = sst [smem:[#allocation36_spill]] %s2191_s29 }
  0x71   : > { %s2199_s9 = sld [smem:[#allocation4 + $0xe]] }
  0x72   : > { %s2201_s16 = sld [smem:[#allocation4 + $0x15]] }
  0x73   : > { %3405 = sst [smem:[#allocation40_spill]] %s2203_s12 }
  0x74   : > { %368 = vrot.lane.b32.xlu0 %v314_v32, %s3227_s7  ;;  %372 = vrot.lane.b32.xlu1 %v314_v32, %s3229_s14  ;;  %s2209_s29 = sld [smem:[#allocation4 + $0x2a]]  ;;  %v571_v32 = vstv %s2165_s24 }
  0x75   : > { %s2213_s13 = sld [smem:[#allocation4 + $0x10]] }
  0x76   : > { %s2215_s25 = sld [smem:[#allocation4 + $0x17]] }
  0x77   : > { %3403 = sst [smem:[#allocation38_spill]] %s2199_s9 }
  0x78   : > { %378 = vrot.lane.b32.xlu0 %v305_v27, %s3217_s17  ;;  %382 = vrot.lane.b32.xlu1 %v305_v27, %s3219_s5  ;;  %3404 = sst [smem:[#allocation39_spill]] %s2201_s16 }
  0x79   : > { %s2219_s16 = sld [smem:[#allocation4 + $0x1e]] }
  0x7a   : > { %3407 = sst [smem:[#allocation42_spill]] %s2209_s29 }
  0x7b   : > { %3409 = sst [smem:[#allocation44_spill]] %s2213_s13 }
  0x7c   : > { %386 = vrot.lane.b32.xlu0 %v305_v27, %s3221_s15  ;;  %390 = vrot.lane.b32.xlu1 %v305_v27, %s3225_s3  ;;  %3410 = sst [smem:[#allocation45_spill]] %s2215_s25 }
  0x7d   : > { %s2221_s12 = sld [smem:[#allocation4 + $0x25]] }
  0x7e   : > { %s2225_s9 = sld [smem:[#allocation4 + $0x8]] }
  0x7f   : > { %3411 = sst [smem:[#allocation46_spill]] %s2219_s16 }
  0x80   : > { %394 = vrot.lane.b32.xlu0 %v305_v27, %s3223_s8  ;;  %398 = vrot.lane.b32.xlu1 %v305_v27, %s3227_s7  ;;  %s2229_s29 = sld [smem:[#allocation4 + $0x16]] }
  0x81   : > { %s2233_s13 = sld [smem:[#allocation4 + $0x24]] }
  0x82   : > { %s2235_s25 = sld [smem:[#allocation4 + $0x2b]] }
  0x83   : > { %3412 = sst [smem:[#allocation47_spill]] %s2221_s12 }
  0x84   : > { %402 = vrot.lane.b32.xlu0 %v305_v27, %s3229_s14  ;;  %408 = vrot.lane.b32.xlu1 %v312_v31, %s3217_s17  ;;  %s2131_s17 = sld [smem:[#allocation4 + $0x2d]] }
  0x85   : > { %3414 = sst [smem:[#allocation49_spill]] %s2225_s9 }
  0x86   : > { %3416 = sst [smem:[#allocation51_spill]] %s2229_s29 }
  0x87   : > { %3418 = sst [smem:[#allocation53_spill]] %s2233_s13 }
  0x88   : > { %412 = vrot.lane.b32.xlu0 %v312_v31, %s3219_s5  ;;  %416 = vrot.lane.b32.xlu1 %v312_v31, %s3221_s15  ;;  %s2133_s5 = sld [smem:[#allocation4 + $0x34]] }
  0x89   : > { %s2141_s15 = sld [smem:[#allocation4 + $0x42]] }
  0x8a   : > { %3419 = sst [smem:[#allocation54_spill]] %s2235_s25  ;;  %v760_v9 = vstv %s2131_s17 }
  0x8b   : > { %s2241_s16 = sld [smem:[#allocation4 + $0x47]] }
  0x8c   : > { %420 = vrot.lane.b32.xlu0 %v312_v31, %s3225_s3  ;;  %424 = vrot.lane.b32.xlu1 %v312_v31, %s3223_s8  ;;  %s2143_s8 = sld [smem:[#allocation4 + $0x49]] }
  0x8d   : > { %s2145_s3 = sld [smem:[#allocation4 + $0x50]] }
  0x8e   : > { %s2243_s12 = sld [smem:[#allocation4 + $0x4e]]  ;;  %v1061_v12 = vstv %s2133_s5 }
  0x8f   : > { %s2247_s9 = sld [smem:[#allocation4 + $0x5c]]  ;;  %v1075_v14 = vstv %s2141_s15 }
  0x90   : > { %428 = vrot.lane.b32.xlu0 %v312_v31, %s3227_s7  ;;  %432 = vrot.lane.b32.xlu1 %v312_v31, %s3229_s14  ;;  %s2147_s7 = sld [smem:[#allocation4 + $0x57]] }
  0x91   : > { %s2153_s14 = sld [smem:[#allocation4 + $0x5e]] }
  0x92   : > { %s2251_s29 = sld [smem:[#allocation4 + $0x13]]  ;;  %v1082_v15 = vstv %s2143_s8 }
  0x93   : > { %s2255_s13 = sld [smem:[#allocation4 + $0x21]]  ;;  %v1089_v20 = vstv %s2145_s3 }
  0x94   : > { %3422 = sst [smem:[#allocation57_spill]] %s2243_s12 }
  0x95   : > { %3424 = sst [smem:[#allocation59_spill]] %s2247_s9 }
  0x96   : > { %s2257_s25 = sld [smem:[#allocation4 + $0x28]]  ;;  %v1096_v21 = vstv %s2147_s7 }
  0x97   : > { %s2263_s12 = sld [smem:[#allocation4 + $0x12]]  ;;  %v1103_v22 = vstv %s2153_s14 }
  0x98   : > { %3426 = sst [smem:[#allocation61_spill]] %s2251_s29 }
  0x99   : > { %3428 = sst [smem:[#allocation63_spill]] %s2255_s13 }
  0x9a   : > { %s2269_s29 = sld [smem:[#allocation4 + $0x27]] }
  0x9b   : > { %s2283_s13 = sld [smem:[#allocation4 + $0x22]] }
  0x9c   : > { %3429 = sst [smem:[#allocation64_spill]] %s2257_s25 }
  0x9d   : > { %3432 = sst [smem:[#allocation67_spill]] %s2263_s12 }
  0x9e   : > { %s2273_s25 = sld [smem:[#allocation4 + $0x33]] }
  0x9f   : > { %s2279_s12 = sld [smem:[#allocation4 + $0x14]] }
  0xa0   : > { %3435 = sst [smem:[#allocation70_spill]] %s2269_s29 }
  0xa1   : > { %3442 = sst [smem:[#allocation77_spill]] %s2283_s13 }
  0xa2   : > { %s2287_s29 = sld [smem:[#allocation4 + $0x30]] }
  0xa3   : > { %s2313_s17 = sld [smem:[#allocation4 + $0x5d]] }
  0xa4   : > { %3437 = sst [smem:[#allocation72_spill]] %s2273_s25 }
  0xa5   : > { %3440 = sst [smem:[#allocation75_spill]] %s2279_s12 }
  0xa6   : > { %s2291_s25 = sld [smem:[#allocation4 + $0x41]] }
  0xa7   : > { %s2296_s12 = sld [smem:[#allocation4 + $0x48]] }
  0xa8   : > { %3444 = sst [smem:[#allocation79_spill]] %s2287_s29 }
  0xa9   : > { %s2302_s29 = sld [smem:[#allocation4 + $0x4f]] }
  0xaa   : > { %3447 = sst [smem:[#allocation82_spill]] %s2313_s17 }
  0xab   : > { %s2324_s27 = sld [smem:[#allocation4 + $0x36]] }
  0xac   : > { %3445 = sst [smem:[#allocation80_spill]] %s2291_s25 }
  0xad   : > { %3446 = sst [smem:[#allocation81_spill]] %s2296_s12 }
  0xae   : > { %s2304_s25 = sld [smem:[#allocation4 + $0x56]] }
  0xaf   : > { %s3450_s30 = sld [smem:[#allocation30_spill]] }
  0xb0   : > { %s2335_s4 = sld [smem:[#allocation4 + $0x37]] }
  0xb1   : > { %3448 = sst [smem:[#allocation83_spill]] %s2324_s27 }
  0xb2   : > { %s3452_s6 = sld [smem:[#allocation31_spill]] }
  0xb3   : > { %s3456_s24 = sld [smem:[#allocation33_spill]] }
  0xb4   : > { %s2427_s0 = sld [smem:[#allocation4 + $0x44]] }
  0xb5   : > { %s2468_s8 = sld [smem:[#allocation4 + $0x59]] }
  0xb6   : > { %3451 = sst [smem:[#allocation84_spill]] %s2335_s4 }
  0xb7   : > { %s2478_s14 = sld [smem:[#allocation4 + $0x60]] }
  0xb8   : > { %s2506_s9 = sld [smem:[#allocation4 + $0x53]] }
  0xb9   : > { %s3525_s27 = sld [smem:[#allocation80_spill]] }
  0xba   : > { %3483 = sst [smem:[#allocation99_spill]] %s2427_s0 }
  0xbb   : > { %s3527_s5 = sld [smem:[#allocation82_spill]] }
  0xbc   : > { %s3547_s17 = sld [smem:[#allocation27_spill]] }
  0xbd   : > { %s3559_s13 = sld [smem:[#allocation38_spill]] }
  0xbe   : > { %3523 = sst [smem:[#allocation111_spill]] %s2506_s9 }
  0xbf   : > { %s3554_s9 = sld [smem:[#allocation39_spill]] }
  0xc0   : > { %s3564_s0 = sld [smem:[#allocation36_spill]] }
  0xce   : > { %v327_v33 = vpop.permute.xlu1 %326  ;;  %v319_v34 = vpop.permute.xlu0 %318 }
  0xcf   : > { %329 = vst.msk [vmem:[#allocation2 + $0x6] sm:$0x1] %vm315_vm2, %v327_v33  ;;  %321 = vst.msk [vmem:[#allocation2 + $0x4] sm:$0x1] %vm315_vm2, %v319_v34  ;;  %v3349_v33 = vstv %s2167_s11  ;;  %v3357_v34 = vstv %s2169_s10  ;;  %s2347_s10 = sld [smem:[#allocation4 + $0x3c]] }
  0xd0   : > { %s2355_s11 = sld [smem:[#allocation4 + $0x43]] }
  0xd2   : > { %v331_v35 = vpop.permute.xlu1 %330  ;;  %v323_v36 = vpop.permute.xlu0 %322 }
  0xd3   : > { %333 = vst.msk [vmem:[#allocation2 + $0x7] sm:$0x1] %vm315_vm2, %v331_v35  ;;  %325 = vst.msk [vmem:[#allocation2 + $0x5] sm:$0x1] %vm315_vm2, %v323_v36 }
  0xd5   : > { %3454 = sst [smem:[#allocation85_spill]] %s2347_s10 }
  0xd6   : > { %v339_v37 = vpop.permute.xlu1 %338  ;;  %v335_v38 = vpop.permute.xlu0 %334  ;;  %3455 = sst [smem:[#allocation86_spill]] %s2355_s11 }
  0xd7   : > { %341 = vst.msk [vmem:[#allocation2 + $0x9] sm:$0x1] %vm315_vm2, %v339_v37  ;;  %337 = vst.msk [vmem:[#allocation2 + $0x8] sm:$0x1] %vm315_vm2, %v335_v38  ;;  %s3463_s11 = sld [smem:[#allocation39_spill]] }
  0xd8   : > { %s2405_s10 = sld [smem:[#allocation4 + $0x3d]] }
  0xda   : > { %v343_v39 = vpop.permute.xlu0 %342  ;;  %v349_v40 = vpop.permute.xlu1 %348  ;;  %v2042_v41 = vld [vmem:[#allocation2] sm:$0xff] }
  0xdb   : > { %345 = vst.msk [vmem:[#allocation2 + $0xa] sm:$0x1] %vm315_vm2, %v343_v39  ;;  %351 = vst.msk [vmem:[#allocation2 + $0xc] sm:$0x1] %vm315_vm2, %v349_v40  ;;  %v2311_v16 = vmul.f32 %v718_v3, %v2042_v41 }
  0xdc   : > { %469 = vst [vmem:[#allocation3 + $0x48] sm:$0xff] %v2042_v41 }
  0xde   : > { %v353_v42 = vpop.permute.xlu0 %352  ;;  %v357_v43 = vpop.permute.xlu1 %356  ;;  %3476 = sst [smem:[#allocation94_spill]] %s2405_s10 }
  0xdf   : > { %355 = vst.msk [vmem:[#allocation2 + $0xd] sm:$0x1] %vm315_vm2, %v353_v42  ;;  %359 = vst.msk [vmem:[#allocation2 + $0xe] sm:$0x1] %vm315_vm2, %v357_v43  ;;  %s3561_s10 = sld [smem:[#allocation40_spill]] }
  0xe2   : > { %v361_v44 = vpop.permute.xlu0 %360  ;;  %v365_v45 = vpop.permute.xlu1 %364 }
  0xe3   : > { %363 = vst.msk [vmem:[#allocation2 + $0xf] sm:$0x1] %vm315_vm2, %v361_v44  ;;  %367 = vst.msk [vmem:[#allocation2 + $0x10] sm:$0x1] %vm315_vm2, %v365_v45 }
  0xe6   : > { %v369_v46 = vpop.permute.xlu0 %368  ;;  %v373_v47 = vpop.permute.xlu1 %372 }
  0xe7   : > { %371 = vst.msk [vmem:[#allocation2 + $0x11] sm:$0x1] %vm315_vm2, %v369_v46  ;;  %375 = vst.msk [vmem:[#allocation2 + $0x12] sm:$0x1] %vm315_vm2, %v373_v47  ;;  %v3351_v46 = vstv %s3450_s30  ;;  %s3551_s30 = sld [smem:[#allocation30_spill]] }
  0xea   : > { %v379_v48 = vpop.permute.xlu0 %378  ;;  %v383_v49 = vpop.permute.xlu1 %382  ;;  %v2053_v50 = vld [vmem:[#allocation2 + $0x8] sm:$0xff] }
  0xeb   : > { %381 = vst.msk [vmem:[#allocation2 + $0x1c] sm:$0x1] %vm315_vm2, %v379_v48  ;;  %385 = vst.msk [vmem:[#allocation2 + $0x1d] sm:$0x1] %vm315_vm2, %v383_v49  ;;  %v2322_v28 = vmul.f32 %v718_v3, %v2053_v50 }
  0xec   : > { %470 = vst [vmem:[#allocation3 + $0x50] sm:$0xff] %v2053_v50 }
  0xee   : > { %v387_v51 = vpop.permute.xlu0 %386  ;;  %v391_v52 = vpop.permute.xlu1 %390  ;;  %v2058_v53 = vld [vmem:[#allocation2 + $0x10] sm:$0xff] }
  0xef   : > { %389 = vst.msk [vmem:[#allocation2 + $0x1e] sm:$0x1] %vm315_vm2, %v387_v51  ;;  %393 = vst.msk [vmem:[#allocation2 + $0x1f] sm:$0x1] %vm315_vm2, %v391_v52 }
  0xf0   : > { %471 = vst [vmem:[#allocation3 + $0x58] sm:$0xff] %v2058_v53 }
  0xf2   : > { %v395_v54 = vpop.permute.xlu0 %394  ;;  %v399_v55 = vpop.permute.xlu1 %398 }
  0xf3   : > { %397 = vst.msk [vmem:[#allocation2 + $0x20] sm:$0x1] %vm315_vm2, %v395_v54  ;;  %401 = vst.msk [vmem:[#allocation2 + $0x21] sm:$0x1] %vm315_vm2, %v399_v55  ;;  %v723_v10 = vld [vmem:[#allocation3 + $0x49] sm:$0xff]  ;;  %v3353_v55 = vstv %s3452_s6  ;;  %s2387_s6 = sld [smem:[#allocation4 + $0x58]] }
  0xf4   : > { %v730_v11 = vld [vmem:[#allocation3 + $0x4a] sm:$0xff]  ;;  %v2333_v38 = vmul.f32 %v725_v4, %v723_v10 }
  0xf5   : > { %v737_v17 = vld [vmem:[#allocation3 + $0x4b] sm:$0xff]  ;;  %v2339_v40 = vmul.f32 %v732_v5, %v730_v11 }
  0xf6   : > { %v403_v56 = vpop.permute.xlu0 %402  ;;  %v409_v57 = vpop.permute.xlu1 %408  ;;  %v2065_v58 = vld [vmem:[#allocation2 + $0x18] sm:$0xff] }
  0xf7   : > { %405 = vst.msk [vmem:[#allocation2 + $0x22] sm:$0x1] %vm315_vm2, %v403_v56  ;;  %411 = vst.msk [vmem:[#allocation2 + $0x24] sm:$0x1] %vm315_vm2, %v409_v57  ;;  %515 = vrot.lane.b32.xlu1 %v2065_v58, %s1870_s19  ;;  %505 = vrot.lane.b32.xlu0 %v2065_v58, %s1871_s20  ;;  %v744_v18 = vld [vmem:[#allocation3 + $0x4c] sm:$0xff]  ;;  %v745_v36 = vld [vmem:[#allocation3 + $0x54] sm:$0xff] }
  0xf8   : > { %536 = vst [vmem:[#allocation3 + $0xf0] sm:$0xff] %v2065_v58  ;;  %v751_v19 = vld [vmem:[#allocation3 + $0x4d] sm:$0xff]  ;;  %v752_v37 = vld [vmem:[#allocation3 + $0x55] sm:$0xff]  ;;  %v2343_v42 = vmul.f32 %v746_v7, %v744_v18  ;;  %v2361_v51 = vmul.f32 %v746_v7, %v745_v36  ;;  %v3355_v7 = vstv %s3463_s11  ;;  %s2438_s11 = sld [smem:[#allocation4 + $0x4b]] }
  0xf9   : > { %v724_v26 = vld [vmem:[#allocation3 + $0x51] sm:$0xff]  ;;  %3469 = sst [smem:[#allocation90_spill]] %s2387_s6 }
  0xfa   : > { %v413_v59 = vpop.permute.xlu0 %412  ;;  %v417_v60 = vpop.permute.xlu1 %416  ;;  %v731_v27 = vld [vmem:[#allocation3 + $0x52] sm:$0xff]  ;;  %v2351_v47 = vmul.f32 %v725_v4, %v724_v26  ;;  %s2492_s6 = sld [smem:[#allocation4 + $0x45]] }
  0xfb   : > { %415 = vst.msk [vmem:[#allocation2 + $0x25] sm:$0x1] %vm315_vm2, %v413_v59  ;;  %419 = vst.msk [vmem:[#allocation2 + $0x26] sm:$0x1] %vm315_vm2, %v417_v60  ;;  %448 = vrot.lane.b32.xlu1 %v2042_v41, %s1870_s19  ;;  %439 = vrot.lane.b32.xlu0 %v2042_v41, %s1871_s20  ;;  %v758_v29 = vld [vmem:[#allocation3 + $0x4e] sm:$0xff]  ;;  %v759_v39 = vld [vmem:[#allocation3 + $0x56] sm:$0xff]  ;;  %v2357_v49 = vmul.f32 %v732_v5, %v731_v27 }
  0xfc   : > { %v738_v35 = vld [vmem:[#allocation3 + $0x53] sm:$0xff]  ;;  %v2353_v48 = vmul.f32 %v760_v9, %v758_v29  ;;  %v2373_v57 = vmul.f32 %v760_v9, %v759_v39 }
  0xfe   : > { %v421_v61 = vpop.permute.xlu0 %420  ;;  %v425_v62 = vpop.permute.xlu1 %424  ;;  %3488 = sst [smem:[#allocation101_spill]] %s2438_s11 }
  0xff   : > { %423 = vst.msk [vmem:[#allocation2 + $0x27] sm:$0x1] %vm315_vm2, %v421_v61  ;;  %427 = vst.msk [vmem:[#allocation2 + $0x28] sm:$0x1] %vm315_vm2, %v425_v62  ;;  %472 = vrot.lane.b32.xlu1 %v2042_v41, %s3231_s21  ;;  %458 = vrot.lane.b32.xlu0 %v2042_v41, %s1873_s22  ;;  %v1059_v44 = vld [vmem:[#allocation3 + $0xf0] sm:$0xff]  ;;  %v3358_v62 = vstv %s3456_s24  ;;  %s3529_s11 = sld [smem:[#allocation83_spill]] }
 0x100   : > { %v2377_v61 = vmul.f32 %v1061_v12, %v1059_v44  ;;  %3517 = sst [smem:[#allocation109_spill]] %s2492_s6 }
 0x101   : > { %s3553_s6 = sld [smem:[#allocation32_spill]] }
 0x102   : > { %v429_v63 = vpop.permute.xlu0 %428  ;;  %v433_v0 = vpop.permute.xlu1 %432  ;;  %3465 = vst [vmem:[#allocation88_spill] sm:$0xff] %v2377_v61 }
 0x103   : > { %431 = vst.msk [vmem:[#allocation2 + $0x29] sm:$0x1] %vm315_vm2, %v429_v63  ;;  %435 = vst.msk [vmem:[#allocation2 + $0x2a] sm:$0x1] %vm315_vm2, %v433_v0  ;;  %492 = vrot.lane.b32.xlu1 %v2042_v41, %s3237_s23  ;;  %482 = vrot.lane.b32.xlu0 %v2042_v41, %s3233_s26  ;;  %v2341_v41 = vmul.f32 %v739_v6, %v737_v17 }
 0x106   : > { %v2092_v1 = vld [vmem:[#allocation2 + $0x20] sm:$0xff] }
 0x107   : > { %537 = vst [vmem:[#allocation3 + $0xf8] sm:$0xff] %v2092_v1  ;;  %507 = vrot.lane.b32.xlu1 %v2092_v1, %s1871_s20 }
 0x10a   : > { %v504_v2 = vld [vmem:[#allocation2 + $0x28] sm:$0xff] }
 0x10b   : > { %441 = vrot.lane.b32.xlu1 %v2053_v50, %s1871_s20  ;;  %538 = vst [vmem:[#allocation3 + $0x100] sm:$0xff] %v504_v2  ;;  %509 = vrot.lane.b32.xlu0 %v504_v2, %s1871_s20 }
 0x10e   : > { %v1073_v59 = vld [vmem:[#allocation3 + $0xf2] sm:$0xff] }
 0x10f   : > { %452 = vrot.lane.b32.xlu1 %v2058_v53, %s1870_s19  ;;  %443 = vrot.lane.b32.xlu0 %v2058_v53, %s1871_s20  ;;  %s2129_s20 = sld [smem:[#allocation4 + $0x26]]  ;;  %v1080_v60 = vld [vmem:[#allocation3 + $0xf3] sm:$0xff]  ;;  %v2403_v18 = vmul.f32 %v1075_v14, %v1073_v59 }
 0x110   : > { %v1087_v3 = vld [vmem:[#allocation3 + $0xf4] sm:$0xff]  ;;  %v2413_v36 = vmul.f32 %v1082_v15, %v1080_v60 }
 0x111   : > { %v1094_v4 = vld [vmem:[#allocation3 + $0xf5] sm:$0xff]  ;;  %3472 = vst [vmem:[#allocation93_spill] sm:$0xff] %v2403_v18  ;;  %v2421_v59 = vmul.f32 %v1089_v20, %v1087_v3 }
 0x112   : > { %v1101_v9 = vld [vmem:[#allocation3 + $0xf6] sm:$0xff]  ;;  %3478 = vst [vmem:[#allocation95_spill] sm:$0xff] %v2413_v36 }
 0x113   : > { %460 = vrot.lane.b32.xlu1 %v2053_v50, %s1873_s22  ;;  %450 = vrot.lane.b32.xlu0 %v2053_v50, %s1870_s19  ;;  %v1074_v26 = vld [vmem:[#allocation3 + $0xfa] sm:$0xff]  ;;  %3481 = vst [vmem:[#allocation97_spill] sm:$0xff] %v2421_v59  ;;  %v2436_v3 = vmul.f32 %v1103_v22, %v1101_v9 }
 0x114   : > { %v1081_v27 = vld [vmem:[#allocation3 + $0xfb] sm:$0xff]  ;;  %v2447_v10 = vmul.f32 %v1075_v14, %v1074_v26 }
 0x115   : > { %v753_v8 = vstv %s2129_s20  ;;  %s3453_s20 = sld [smem:[#allocation32_spill]]  ;;  %v1088_v39 = vld [vmem:[#allocation3 + $0xfc] sm:$0xff]  ;;  %3486 = vst [vmem:[#allocation100_spill] sm:$0xff] %v2436_v3 }
 0x116   : > { %v2345_v43 = vmul.f32 %v753_v8, %v751_v19  ;;  %v2363_v52 = vmul.f32 %v753_v8, %v752_v37  ;;  %v1067_v19 = vld [vmem:[#allocation3 + $0xf9] sm:$0xff]  ;;  %3491 = vst [vmem:[#allocation103_spill] sm:$0xff] %v2447_v10 }
 0x117   : > { %519 = vrot.lane.b32.xlu1 %v504_v2, %s1870_s19  ;;  %462 = vrot.lane.b32.xlu0 %v2058_v53, %s1873_s22  ;;  %v1095_v44 = vld [vmem:[#allocation3 + $0xfd] sm:$0xff] }
 0x11b   : > { %476 = vrot.lane.b32.xlu1 %v2058_v53, %s3231_s21  ;;  %517 = vrot.lane.b32.xlu0 %v2092_v1, %s1870_s19  ;;  %s2135_s19 = sld [smem:[#allocation4 + $0x3b]]  ;;  %v3354_v56 = vstv %s3453_s20 }
 0x11c   : > { %s2498_s20 = sld [smem:[#allocation4 + $0x4c]] }
 0x11f   : > { %484 = vrot.lane.b32.xlu1 %v2053_v50, %s3233_s26  ;;  %474 = vrot.lane.b32.xlu0 %v2053_v50, %s3231_s21  ;;  %s2155_s21 = sld [smem:[#allocation4 + $0x32]] }
 0x121   : > { %v1068_v13 = vstv %s2135_s19  ;;  %s3563_s19 = sld [smem:[#allocation42_spill]] }
 0x122   : > { %v2443_v11 = vmul.f32 %v1068_v13, %v1067_v19  ;;  %3521 = sst [smem:[#allocation110_spill]] %s2498_s20 }
 0x123   : > { %496 = vrot.lane.b32.xlu1 %v2058_v53, %s3237_s23  ;;  %486 = vrot.lane.b32.xlu0 %v2058_v53, %s3233_s26  ;;  %s2159_s26 = sld [smem:[#allocation4 + $0x1]] }
 0x124   : > { %3490 = vst [vmem:[#allocation102_spill] sm:$0xff] %v2443_v11  ;;  %s3552_s20 = sld [smem:[#allocation31_spill]] }
 0x125   : > { %3385 = sst [smem:[#allocation23_spill]] %s2155_s21  ;;  %v3352_v23 = vstv %s2155_s21 }
 0x126   : > { %s2453_s21 = sld [smem:[#allocation4 + $0x52]] }
 0x127   : > { %527 = vrot.lane.b32.xlu1 %v2092_v1, %s1873_s22  ;;  %494 = vrot.lane.b32.xlu0 %v2053_v50, %s3237_s23  ;;  %s2171_s23 = sld [smem:[#allocation4 + $0x6]]  ;;  %v2359_v50 = vmul.f32 %v739_v6, %v738_v35 }
 0x128   : > { %s3543_s12 = sld [smem:[#allocation23_spill]] }
 0x129   : > { %3387 = sst [smem:[#allocation25_spill]] %s2159_s26  ;;  %v3356_v25 = vstv %s2159_s26 }
 0x12a   : > { %s3457_s26 = sld [smem:[#allocation34_spill]] }
 0x12b   : > { %539 = vrot.lane.b32.xlu1 %v2065_v58, %s3388_s1  ;;  %525 = vrot.lane.b32.xlu0 %v2065_v58, %s1873_s22  ;;  %s3545_s24 = sld [smem:[#allocation25_spill]] }
 0x12d   : > { %3392 = sst [smem:[#allocation29_spill]] %s2171_s23 }
 0x12e   : > { %s2237_s23 = sld [smem:[#allocation4 + $0x39]] }
 0x12f   : > { %543 = vrot.lane.b32.xlu1 %v504_v2, %s3388_s1  ;;  %529 = vrot.lane.b32.xlu0 %v504_v2, %s1873_s22  ;;  %s2193_s22 = sld [smem:[#allocation4 + $0x7]] }
 0x130   : > { %s3449_s28 = sld [smem:[#allocation29_spill]]  ;;  %v3359_v63 = vstv %s3457_s26 }
 0x131   : > { %s2486_s26 = sld [smem:[#allocation4 + $0x3e]] }
 0x133   : > { %551 = vrot.lane.b32.xlu1 %v2092_v1, %s3397_s2  ;;  %541 = vrot.lane.b32.xlu0 %v2092_v1, %s3388_s1  ;;  %s2205_s1 = sld [smem:[#allocation4 + $0x23]] }
 0x134   : > { %3420 = sst [smem:[#allocation55_spill]] %s2237_s23 }
 0x135   : > { %3401 = sst [smem:[#allocation37_spill]] %s2193_s22 }
 0x136   : > { %s2211_s22 = sld [smem:[#allocation4 + $0x9]]  ;;  %v3350_v45 = vstv %s3449_s28 }
 0x137   : > { %559 = vrot.lane.b32.xlu1 %v2065_v58, %s3402_s18  ;;  %549 = vrot.lane.b32.xlu0 %v2065_v58, %s3397_s2  ;;  %s2259_s23 = sld [smem:[#allocation4 + $0x2f]]  ;;  %v1066_v58 = vld [vmem:[#allocation3 + $0xf1] sm:$0xff] }
 0x138   : > { %s2365_s28 = sld [smem:[#allocation4 + $0x4a]]  ;;  %v2399_v17 = vmul.f32 %v1068_v13, %v1066_v58  ;;  %v1102_v58 = vld [vmem:[#allocation3 + $0xfe] sm:$0xff] }
 0x139   : > { %3406 = sst [smem:[#allocation41_spill]] %s2205_s1  ;;  %v2466_v13 = vmul.f32 %v1103_v22, %v1102_v58 }
 0x13a   : > { %s2223_s1 = sld [smem:[#allocation4 + $0x2c]]  ;;  %3471 = vst [vmem:[#allocation92_spill] sm:$0xff] %v2399_v17 }
 0x13b   : > { %563 = vrot.lane.b32.xlu1 %v504_v2, %s3402_s18  ;;  %553 = vrot.lane.b32.xlu0 %v504_v2, %s3397_s2  ;;  %s2227_s2 = sld [smem:[#allocation4 + $0xf]]  ;;  %v1060_v2 = vld [vmem:[#allocation3 + $0xf8] sm:$0xff]  ;;  %3500 = vst [vmem:[#allocation107_spill] sm:$0xff] %v2466_v13 }
 0x13c   : > { %3408 = sst [smem:[#allocation43_spill]] %s2211_s22  ;;  %v2417_v37 = vmul.f32 %v1061_v12, %v1060_v2  ;;  %v2451_v12 = vmul.f32 %v1082_v15, %v1081_v27  ;;  %v2458_v2 = vmul.f32 %v1089_v20, %v1088_v39 }
 0x13d   : > { %s2231_s22 = sld [smem:[#allocation4 + $0x1d]] }
 0x13e   : > { %3430 = sst [smem:[#allocation65_spill]] %s2259_s23  ;;  %3479 = vst [vmem:[#allocation96_spill] sm:$0xff] %v2417_v37  ;;  %3492 = vst [vmem:[#allocation104_spill] sm:$0xff] %v2451_v12  ;;  %v3578_v37 = vstv %s3552_s20 }
 0x13f   : > { %561 = vrot.lane.b32.xlu0 %v2092_v1, %s3402_s18  ;;  %s2239_s18 = sld [smem:[#allocation4 + $0x40]]  ;;  %v2425_v1 = vmul.f32 %v1096_v21, %v1094_v4  ;;  %3497 = vst [vmem:[#allocation105_spill] sm:$0xff] %v2458_v2  ;;  %v2462_v4 = vmul.f32 %v1096_v21, %v1095_v44 }
 0x140   : > { %3413 = sst [smem:[#allocation48_spill]] %s2223_s1 }
 0x141   : > { %3415 = sst [smem:[#allocation50_spill]] %s2227_s2  ;;  %3482 = vst [vmem:[#allocation98_spill] sm:$0xff] %v2425_v1  ;;  %3499 = vst [vmem:[#allocation106_spill] sm:$0xff] %v2462_v4  ;;  %v3571_v4 = vstv %s3561_s10  ;;  %v3583_v1 = vstv %s3559_s13 }
 0x142   : > { %s2245_s1 = sld [smem:[#allocation4 + $0x55]] }
 0x143   : > { %3417 = sst [smem:[#allocation52_spill]] %s2231_s22 }
 0x144   : > { %s2249_s2 = sld [smem:[#allocation4 + $0xc]] }
 0x145   : > { %3421 = sst [smem:[#allocation56_spill]] %s2239_s18 }
 0x146   : > { %s2253_s22 = sld [smem:[#allocation4 + $0x1a]] }
 0x147   : > { %s2261_s18 = sld [smem:[#allocation4 + $0xb]] }
 0x148   : > { %3423 = sst [smem:[#allocation58_spill]] %s2245_s1 }
 0x149   : > { %s2265_s1 = sld [smem:[#allocation4 + $0x19]] }
 0x14a   : > { %3425 = sst [smem:[#allocation60_spill]] %s2249_s2 }
 0x14b   : > { %s2267_s2 = sld [smem:[#allocation4 + $0x20]] }
 0x14c   : > { %3427 = sst [smem:[#allocation62_spill]] %s2253_s22 }
 0x14d   : > { %3431 = sst [smem:[#allocation66_spill]] %s2261_s18 }
 0x14e   : > { %s2271_s22 = sld [smem:[#allocation4 + $0x2e]] }
 0x14f   : > { %3433 = sst [smem:[#allocation68_spill]] %s2265_s1 }
 0x150   : > { %s2275_s23 = sld [smem:[#allocation4 + $0x35]] }
 0x151   : > { %3434 = sst [smem:[#allocation69_spill]] %s2267_s2 }
 0x152   : > { %s2277_s18 = sld [smem:[#allocation4 + $0xd]] }
 0x153   : > { %s2281_s1 = sld [smem:[#allocation4 + $0x1b]] }
 0x154   : > { %3436 = sst [smem:[#allocation71_spill]] %s2271_s22 }
 0x155   : > { %s2285_s2 = sld [smem:[#allocation4 + $0x29]] }
 0x156   : > { %3438 = sst [smem:[#allocation73_spill]] %s2275_s23 }
 0x157   : > { %s2289_s22 = sld [smem:[#allocation4 + $0x3a]] }
 0x158   : > { %3439 = sst [smem:[#allocation74_spill]] %s2277_s18 }
 0x159   : > { %3441 = sst [smem:[#allocation76_spill]] %s2281_s1 }
 0x15a   : > { %3459 = sst [smem:[#allocation87_spill]] %s2365_s28 }
 0x15b   : > { %3443 = sst [smem:[#allocation78_spill]] %s2285_s2 }
 0x15c   : > { %s2379_s28 = sld [smem:[#allocation4 + $0x51]] }
 0x15d   : > { %s3493_s4 = sld [smem:[#allocation52_spill]] }
 0x15e   : > { %3494 = sst [smem:[#allocation52_spill]] %s2453_s21 }
 0x15f   : > { %s3501_s15 = sld [smem:[#allocation56_spill]] }
 0x160   : > { %3502 = sst [smem:[#allocation56_spill]] %s2468_s8 }
 0x161   : > { %s3504_s3 = sld [smem:[#allocation58_spill]] }
 0x162   : > { %3466 = sst [smem:[#allocation89_spill]] %s2379_s28 }
 0x163   : > { %s2393_s28 = sld [smem:[#allocation4 + $0x5f]] }
 0x164   : > { %3507 = sst [smem:[#allocation58_spill]] %s2478_s14 }
 0x165   : > { %3513 = sst [smem:[#allocation108_spill]] %s2486_s26 }
 0x166   : > { %s3524_s21 = sld [smem:[#allocation79_spill]] }
 0x167   : > { %s2513_s8 = sld [smem:[#allocation4 + $0x5a]] }
 0x168   : > { %s3534_s7 = sld [smem:[#allocation89_spill]] }
 0x169   : > { %v2326_v30 = vpop.permute.xlu1 %515  ;;  %v2328_v31 = vpop.permute.xlu0 %505  ;;  %3470 = sst [smem:[#allocation91_spill]] %s2393_s28 }
 0x16a   : > { %522 = vst [vmem:[#allocation3 + $0xc0] sm:$0xff] %v2326_v30  ;;  %512 = vst [vmem:[#allocation3 + $0xa8] sm:$0xff] %v2328_v31  ;;  %s2519_s28 = sld [smem:[#allocation4 + $0x61]]  ;;  %v2552_v5 = vmul.f32 %v3352_v23, %v2326_v30 }
 0x16b   : > { %s3548_s18 = sld [smem:[#allocation28_spill]] }
 0x16c   : > { %s3549_s23 = sld [smem:[#allocation29_spill]]  ;;  %3550 = vst [vmem:[#allocation112_spill] sm:$0xff] %v2552_v5 }
 0x16d   : > { %v2367_v53 = vpop.permute.xlu1 %448  ;;  %v2369_v54 = vpop.permute.xlu0 %439  ;;  %3526 = sst [smem:[#allocation79_spill]] %s2513_s8 }
 0x16e   : > { %455 = vst [vmem:[#allocation3 + $0x18] sm:$0xff] %v2367_v53  ;;  %445 = vst [vmem:[#allocation3] sm:$0xff] %v2369_v54  ;;  %v572_v30 = vmul.f32 %v571_v32, %v2369_v54  ;;  %s3556_s8 = sld [smem:[#allocation34_spill]] }
 0x16f   : > { %s3557_s26 = sld [smem:[#allocation35_spill]] }
 0x170   : > { %3528 = sst [smem:[#allocation80_spill]] %s2519_s28 }
 0x171   : > { %v2407_v29 = vpop.permute.xlu1 %472  ;;  %v2409_v35 = vpop.permute.xlu0 %458  ;;  %s3555_s28 = sld [smem:[#allocation33_spill]] }
 0x172   : > { %479 = vst [vmem:[#allocation3 + $0x60] sm:$0xff] %v2407_v29  ;;  %465 = vst [vmem:[#allocation3 + $0x30] sm:$0xff] %v2409_v35  ;;  %v2571_v60 = vmul.f32 %v3349_v33, %v2407_v29  ;;  %s3558_s2 = sld [smem:[#allocation37_spill]] }
 0x173   : > { %s3562_s1 = sld [smem:[#allocation41_spill]] }
 0x174   : > { %s3636_s20 = sld [smem:[#allocation57_spill]] }
 0x175   : > { %v2470_v14 = vpop.permute.xlu1 %492  ;;  %v2472_v15 = vpop.permute.xlu0 %482  ;;  %s3645_s14 = sld [smem:[#allocation62_spill]] }
 0x176   : > { %499 = vst [vmem:[#allocation3 + $0x90] sm:$0xff] %v2470_v14  ;;  %489 = vst [vmem:[#allocation3 + $0x78] sm:$0xff] %v2472_v15  ;;  %v2586_v54 = vmul.f32 %v3351_v46, %v2472_v15 }
 0x177   : > { %v3589_v5 = vstv %s3555_s28  ;;  %s3607_s28 = sld [smem:[#allocation51_spill]] }
 0x179   : > { %v2500_v58 = vpop.permute.xlu1 %507  ;;  %v3586_v17 = vstv %s3562_s1 }
 0x17a   : > { %513 = vst [vmem:[#allocation3 + $0xb0] sm:$0xff] %v2500_v58  ;;  %v2591_v29 = vmul.f32 %v914_v24, %v2500_v58 }
 0x17d   : > { %v442_v9 = vpop.permute.xlu1 %441  ;;  %v510_v19 = vpop.permute.xlu0 %509 }
 0x17e   : > { %446 = vst [vmem:[#allocation3 + $0x8] sm:$0xff] %v442_v9  ;;  %514 = vst [vmem:[#allocation3 + $0xb8] sm:$0xff] %v510_v19  ;;  %v621_v19 = vmul.f32 %v3356_v25, %v2367_v53  ;;  %v2581_v53 = vmul.f32 %v3350_v45, %v2470_v14  ;;  %v573_v45 = vmul.f32 %v571_v32, %v442_v9  ;;  %v3569_v32 = vstv %s3558_s2 }
 0x181   : > { %v453_v0 = vpop.permute.xlu1 %452  ;;  %v444_v39 = vpop.permute.xlu0 %443  ;;  %v919_v27 = vld [vmem:[#allocation3 + $0xa9] sm:$0xff] }
 0x182   : > { %457 = vst [vmem:[#allocation3 + $0x28] sm:$0xff] %v453_v0  ;;  %447 = vst [vmem:[#allocation3 + $0x10] sm:$0xff] %v444_v39  ;;  %v926_v8 = vld [vmem:[#allocation3 + $0xaa] sm:$0xff]  ;;  %v2560_v39 = vmul.f32 %v914_v24, %v2328_v31  ;;  %v2576_v31 = vmul.f32 %v3357_v34, %v2409_v35  ;;  %v2595_v14 = vmul.f32 %v3353_v55, %v919_v27  ;;  %v3570_v34 = vstv %s3559_s13  ;;  %s3598_s13 = sld [smem:[#allocation45_spill]] }
 0x183   : > { %v933_v20 = vld [vmem:[#allocation3 + $0xab] sm:$0xff]  ;;  %v2599_v15 = vmul.f32 %v3354_v56, %v926_v8  ;;  %v3567_v8 = vstv %s3557_s26 }
 0x184   : > { %v940_v21 = vld [vmem:[#allocation3 + $0xac] sm:$0xff]  ;;  %v2607_v27 = vmul.f32 %v3358_v62, %v933_v20  ;;  %v3572_v20 = vstv %s3562_s1  ;;  %s3599_s1 = sld [smem:[#allocation46_spill]] }
 0x185   : > { %v947_v0 = vld [vmem:[#allocation3 + $0xad] sm:$0xff]  ;;  %v576_v44 = vld [vmem:[#allocation3 + $0x1] sm:$0xff]  ;;  %v461_v22 = vpop.permute.xlu1 %460  ;;  %v451_v33 = vpop.permute.xlu0 %450  ;;  %3560 = vst [vmem:[#allocation113_spill] sm:$0xff] %v2599_v15  ;;  %v2611_v55 = vmul.f32 %v3359_v63, %v940_v21  ;;  %v3573_v21 = vstv %s3563_s19 }
 0x186   : > { %v954_v6 = vld [vmem:[#allocation3 + $0xae] sm:$0xff]  ;;  %v583_v26 = vld [vmem:[#allocation3 + $0x2] sm:$0xff]  ;;  %466 = vst [vmem:[#allocation3 + $0x38] sm:$0xff] %v461_v22  ;;  %456 = vst [vmem:[#allocation3 + $0x20] sm:$0xff] %v451_v33  ;;  %v2615_v56 = vmul.f32 %v3567_v8, %v947_v0  ;;  %v579_v9 = vmul.f32 %v3569_v32, %v576_v44  ;;  %v3574_v32 = vstv %s3564_s0 }
 0x187   : > { %v590_v35 = vld [vmem:[#allocation3 + $0x3] sm:$0xff]  ;;  %3565 = vst [vmem:[#allocation114_spill] sm:$0xff] %v2607_v27  ;;  %3566 = vst [vmem:[#allocation115_spill] sm:$0xff] %v2611_v55  ;;  %v934_v25 = vld [vmem:[#allocation3 + $0xb3] sm:$0xff]  ;;  %v586_v13 = vmul.f32 %v3570_v34, %v583_v26  ;;  %v2629_v12 = vmul.f32 %v3574_v32, %v954_v6  ;;  %v3576_v26 = vstv %s3548_s18  ;;  %v3580_v6 = vstv %s3553_s6  ;;  %s3604_s18 = sld [smem:[#allocation48_spill]] }
 0x188   : > { %v593_v24 = vmul.f32 %v3355_v7, %v590_v35  ;;  %v597_v58 = vld [vmem:[#allocation3 + $0x4] sm:$0xff]  ;;  %3568 = vst [vmem:[#allocation116_spill] sm:$0xff] %v2615_v56  ;;  %v920_v35 = vld [vmem:[#allocation3 + $0xb1] sm:$0xff]  ;;  %v3617_v56 = vstv %s3607_s28  ;;  %s3620_s6 = sld [smem:[#allocation54_spill]] }
 0x189   : > { %v604_v46 = vld [vmem:[#allocation3 + $0x5] sm:$0xff]  ;;  %v927_v7 = vld [vmem:[#allocation3 + $0xb2] sm:$0xff]  ;;  %v600_v2 = vmul.f32 %v3571_v4, %v597_v58  ;;  %3575 = vst [vmem:[#allocation117_spill] sm:$0xff] %v2629_v12  ;;  %v3577_v58 = vstv %s3545_s24  ;;  %v2641_v3 = vmul.f32 %v3578_v37, %v920_v35  ;;  %v3585_v37 = vstv %s3561_s10  ;;  %s3588_s24 = sld [smem:[#allocation43_spill]] }
 0x18a   : > { %v611_v23 = vld [vmem:[#allocation3 + $0x6] sm:$0xff]  ;;  %v607_v62 = vmul.f32 %v3572_v20, %v604_v46  ;;  %v941_v0 = vld [vmem:[#allocation3 + $0xb4] sm:$0xff]  ;;  %v2631_v10 = vadd.f32 %v621_v19, %v593_v24  ;;  %v2635_v46 = vmul.f32 %v3576_v26, %v461_v22  ;;  %v520_v20 = vpop.permute.xlu1 %519  ;;  %v2645_v19 = vmul.f32 %v3580_v6, %v927_v7  ;;  %s3646_s10 = sld [smem:[#allocation63_spill]] }
 0x18b   : > { %v614_v63 = vmul.f32 %v3573_v21, %v611_v23  ;;  %v948_v8 = vld [vmem:[#allocation3 + $0xb5] sm:$0xff]  ;;  %v577_v11 = vld [vmem:[#allocation3 + $0x9] sm:$0xff]  ;;  %v622_v23 = vmul.f32 %v3577_v58, %v451_v33  ;;  %v463_v21 = vpop.permute.xlu0 %462  ;;  %3579 = vst [vmem:[#allocation118_spill] sm:$0xff] %v2641_v3  ;;  %v3582_v24 = vstv %s3558_s2  ;;  %524 = vst [vmem:[#allocation3 + $0xd0] sm:$0xff] %v520_v20  ;;  %v3584_v33 = vstv %s3554_s9  ;;  %s3597_s9 = sld [smem:[#allocation44_spill]] }
 0x18c   : > { %v955_v44 = vld [vmem:[#allocation3 + $0xb6] sm:$0xff]  ;;  %v584_v34 = vld [vmem:[#allocation3 + $0xa] sm:$0xff]  ;;  %3581 = vst [vmem:[#allocation119_spill] sm:$0xff] %v2645_v19  ;;  %v580_v32 = vmul.f32 %v3582_v24, %v577_v11  ;;  %467 = vst [vmem:[#allocation3 + $0x40] sm:$0xff] %v463_v21  ;;  %v3587_v7 = vstv %s3563_s19  ;;  %v602_v61 = vadd.f32 %v600_v2, %v572_v30  ;;  %v609_v11 = vadd.f32 %v607_v62, %v579_v9  ;;  %s3600_s2 = sld [smem:[#allocation47_spill]] }
 0x18d   : > { %v591_v4 = vld [vmem:[#allocation3 + $0xb] sm:$0xff]  ;;  %v587_v59 = vmul.f32 %v3583_v1, %v584_v34  ;;  %v616_v24 = vadd.f32 %v614_v63, %v586_v13  ;;  %v2661_v1 = vmul.f32 %v3589_v5, %v934_v25  ;;  %v3591_v34 = vstv %s3556_s8  ;;  %v688_v62 = vld [vmem:[#allocation3 + $0x33] sm:$0xff]  ;;  %s3640_s8 = sld [smem:[#allocation59_spill]] }
 0x18e   : > { %v598_v22 = vld [vmem:[#allocation3 + $0xc] sm:$0xff]  ;;  %v594_v58 = vmul.f32 %v3584_v33, %v591_v4  ;;  %v2665_v12 = vmul.f32 %v3591_v34, %v941_v0  ;;  %v3593_v20 = vstv %s3557_s26  ;;  %v3595_v4 = vstv %s3564_s0  ;;  %v477_v63 = vpop.permute.xlu1 %476  ;;  %s3602_s26 = sld [smem:[#allocation49_spill]]  ;;  %v695_v0 = vld [vmem:[#allocation3 + $0x34] sm:$0xff] }
 0x18f   : > { %v605_v26 = vld [vmem:[#allocation3 + $0xd] sm:$0xff]  ;;  %v601_v35 = vmul.f32 %v3585_v37, %v598_v22  ;;  %3590 = vst [vmem:[#allocation120_spill] sm:$0xff] %v2661_v1  ;;  %v2669_v21 = vmul.f32 %v3593_v20, %v948_v8  ;;  %v2673_v33 = vmul.f32 %v3595_v4, %v955_v44  ;;  %v518_v13 = vpop.permute.xlu0 %517  ;;  %v3601_v30 = vstv %s3588_s24  ;;  %v702_v8 = vld [vmem:[#allocation3 + $0x35] sm:$0xff]  ;;  %s3603_s0 = sld [smem:[#allocation50_spill]]  ;;  %481 = vst [vmem:[#allocation3 + $0x70] sm:$0xff] %v477_v63 }
 0x190   : > { %v612_v18 = vld [vmem:[#allocation3 + $0xe] sm:$0xff]  ;;  %v608_v36 = vmul.f32 %v3586_v17, %v605_v26  ;;  %3592 = vst [vmem:[#allocation121_spill] sm:$0xff] %v2665_v12  ;;  %v709_v44 = vld [vmem:[#allocation3 + $0x36] sm:$0xff]  ;;  %523 = vst [vmem:[#allocation3 + $0xc8] sm:$0xff] %v518_v13  ;;  %v3606_v37 = vstv %s3598_s13  ;;  %v3609_v34 = vstv %s3543_s12  ;;  %s3619_s12 = sld [smem:[#allocation53_spill]] }
 0x191   : > { %v615_v6 = vmul.f32 %v3587_v7, %v612_v18  ;;  %3594 = vst [vmem:[#allocation122_spill] sm:$0xff] %v2669_v21  ;;  %3596 = vst [vmem:[#allocation123_spill] sm:$0xff] %v2673_v33  ;;  %v603_v17 = vadd.f32 %v601_v35, %v573_v45  ;;  %v674_v18 = vld [vmem:[#allocation3 + $0x31] sm:$0xff]  ;;  %v624_v45 = vadd.f32 %v622_v23, %v594_v58  ;;  %v3605_v22 = vstv %s3597_s9  ;;  %v625_v35 = vld [vmem:[#allocation3 + $0x19] sm:$0xff]  ;;  %s3642_s19 = sld [smem:[#allocation60_spill]] }
 0x192   : > { %v681_v2 = vld [vmem:[#allocation3 + $0x32] sm:$0xff]  ;;  %v610_v25 = vadd.f32 %v608_v36, %v580_v32  ;;  %v677_v9 = vmul.f32 %v3601_v30, %v674_v18  ;;  %v2683_v36 = vmul.f32 %v3606_v37, %v688_v62  ;;  %v626_v7 = vld [vmem:[#allocation3 + $0x21] sm:$0xff]  ;;  %v2689_v20 = vmul.f32 %v3609_v34, %v518_v13  ;;  %s3694_s28 = sld [smem:[#allocation77_spill]] }
 0x193   : > { %v617_v5 = vadd.f32 %v615_v6, %v587_v59  ;;  %v2679_v26 = vmul.f32 %v3605_v22, %v681_v2  ;;  %v3608_v59 = vstv %s3599_s1  ;;  %v632_v6 = vld [vmem:[#allocation3 + $0x1a] sm:$0xff]  ;;  %v3611_v23 = vstv %s3600_s2  ;;  %v633_v30 = vld [vmem:[#allocation3 + $0x22] sm:$0xff] }
 0x194   : > { %v698_v32 = vmul.f32 %v3608_v59, %v695_v0  ;;  %3610 = vst [vmem:[#allocation124_spill] sm:$0xff] %v2689_v20  ;;  %v705_v58 = vmul.f32 %v3611_v23, %v702_v8  ;;  %v3612_v4 = vstv %s3602_s26  ;;  %v639_v37 = vld [vmem:[#allocation3 + $0x1b] sm:$0xff]  ;;  %v640_v33 = vld [vmem:[#allocation3 + $0x23] sm:$0xff]  ;;  %v3615_v21 = vstv %s3604_s18  ;;  %s3688_s26 = sld [smem:[#allocation74_spill]] }
 0x195   : > { %v628_v18 = vmul.f32 %v3612_v4, %v625_v35  ;;  %v3613_v63 = vmov %v3612_v4  ;;  %v3614_v22 = vstv %s3603_s0  ;;  %v2701_v0 = vmul.f32 %v3615_v21, %v709_v44  ;;  %v646_v8 = vld [vmem:[#allocation3 + $0x1c] sm:$0xff]  ;;  %v647_v23 = vld [vmem:[#allocation3 + $0x24] sm:$0xff]  ;;  %v2711_v4 = vpop.permute.xlu0 %474  ;;  %s3690_s0 = sld [smem:[#allocation75_spill]] }
 0x196   : > { %v629_v2 = vmul.f32 %v3613_v63, %v626_v7  ;;  %v635_v62 = vmul.f32 %v3614_v22, %v632_v6  ;;  %v3616_v59 = vmov %v3614_v22  ;;  %v642_v13 = vmul.f32 %v3617_v56, %v639_v37  ;;  %v653_v35 = vld [vmem:[#allocation3 + $0x1d] sm:$0xff]  ;;  %v2709_v7 = vpop.permute.xlu1 %484  ;;  %v654_v22 = vld [vmem:[#allocation3 + $0x25] sm:$0xff]  ;;  %480 = vst [vmem:[#allocation3 + $0x68] sm:$0xff] %v2711_v4 }
 0x197   : > { %v636_v1 = vmul.f32 %v3616_v59, %v633_v30  ;;  %v3618_v34 = vmov %v3617_v56  ;;  %v630_v6 = vadd.f32 %v628_v18, %v602_v61  ;;  %v3621_v63 = vstv %s3493_s4  ;;  %v660_v56 = vld [vmem:[#allocation3 + $0x1e] sm:$0xff]  ;;  %490 = vst [vmem:[#allocation3 + $0x80] sm:$0xff] %v2709_v7  ;;  %s3630_s4 = sld [smem:[#allocation55_spill]] }
 0x198   : > { %v643_v20 = vmul.f32 %v3618_v34, %v640_v33  ;;  %v631_v21 = vadd.f32 %v629_v2, %v603_v17  ;;  %v637_v44 = vadd.f32 %v635_v62, %v609_v11  ;;  %v649_v30 = vmul.f32 %v3621_v63, %v646_v8  ;;  %v661_v33 = vld [vmem:[#allocation3 + $0x26] sm:$0xff]  ;;  %v682_v15 = vld [vmem:[#allocation3 + $0x3a] sm:$0xff] }
 0x199   : > { %v638_v37 = vadd.f32 %v636_v1, %v610_v25  ;;  %v644_v59 = vadd.f32 %v642_v13, %v616_v24  ;;  %v3622_v27 = vmov %v3621_v63  ;;  %v3623_v18 = vstv %s3619_s12  ;;  %v675_v63 = vld [vmem:[#allocation3 + $0x39] sm:$0xff]  ;;  %s3707_s12 = sld [smem:[#allocation73_spill]] }
 0x19a   : > { %v645_v34 = vadd.f32 %v643_v20, %v617_v5  ;;  %v650_v19 = vmul.f32 %v3622_v27, %v647_v23  ;;  %v651_v61 = vadd.f32 %v649_v30, %v2631_v10  ;;  %v656_v17 = vmul.f32 %v3623_v18, %v653_v35  ;;  %v689_v27 = vld [vmem:[#allocation3 + $0x3b] sm:$0xff]  ;;  %v497_v25 = vpop.permute.xlu1 %496  ;;  %v487_v10 = vpop.permute.xlu0 %486 }
 0x19b   : > { %v3624_v11 = vmov %v3623_v18  ;;  %v3625_v62 = vstv %s3620_s6  ;;  %v672_v1 = vadd.f32 %v2576_v31, %v644_v59  ;;  %v696_v35 = vld [vmem:[#allocation3 + $0x3c] sm:$0xff]  ;;  %501 = vst [vmem:[#allocation3 + $0xa0] sm:$0xff] %v497_v25  ;;  %491 = vst [vmem:[#allocation3 + $0x88] sm:$0xff] %v487_v10  ;;  %v3627_v31 = vstv %s3588_s24  ;;  %v989_v25 = vld [vmem:[#allocation3 + $0xc4] sm:$0xff]  ;;  %s3647_s24 = sld [smem:[#allocation64_spill]] }
 0x19c   : > { %v657_v2 = vmul.f32 %v3624_v11, %v654_v22  ;;  %v663_v8 = vmul.f32 %v3625_v62, %v660_v56  ;;  %v652_v12 = vadd.f32 %v650_v19, %v624_v45  ;;  %v3626_v55 = vmov %v3625_v62  ;;  %v703_v30 = vld [vmem:[#allocation3 + $0x3d] sm:$0xff]  ;;  %v990_v10 = vld [vmem:[#allocation3 + $0xcc] sm:$0xff]  ;;  %s3764_s6 = sld [smem:[#allocation84_spill]] }
 0x19d   : > { %v664_v3 = vmul.f32 %v3626_v55, %v661_v33  ;;  %v673_v24 = vadd.f32 %v2635_v46, %v645_v34  ;;  %v658_v5 = vadd.f32 %v656_v17, %v630_v6  ;;  %v679_v23 = vadd.f32 %v677_v9, %v651_v61  ;;  %v710_v56 = vld [vmem:[#allocation3 + $0x3e] sm:$0xff]  ;;  %v969_v34 = vld [vmem:[#allocation3 + $0xc9] sm:$0xff] }
 0x19e   : > { %v659_v20 = vadd.f32 %v657_v2, %v631_v21  ;;  %v665_v13 = vadd.f32 %v663_v8, %v637_v44  ;;  %v2730_v19 = vadd.f32 %v698_v32, %v672_v1  ;;  %v678_v45 = vmul.f32 %v3627_v31, %v675_v63  ;;  %v968_v33 = vld [vmem:[#allocation3 + $0xc1] sm:$0xff]  ;;  %v2744_v62 = vpop.permute.xlu1 %527 }
 0x19f   : > { %v666_v55 = vadd.f32 %v664_v3, %v638_v37  ;;  %v3628_v46 = vstv %s3597_s9  ;;  %v686_v6 = vadd.f32 %v2679_v26, %v658_v5  ;;  %v707_v9 = vadd.f32 %v705_v58, %v679_v23  ;;  %v975_v61 = vld [vmem:[#allocation3 + $0xc2] sm:$0xff]  ;;  %v983_v26 = vld [vmem:[#allocation3 + $0xcb] sm:$0xff]  ;;  %533 = vst [vmem:[#allocation3 + $0xe0] sm:$0xff] %v2744_v62  ;;  %s3648_s9 = sld [smem:[#allocation65_spill]] }
 0x1a0   : > { %v685_v22 = vmul.f32 %v3628_v46, %v682_v15  ;;  %v693_v21 = vadd.f32 %v2683_v36, %v665_v13  ;;  %v3629_v44 = vstv %s3598_s13  ;;  %v680_v3 = vadd.f32 %v678_v45, %v652_v12  ;;  %v976_v15 = vld [vmem:[#allocation3 + $0xca] sm:$0xff]  ;;  %v2746_v36 = vpop.permute.xlu0 %494  ;;  %s3667_s13 = sld [smem:[#allocation69_spill]] }
 0x1a1   : > { %v692_v59 = vmul.f32 %v3629_v44, %v689_v27  ;;  %v3631_v37 = vstv %s3599_s1  ;;  %v3632_v17 = vstv %s3600_s2  ;;  %v982_v2 = vld [vmem:[#allocation3 + $0xc3] sm:$0xff]  ;;  %v714_v58 = vadd.f32 %v2701_v0, %v686_v6  ;;  %500 = vst [vmem:[#allocation3 + $0x98] sm:$0xff] %v2746_v36  ;;  %v1004_v45 = vld [vmem:[#allocation3 + $0xce] sm:$0xff]  ;;  %v821_v44 = vld [vmem:[#allocation3 + $0x79] sm:$0xff]  ;;  %s3674_s1 = sld [smem:[#allocation71_spill]] }
 0x1a2   : > { %v687_v32 = vadd.f32 %v685_v22, %v659_v20  ;;  %v699_v18 = vmul.f32 %v3631_v37, %v696_v35  ;;  %v706_v11 = vmul.f32 %v3632_v17, %v703_v30  ;;  %v3633_v63 = vstv %s3604_s18  ;;  %v996_v5 = vld [vmem:[#allocation3 + $0xc5] sm:$0xff]  ;;  %v842_v17 = vld [vmem:[#allocation3 + $0x7c] sm:$0xff]  ;;  %s3684_s2 = sld [smem:[#allocation72_spill]] }
 0x1a3   : > { %v694_v8 = vadd.f32 %v692_v59, %v666_v55  ;;  %v713_v1 = vmul.f32 %v3633_v63, %v710_v56  ;;  %v3634_v12 = vstv %s3630_s4  ;;  %v3637_v35 = vstv %s3501_s15  ;;  %v997_v55 = vld [vmem:[#allocation3 + $0xcd] sm:$0xff]  ;;  %v828_v59 = vld [vmem:[#allocation3 + $0x7a] sm:$0xff]  ;;  %s3644_s15 = sld [smem:[#allocation61_spill]] }
 0x1a4   : > { %v2753_v27 = vmul.f32 %v3634_v12, %v968_v33  ;;  %v701_v20 = vadd.f32 %v699_v18, %v673_v24  ;;  %v708_v13 = vadd.f32 %v706_v11, %v680_v3  ;;  %v3635_v23 = vmov %v3634_v12  ;;  %v1003_v31 = vld [vmem:[#allocation3 + $0xc6] sm:$0xff]  ;;  %v849_v11 = vld [vmem:[#allocation3 + $0x7d] sm:$0xff]  ;;  %s3691_s18 = sld [smem:[#allocation76_spill]] }
 0x1a5   : > { %v2759_v0 = vmul.f32 %v3635_v23, %v969_v34  ;;  %v2763_v30 = vmul.f32 %v3637_v35, %v975_v61  ;;  %v715_v46 = vadd.f32 %v713_v1, %v687_v32  ;;  %v722_v22 = vadd.f32 %v2322_v28, %v694_v8  ;;  %v835_v34 = vld [vmem:[#allocation3 + $0x7b] sm:$0xff]  ;;  %s3769_s4 = sld [smem:[#allocation94_spill]] }
 0x1a6   : > { %v3638_v56 = vmov %v3637_v35  ;;  %v3639_v24 = vstv %s2241_s16  ;;  %v729_v61 = vadd.f32 %v2351_v47, %v701_v20  ;;  %v736_v3 = vadd.f32 %v2357_v49, %v708_v13  ;;  %v2786_v47 = vpop.permute.xlu0 %525  ;;  %s3661_s16 = sld [smem:[#allocation66_spill]] }
 0x1a7   : > { %v2768_v33 = vmul.f32 %v3638_v56, %v976_v15  ;;  %v2772_v6 = vmul.f32 %v3639_v24, %v982_v2  ;;  %v3641_v32 = vmov %v3639_v24  ;;  %v3643_v37 = vstv %s3636_s20  ;;  %v856_v15 = vld [vmem:[#allocation3 + $0x7e] sm:$0xff]  ;;  %v2784_v2 = vpop.permute.xlu1 %539  ;;  %532 = vst [vmem:[#allocation3 + $0xd8] sm:$0xff] %v2786_v47  ;;  %s3770_s20 = sld [smem:[#allocation99_spill]] }
 0x1a8   : > { %v2778_v28 = vmul.f32 %v3641_v32, %v983_v26  ;;  %v2782_v18 = vmul.f32 %v3643_v37, %v989_v25  ;;  %v3649_v49 = vmov %v3643_v37  ;;  %v3650_v26 = vstv %s3504_s3  ;;  %546 = vst [vmem:[#allocation3 + $0x108] sm:$0xff] %v2784_v2  ;;  %s3663_s3 = sld [smem:[#allocation68_spill]] }
 0x1a9   : > { %v2790_v8 = vmul.f32 %v3649_v49, %v990_v10  ;;  %v2794_v63 = vmul.f32 %v3650_v26, %v996_v5  ;;  %v3651_v1 = vmov %v3650_v26  ;;  %v3652_v25 = vstv %s3640_s8  ;;  %s3774_s8 = sld [smem:[#allocation101_spill]] }
 0x1aa   : > { %v2798_v12 = vmul.f32 %v3651_v1, %v997_v55  ;;  %v2802_v20 = vmul.f32 %v3652_v25, %v1003_v31  ;;  %v3653_v13 = vmov %v3652_v25  ;;  %v3654_v35 = vstv %s3551_s30  ;;  %s3662_s30 = sld [smem:[#allocation67_spill]] }
 0x1ab   : > { %v2808_v23 = vmul.f32 %v3653_v13, %v1004_v45  ;;  %v2813_v10 = vmul.f32 %v3654_v35, %v2709_v7  ;;  %v3655_v56 = vstv %s3642_s19  ;;  %v3656_v24 = vstv %s3644_s15  ;;  %v773_v35 = vld [vmem:[#allocation3 + $0x69] sm:$0xff] }
 0x1ac   : > { %v2817_v5 = vmul.f32 %v3655_v56, %v821_v44  ;;  %v2821_v55 = vmul.f32 %v3656_v24, %v828_v59  ;;  %v3657_v32 = vstv %s3645_s14  ;;  %v3658_v37 = vstv %s3646_s10  ;;  %v544_v56 = vpop.permute.xlu1 %543  ;;  %v530_v24 = vpop.permute.xlu0 %529 }
 0x1ad   : > { %v2825_v31 = vmul.f32 %v3657_v32, %v835_v34  ;;  %v2829_v49 = vmul.f32 %v3658_v37, %v842_v17  ;;  %v3659_v26 = vstv %s3647_s24  ;;  %v3660_v45 = vstv %s3648_s9  ;;  %v772_v34 = vld [vmem:[#allocation3 + $0x61] sm:$0xff]  ;;  %548 = vst [vmem:[#allocation3 + $0x118] sm:$0xff] %v544_v56  ;;  %534 = vst [vmem:[#allocation3 + $0xe8] sm:$0xff] %v530_v24  ;;  %v801_v56 = vld [vmem:[#allocation3 + $0x6d] sm:$0xff] }
 0x1ae   : > { %v2833_v1 = vmul.f32 %v3659_v26, %v849_v11  ;;  %v2837_v25 = vmul.f32 %v3660_v45, %v856_v15  ;;  %v721_v7 = vadd.f32 %v2311_v16, %v693_v21  ;;  %v728_v44 = vadd.f32 %v2333_v38, %v2730_v19  ;;  %v779_v17 = vld [vmem:[#allocation3 + $0x62] sm:$0xff]  ;;  %v787_v19 = vld [vmem:[#allocation3 + $0x6b] sm:$0xff] }
 0x1af   : > { %v735_v59 = vadd.f32 %v2339_v40, %v707_v9  ;;  %v742_v13 = vadd.f32 %v2341_v41, %v714_v58  ;;  %v743_v11 = vadd.f32 %v2359_v50, %v715_v46  ;;  %v750_v15 = vadd.f32 %v2361_v51, %v722_v22  ;;  %v780_v40 = vld [vmem:[#allocation3 + $0x6a] sm:$0xff] }
 0x1b0   : > { %v757_v16 = vadd.f32 %v2363_v52, %v729_v61  ;;  %v764_v38 = vadd.f32 %v2373_v57, %v736_v3  ;;  %v786_v41 = vld [vmem:[#allocation3 + $0x63] sm:$0xff]  ;;  %v749_v21 = vadd.f32 %v2343_v42, %v721_v7  ;;  %v756_v50 = vadd.f32 %v2345_v43, %v728_v44  ;;  %v794_v26 = vld [vmem:[#allocation3 + $0x6c] sm:$0xff] }
 0x1b1   : > { %v763_v9 = vadd.f32 %v2353_v48, %v735_v59  ;;  %v3664_v51 = vstv %s3547_s17  ;;  %v793_v52 = vld [vmem:[#allocation3 + $0x64] sm:$0xff]  ;;  %v770_v57 = vadd.f32 %v2571_v60, %v742_v13  ;;  %v3665_v46 = vstv %s3661_s16  ;;  %s3672_s17 = sld [smem:[#allocation70_spill]]  ;;  %v2867_v13 = vpop.permute.xlu1 %551 }
 0x1b2   : > { %v769_v58 = vmul.f32 %v3664_v51, %v2711_v4  ;;  %v775_v22 = vmul.f32 %v3665_v46, %v772_v34  ;;  %v3666_v61 = vmov %v3665_v46  ;;  %v3668_v32 = vstv %s3662_s30  ;;  %v800_v4 = vld [vmem:[#allocation3 + $0x65] sm:$0xff]  ;;  %3673 = vst [vmem:[#allocation125_spill] sm:$0xff] %v2867_v13  ;;  %v2869_v34 = vpop.permute.xlu0 %541  ;;  %557 = vst [vmem:[#allocation3 + $0x128] sm:$0xff] %v2867_v13  ;;  %s3802_s16 = sld [smem:[#allocation80_spill]] }
 0x1b3   : > { %v776_v3 = vmul.f32 %v3666_v61, %v773_v35  ;;  %v782_v37 = vmul.f32 %v3668_v32, %v779_v17  ;;  %v3669_v42 = vmov %v3668_v32  ;;  %v3670_v43 = vstv %s3663_s3  ;;  %v807_v60 = vld [vmem:[#allocation3 + $0x66] sm:$0xff]  ;;  %547 = vst [vmem:[#allocation3 + $0x110] sm:$0xff] %v2869_v34  ;;  %s3810_s30 = sld [smem:[#allocation22_spill]] }
 0x1b4   : > { %v771_v45 = vadd.f32 %v769_v58, %v743_v11  ;;  %v783_v7 = vmul.f32 %v3669_v42, %v780_v40  ;;  %v789_v44 = vmul.f32 %v3670_v43, %v786_v41  ;;  %v3671_v48 = vmov %v3670_v43  ;;  %v808_v41 = vld [vmem:[#allocation3 + $0x6e] sm:$0xff] }
 0x1b5   : > { %v790_v59 = vmul.f32 %v3671_v48, %v787_v19  ;;  %v777_v35 = vadd.f32 %v775_v22, %v749_v21  ;;  %v778_v17 = vadd.f32 %v776_v3, %v750_v15  ;;  %v784_v24 = vadd.f32 %v782_v37, %v756_v50  ;;  %v822_v22 = vld [vmem:[#allocation3 + $0x81] sm:$0xff] }
 0x1b6   : > { %v3675_v11 = vstv %s3667_s13  ;;  %v785_v19 = vadd.f32 %v783_v7, %v757_v16  ;;  %v791_v51 = vadd.f32 %v789_v44, %v763_v9  ;;  %v3679_v15 = vstv %s3674_s1  ;;  %v836_v3 = vld [vmem:[#allocation3 + $0x83] sm:$0xff]  ;;  %v2889_v7 = vpop.permute.xlu0 %549  ;;  %s3812_s1 = smov 32  }
 0x1b7   : > { %v796_v40 = vmul.f32 %v3675_v11, %v793_v52  ;;  %v792_v58 = vadd.f32 %v790_v59, %v764_v38  ;;  %v3676_v46 = vmov %v3675_v11  ;;  %v3677_v42 = vstv %s3672_s17  ;;  %v829_v52 = vld [vmem:[#allocation3 + $0x82] sm:$0xff]  ;;  %556 = vst [vmem:[#allocation3 + $0x120] sm:$0xff] %v2889_v7  ;;  %s3811_s17 = smov 16  }
 0x1b8   : > { %v797_v61 = vmul.f32 %v3676_v46, %v794_v26  ;;  %v803_v43 = vmul.f32 %v3677_v42, %v800_v4  ;;  %v3678_v48 = vmov %v3677_v42  ;;  %v810_v50 = vmul.f32 %v3679_v15, %v807_v60  ;;  %v843_v9 = vld [vmem:[#allocation3 + $0x84] sm:$0xff]  ;;  %v2887_v26 = vpop.permute.xlu1 %559 }
 0x1b9   : > { %v798_v32 = vadd.f32 %v796_v40, %v770_v57  ;;  %v804_v21 = vmul.f32 %v3678_v48, %v801_v56  ;;  %v3680_v11 = vmov %v3679_v15  ;;  %v819_v16 = vadd.f32 %v2586_v54, %v791_v51  ;;  %v850_v57 = vld [vmem:[#allocation3 + $0x85] sm:$0xff]  ;;  %566 = vst [vmem:[#allocation3 + $0x138] sm:$0xff] %v2887_v26  ;;  %v877_v15 = vld [vmem:[#allocation3 + $0x92] sm:$0xff]  ;;  %s1563_s3 = sshll.u32 %s3810_s30, 1 }
 0x1ba   : > { %v799_v37 = vadd.f32 %v797_v61, %v771_v45  ;;  %v811_v13 = vmul.f32 %v3680_v11, %v808_v41  ;;  %v820_v38 = vadd.f32 %v2813_v10, %v792_v58  ;;  %v805_v44 = vadd.f32 %v803_v43, %v777_v35  ;;  %v857_v56 = vld [vmem:[#allocation3 + $0x86] sm:$0xff]  ;;  %v878_v11 = vld [vmem:[#allocation3 + $0x9a] sm:$0xff]  ;;  %s3116_s13 = scalar_lea.vmem [#allocation9], %s1563_s3 }
 0x1bb   : > { %v806_v59 = vadd.f32 %v804_v21, %v778_v17  ;;  %v812_v45 = vadd.f32 %v810_v50, %v784_v24  ;;  %v826_v4 = vadd.f32 %v2817_v5, %v798_v32  ;;  %v3681_v10 = vstv %s3642_s19  ;;  %v871_v21 = vld [vmem:[#allocation3 + $0x99] sm:$0xff]  ;;  %s3776_s19 = sld [smem:[#allocation56_spill]] }
 0x1bc   : > { %v813_v54 = vadd.f32 %v811_v13, %v785_v19  ;;  %v825_v60 = vmul.f32 %v3681_v10, %v822_v22  ;;  %v3682_v40 = vstv %s3644_s15  ;;  %v3683_v51 = vstv %s3645_s14  ;;  %v870_v19 = vld [vmem:[#allocation3 + $0x91] sm:$0xff]  ;;  %v564_v50 = vpop.permute.xlu1 %563  ;;  %v554_v22 = vpop.permute.xlu0 %553  ;;  %s3778_s15 = sld [smem:[#allocation58_spill]] }
 0x1bd   : > { %v832_v41 = vmul.f32 %v3682_v40, %v829_v52  ;;  %v839_v58 = vmul.f32 %v3683_v51, %v836_v3  ;;  %v833_v35 = vadd.f32 %v2821_v55, %v805_v44  ;;  %v840_v17 = vadd.f32 %v2825_v31, %v812_v45  ;;  %568 = vst [vmem:[#allocation3 + $0x148] sm:$0xff] %v564_v50  ;;  %v892_v40 = vld [vmem:[#allocation3 + $0x9c] sm:$0xff]  ;;  %s3792_s14 = sld [smem:[#allocation109_spill]] }
 0x1be   : > { %v3685_v24 = vstv %s3646_s10  ;;  %v3686_v5 = vstv %s3647_s24  ;;  %v827_v32 = vadd.f32 %v825_v60, %v799_v37  ;;  %v3687_v48 = vstv %s3648_s9  ;;  %558 = vst [vmem:[#allocation3 + $0x130] sm:$0xff] %v554_v22  ;;  %s3793_s10 = sld [smem:[#allocation110_spill]] }
 0x1bf   : > { %v846_v46 = vmul.f32 %v3685_v24, %v843_v9  ;;  %v853_v61 = vmul.f32 %v3686_v5, %v850_v57  ;;  %v834_v42 = vadd.f32 %v832_v41, %v806_v59  ;;  %v841_v43 = vadd.f32 %v839_v58, %v813_v54  ;;  %v884_v9 = vld [vmem:[#allocation3 + $0x93] sm:$0xff]  ;;  %v885_v57 = vld [vmem:[#allocation3 + $0x9b] sm:$0xff]  ;;  %s3795_s24 = sld [smem:[#allocation111_spill]] }
 0x1c0   : > { %v860_v13 = vmul.f32 %v3687_v48, %v857_v56  ;;  %v3689_v55 = vstv %s3684_s2  ;;  %v847_v3 = vadd.f32 %v2829_v49, %v819_v16  ;;  %v854_v37 = vadd.f32 %v2833_v1, %v826_v4  ;;  %v891_v56 = vld [vmem:[#allocation3 + $0x94] sm:$0xff]  ;;  %v2932_v5 = vpop.permute.xlu0 %561  ;;  %s3800_s9 = sld [smem:[#allocation79_spill]] }
 0x1c1   : > { %v848_v52 = vadd.f32 %v846_v46, %v820_v38  ;;  %v2911_v31 = vmul.f32 %v3689_v55, %v2744_v62  ;;  %v855_v44 = vadd.f32 %v853_v61, %v827_v32  ;;  %v861_v59 = vadd.f32 %v2837_v25, %v833_v35  ;;  %567 = vst [vmem:[#allocation3 + $0x140] sm:$0xff] %v2932_v5 }
 0x1c2   : > { %v862_v38 = vadd.f32 %v860_v13, %v834_v42  ;;  %v3692_v62 = vstv %s3549_s23  ;;  %v868_v49 = vadd.f32 %v2581_v53, %v840_v17  ;;  %v3693_v16 = vstv %s3688_s26  ;;  %s3700_s23 = sld [smem:[#allocation78_spill]]  ;;  %v899_v53 = vld [vmem:[#allocation3 + $0x9d] sm:$0xff]  ;;  %s3814_s26 = smov 48  }
 0x1c3   : > { %v867_v45 = vmul.f32 %v3692_v62, %v2746_v36  ;;  %v873_v1 = vmul.f32 %v3693_v16, %v870_v19  ;;  %v3695_v4 = vmov %v3693_v16  ;;  %v3696_v10 = vstv %s3690_s0  ;;  %v898_v36 = vld [vmem:[#allocation3 + $0x95] sm:$0xff]  ;;  %v906_v13 = vld [vmem:[#allocation3 + $0x9e] sm:$0xff]  ;;  %s3815_s0 = smov 80  }
 0x1c4   : > { %v874_v54 = vmul.f32 %v3695_v4, %v871_v21  ;;  %v880_v60 = vmul.f32 %v3696_v10, %v877_v15  ;;  %v3697_v51 = vmov %v3696_v10  ;;  %v3698_v24 = vstv %s3691_s18  ;;  %v905_v17 = vld [vmem:[#allocation3 + $0x96] sm:$0xff]  ;;  %s3816_s18 = smov 96  }
 0x1c5   : > { %v869_v41 = vadd.f32 %v867_v45, %v841_v43  ;;  %v881_v58 = vmul.f32 %v3697_v51, %v878_v11  ;;  %v887_v25 = vmul.f32 %v3698_v24, %v884_v9  ;;  %v3699_v35 = vmov %v3698_v24  ;;  %v3710_v51 = vld [vmem:[#allocation121_spill] sm:$0xff] }
 0x1c6   : > { %v888_v46 = vmul.f32 %v3699_v35, %v885_v57  ;;  %v875_v61 = vadd.f32 %v873_v1, %v847_v3  ;;  %v876_v32 = vadd.f32 %v874_v54, %v848_v52  ;;  %v882_v42 = vadd.f32 %v880_v60, %v854_v37  ;;  %v3708_v54 = vld [vmem:[#allocation118_spill] sm:$0xff]  ;;  %v3709_v60 = vld [vmem:[#allocation115_spill] sm:$0xff] }
 0x1c7   : > { %v3701_v43 = vstv %s3694_s28  ;;  %v883_v19 = vadd.f32 %v881_v58, %v855_v44  ;;  %v889_v21 = vadd.f32 %v887_v25, %v861_v59  ;;  %v3705_v45 = vstv %s3524_s21  ;;  %v3712_v25 = vld [vmem:[#allocation119_spill] sm:$0xff]  ;;  %s3718_s21 = sld [smem:[#allocation81_spill]]  ;;  %s3817_s28 = smov 112  }
 0x1c8   : > { %v894_v48 = vmul.f32 %v3701_v43, %v891_v56  ;;  %v890_v15 = vadd.f32 %v888_v46, %v862_v38  ;;  %v3702_v50 = vmov %v3701_v43  ;;  %v3703_v11 = vstv %s3700_s23  ;;  %s3818_s23 = sld [smem:[#allocation17_spill]] }
 0x1c9   : > { %v895_v22 = vmul.f32 %v3702_v50, %v892_v40  ;;  %v901_v9 = vmul.f32 %v3703_v11, %v898_v36  ;;  %v3704_v57 = vmov %v3703_v11  ;;  %v908_v16 = vmul.f32 %v3705_v45, %v905_v17  ;;  %v1024_v17 = vld [vmem:[#allocation3 + $0xda] sm:$0xff] }
 0x1ca   : > { %v896_v55 = vadd.f32 %v894_v48, %v868_v49  ;;  %v902_v62 = vmul.f32 %v3704_v57, %v899_v53  ;;  %v3706_v52 = vmov %v3705_v45  ;;  %v917_v56 = vadd.f32 %v2560_v39, %v889_v21  ;;  %v3713_v39 = vld [vmem:[#allocation114_spill] sm:$0xff]  ;;  %v1017_v53 = vld [vmem:[#allocation3 + $0xd9] sm:$0xff]  ;;  %v3719_v21 = vld [vmem:[#allocation123_spill] sm:$0xff] }
 0x1cb   : > { %v897_v3 = vadd.f32 %v895_v22, %v869_v41  ;;  %v909_v37 = vmul.f32 %v3706_v52, %v906_v13  ;;  %v918_v1 = vadd.f32 %v2591_v29, %v890_v15  ;;  %v903_v4 = vadd.f32 %v901_v9, %v875_v61  ;;  %v3711_v41 = vld [vmem:[#allocation113_spill] sm:$0xff]  ;;  %v3714_v29 = vld [vmem:[#allocation116_spill] sm:$0xff] }
 0x1cc   : > { %v904_v44 = vadd.f32 %v902_v62, %v876_v32  ;;  %v910_v38 = vadd.f32 %v908_v16, %v882_v42  ;;  %v924_v59 = vadd.f32 %v2595_v14, %v896_v55  ;;  %v945_v40 = vadd.f32 %v3709_v60, %v917_v56  ;;  %v3715_v14 = vld [vmem:[#allocation120_spill] sm:$0xff]  ;;  %v3716_v32 = vld [vmem:[#allocation122_spill] sm:$0xff]  ;;  %v3720_v50 = vld [vmem:[#allocation117_spill] sm:$0xff] }
 0x1cd   : > { %v911_v49 = vadd.f32 %v909_v37, %v883_v19  ;;  %v925_v10 = vadd.f32 %v3708_v54, %v897_v3  ;;  %v946_v58 = vadd.f32 %v3710_v51, %v918_v1  ;;  %v931_v24 = vadd.f32 %v3711_v41, %v903_v4  ;;  %v1031_v19 = vld [vmem:[#allocation3 + $0xdb] sm:$0xff] }
 0x1ce   : > { %v932_v35 = vadd.f32 %v3712_v25, %v904_v44  ;;  %v938_v46 = vadd.f32 %v3713_v39, %v910_v38  ;;  %v952_v36 = vadd.f32 %v3714_v29, %v924_v59  ;;  %v3717_v43 = vstv %s3707_s12  ;;  %v3721_v55 = vld [vmem:[#allocation112_spill] sm:$0xff]  ;;  %v1038_v57 = vld [vmem:[#allocation3 + $0xdc] sm:$0xff] }
 0x1cf   : > { %v939_v61 = vadd.f32 %v3715_v14, %v911_v49  ;;  %v953_v42 = vadd.f32 %v3716_v32, %v925_v10  ;;  %v2962_v48 = vmul.f32 %v3717_v43, %v2784_v2  ;;  %v973_v13 = vadd.f32 %v2753_v27, %v945_v40  ;;  %v1045_v62 = vld [vmem:[#allocation3 + $0xdd] sm:$0xff] }
 0x1d0   : > { %v960_v15 = vadd.f32 %v3719_v21, %v932_v35  ;;  %v959_v22 = vadd.f32 %v3720_v50, %v931_v24  ;;  %v966_v11 = vadd.f32 %v3721_v55, %v938_v46  ;;  %v980_v9 = vadd.f32 %v2763_v30, %v952_v36  ;;  %v1052_v45 = vld [vmem:[#allocation3 + $0xde] sm:$0xff]  ;;  %v3729_v24 = vld [vmem:[#allocation124_spill] sm:$0xff] }
 0x1d1   : > { %v1001_v2 = vadd.f32 %v2794_v63, %v973_v13  ;;  %v3722_v27 = vstv %s3684_s2  ;;  %v3723_v3 = vstv %s2289_s22  ;;  %v3724_v37 = vstv %s3525_s27  ;;  %v1018_v39 = vld [vmem:[#allocation3 + $0xe1] sm:$0xff]  ;;  %s3743_s22 = sld [smem:[#allocation85_spill]]  ;;  %s3813_s2 = smov 64  }
 0x1d2   : > { %v1013_v16 = vmul.f32 %v3722_v27, %v2786_v47  ;;  %v1020_v52 = vmul.f32 %v3723_v3, %v1017_v53  ;;  %v1027_v56 = vmul.f32 %v3724_v37, %v1024_v17  ;;  %v987_v1 = vadd.f32 %v2772_v6, %v959_v22  ;;  %v1025_v46 = vld [vmem:[#allocation3 + $0xe2] sm:$0xff]  ;;  %s3760_s27 = sld [smem:[#allocation90_spill]] }
 0x1d3   : > { %v994_v4 = vadd.f32 %v2782_v18, %v966_v11  ;;  %v1008_v44 = vadd.f32 %v2802_v20, %v980_v9  ;;  %v3725_v38 = vstv %s3718_s21  ;;  %v3726_v49 = vstv %s2302_s29  ;;  %v1032_v29 = vld [vmem:[#allocation3 + $0xe3] sm:$0xff]  ;;  %s3748_s29 = sld [smem:[#allocation87_spill]]  ;;  %s1669_s21 = sshll.u32 %s3818_s23, 5 }
 0x1d4   : > { %v1034_v30 = vmul.f32 %v3725_v38, %v1031_v19  ;;  %v1029_v59 = vadd.f32 %v1027_v56, %v1001_v2  ;;  %v1041_v54 = vmul.f32 %v3726_v49, %v1038_v57  ;;  %v3727_v10 = vstv %s2304_s25  ;;  %v3730_v17 = vld [vmem:[#allocation88_spill] sm:$0xff]  ;;  %v3732_v19 = vld [vmem:[#allocation92_spill] sm:$0xff]  ;;  %s3746_s25 = sld [smem:[#allocation86_spill]] }
 0x1d5   : > { %v1048_v63 = vmul.f32 %v3727_v10, %v1045_v62  ;;  %v3728_v60 = vstv %s3527_s5  ;;  %v1015_v47 = vadd.f32 %v1013_v16, %v987_v1  ;;  %v1022_v51 = vadd.f32 %v1020_v52, %v994_v4  ;;  %v3742_v56 = vld [vmem:[#allocation97_spill] sm:$0xff]  ;;  %s3762_s5 = sld [smem:[#allocation91_spill]] }
 0x1d6   : > { %v1055_v40 = vmul.f32 %v3728_v60, %v1052_v45  ;;  %v1036_v41 = vadd.f32 %v1034_v30, %v1008_v44  ;;  %v967_v25 = vadd.f32 %v3729_v24, %v939_v61  ;;  %v974_v6 = vadd.f32 %v2759_v0, %v946_v58  ;;  %v1039_v0 = vld [vmem:[#allocation3 + $0xe4] sm:$0xff]  ;;  %v1116_v44 = vld [vmem:[#allocation3 + $0x111] sm:$0xff] }
 0x1d7   : > { %v981_v18 = vadd.f32 %v2768_v33, %v953_v42  ;;  %v988_v20 = vadd.f32 %v2778_v28, %v960_v15  ;;  %v1043_v36 = vadd.f32 %v1041_v54, %v1015_v47  ;;  %v1050_v53 = vadd.f32 %v1048_v63, %v1022_v51  ;;  %v1046_v58 = vld [vmem:[#allocation3 + $0xe5] sm:$0xff]  ;;  %v3731_v28 = vld [vmem:[#allocation95_spill] sm:$0xff]  ;;  %v3733_v15 = vld [vmem:[#allocation93_spill] sm:$0xff] }
 0x1d8   : > { %v1057_v35 = vadd.f32 %v1055_v40, %v1029_v59  ;;  %v1064_v14 = vadd.f32 %v3730_v17, %v1036_v41  ;;  %v995_v61 = vadd.f32 %v2790_v8, %v967_v25  ;;  %v1053_v33 = vld [vmem:[#allocation3 + $0xe6] sm:$0xff]  ;;  %v1002_v42 = vadd.f32 %v2798_v12, %v974_v6  ;;  %v3744_v59 = vld [vmem:[#allocation98_spill] sm:$0xff]  ;;  %v3745_v54 = vld [vmem:[#allocation100_spill] sm:$0xff] }
 0x1d9   : > { %v1009_v43 = vadd.f32 %v2808_v23, %v981_v18  ;;  %v1016_v13 = vadd.f32 %v2911_v31, %v988_v20  ;;  %v1071_v21 = vadd.f32 %v3732_v19, %v1043_v36  ;;  %v1078_v50 = vadd.f32 %v3733_v15, %v1050_v53  ;;  %v3740_v31 = vld [vmem:[#allocation125_spill] sm:$0xff]  ;;  %v1115_v4 = vld [vmem:[#allocation3 + $0x109] sm:$0xff]  ;;  %v1130_v53 = vld [vmem:[#allocation3 + $0x113] sm:$0xff] }
 0x1da   : > { %v1085_v32 = vadd.f32 %v3731_v28, %v1057_v35  ;;  %v3734_v22 = vmov %v3723_v3  ;;  %v3735_v11 = vmov %v3724_v37  ;;  %v3736_v9 = vmov %v3725_v38  ;;  %v1122_v63 = vld [vmem:[#allocation3 + $0x10a] sm:$0xff] }
 0x1db   : > { %v1021_v55 = vmul.f32 %v3734_v22, %v1018_v39  ;;  %v1028_v8 = vmul.f32 %v3735_v11, %v1025_v46  ;;  %v1035_v57 = vmul.f32 %v3736_v9, %v1032_v29  ;;  %v3737_v62 = vmov %v3726_v49  ;;  %v1129_v25 = vld [vmem:[#allocation3 + $0x10b] sm:$0xff] }
 0x1dc   : > { %v1042_v45 = vmul.f32 %v3737_v62, %v1039_v0  ;;  %v3738_v2 = vmov %v3727_v10  ;;  %v3739_v16 = vmov %v3728_v60  ;;  %v3741_v52 = vstv %s3529_s11  ;;  %v1123_v60 = vld [vmem:[#allocation3 + $0x112] sm:$0xff]  ;;  %v3749_v35 = vld [vmem:[#allocation96_spill] sm:$0xff] }
 0x1dd   : > { %v1049_v27 = vmul.f32 %v3738_v2, %v1046_v58  ;;  %v1056_v12 = vmul.f32 %v3739_v16, %v1053_v33  ;;  %v1023_v23 = vadd.f32 %v1021_v55, %v995_v61  ;;  %v1030_v3 = vadd.f32 %v1028_v8, %v1002_v42  ;;  %v3750_v18 = vld [vmem:[#allocation102_spill] sm:$0xff]  ;;  %v3753_v17 = vld [vmem:[#allocation103_spill] sm:$0xff]  ;;  %v3754_v61 = vld [vmem:[#allocation104_spill] sm:$0xff] }
 0x1de   : > { %v3015_v37 = vmul.f32 %v3741_v52, %v3740_v31  ;;  %v1092_v1 = vadd.f32 %v3742_v56, %v1064_v14  ;;  %v1037_v38 = vadd.f32 %v1035_v57, %v1009_v43  ;;  %v1044_v30 = vadd.f32 %v1042_v45, %v1016_v13  ;;  %v3758_v43 = vld [vmem:[#allocation106_spill] sm:$0xff]  ;;  %v1143_v22 = vld [vmem:[#allocation3 + $0x10d] sm:$0xff]  ;;  %v1144_v55 = vld [vmem:[#allocation3 + $0x115] sm:$0xff] }
 0x1df   : > { %v1099_v49 = vadd.f32 %v3744_v59, %v1071_v21  ;;  %v1106_v10 = vadd.f32 %v3745_v54, %v1078_v50  ;;  %v1051_v40 = vadd.f32 %v1049_v27, %v1023_v23  ;;  %v1058_v47 = vadd.f32 %v1056_v12, %v1030_v3  ;;  %v1137_v50 = vld [vmem:[#allocation3 + $0x114] sm:$0xff]  ;;  %v3761_v11 = vld [vmem:[#allocation107_spill] sm:$0xff]  ;;  %v1164_v59 = vld [vmem:[#allocation3 + $0x121] sm:$0xff] }
 0x1e0   : > { %v3747_v51 = vstv %s3707_s12  ;;  %v1113_v24 = vadd.f32 %v2962_v48, %v1085_v32  ;;  %v1065_v6 = vadd.f32 %v3749_v35, %v1037_v38  ;;  %v1072_v20 = vadd.f32 %v3750_v18, %v1044_v30  ;;  %v1136_v48 = vld [vmem:[#allocation3 + $0x10c] sm:$0xff]  ;;  %v3757_v32 = vld [vmem:[#allocation105_spill] sm:$0xff]  ;;  %s3819_s12 = sld [smem:[#allocation21_spill]] }
 0x1e1   : > { %v1112_v41 = vmul.f32 %v3747_v51, %v2869_v34  ;;  %v3751_v39 = vstv %s3743_s22  ;;  %v1079_v14 = vadd.f32 %v3753_v17, %v1051_v40  ;;  %v1086_v0 = vadd.f32 %v3754_v61, %v1058_v47  ;;  %v1150_v2 = vld [vmem:[#allocation3 + $0x10e] sm:$0xff]  ;;  %v1151_v27 = vld [vmem:[#allocation3 + $0x116] sm:$0xff]  ;;  %v1192_v35 = vld [vmem:[#allocation3 + $0x125] sm:$0xff]  ;;  %s1471_s22 = sshll.u32 %s3116_s13, 4  ;;  %s3167_s22 = int_to_ptr.vmem [resolvable:$true] %s1471_s22 }
 0x1e2   : > { %v1118_v46 = vmul.f32 %v3751_v39, %v1115_v4  ;;  %v3752_v29 = vmov %v3751_v39  ;;  %v3755_v58 = vstv %s3746_s25  ;;  %v1093_v42 = vadd.f32 %v3757_v32, %v1065_v6  ;;  %v1165_v61 = vld [vmem:[#allocation3 + $0x129] sm:$0xff] }
 0x1e3   : > { %v1119_v36 = vmul.f32 %v3752_v29, %v1116_v44  ;;  %v1125_v34 = vmul.f32 %v3755_v58, %v1122_v63  ;;  %v3756_v33 = vmov %v3755_v58  ;;  %v1100_v13 = vadd.f32 %v3758_v43, %v1072_v20  ;;  %v1186_v43 = vld [vmem:[#allocation3 + $0x12c] sm:$0xff] }
 0x1e4   : > { %v1126_v28 = vmul.f32 %v3756_v33, %v1123_v60  ;;  %v1120_v19 = vadd.f32 %v1118_v46, %v1092_v1  ;;  %v3759_v21 = vstv %s3748_s29  ;;  %v1107_v8 = vadd.f32 %v3761_v11, %v1079_v14 }
 0x1e5   : > { %v1132_v15 = vmul.f32 %v3759_v21, %v1129_v25  ;;  %v1114_v9 = vadd.f32 %v1112_v41, %v1086_v0  ;;  %v1127_v57 = vadd.f32 %v1125_v34, %v1099_v49  ;;  %v3763_v62 = vmov %v3759_v21  ;;  %v1171_v49 = vld [vmem:[#allocation3 + $0x122] sm:$0xff]  ;;  %v1172_v0 = vld [vmem:[#allocation3 + $0x12a] sm:$0xff] }
 0x1e6   : > { %v1133_v45 = vmul.f32 %v3763_v62, %v1130_v53  ;;  %v1121_v16 = vadd.f32 %v1119_v36, %v1093_v42  ;;  %v1128_v12 = vadd.f32 %v1126_v28, %v1100_v13  ;;  %v3765_v3 = vstv %s3534_s7  ;;  %v1178_v41 = vld [vmem:[#allocation3 + $0x123] sm:$0xff]  ;;  %s3775_s7 = sld [smem:[#allocation52_spill]]  ;;  %v1179_v42 = vld [vmem:[#allocation3 + $0x12b] sm:$0xff]  ;;  %p3821_p8 = scmp.ne.s32.totalorder %s3819_s12, 0 }
 0x1e7   : > { %v1134_v23 = vadd.f32 %v1132_v15, %v1106_v10  ;;  %v1139_v31 = vmul.f32 %v3765_v3, %v1136_v48  ;;  %v3766_v56 = vmov %v3765_v3  ;;  %v3767_v4 = vstv %s3760_s27  ;;  %v1185_v25 = vld [vmem:[#allocation3 + $0x124] sm:$0xff]  ;;  %s3820_s27 = sld [smem:[#allocation128_spill]] }
 0x1e8   : > { %v1135_v52 = vadd.f32 %v1133_v45, %v1107_v8  ;;  %v1140_v1 = vmul.f32 %v3766_v56, %v1137_v50  ;;  %v1146_v44 = vmul.f32 %v3767_v4, %v1143_v22  ;;  %v3768_v38 = vmov %v3767_v4  ;;  %v1193_v22 = vld [vmem:[#allocation3 + $0x12d] sm:$0xff]  ;;  %v1214_v56 = vld [vmem:[#allocation3 + $0x141] sm:$0xff] }
 0x1e9   : > { %v1147_v30 = vmul.f32 %v3768_v38, %v1144_v55  ;;  %v1141_v54 = vadd.f32 %v1139_v31, %v1113_v24  ;;  %v3771_v63 = vstv %s3762_s5  ;;  %v3773_v10 = vstv %s3764_s6  ;;  %v1199_v24 = vld [vmem:[#allocation3 + $0x126] sm:$0xff]  ;;  %v1200_v55 = vld [vmem:[#allocation3 + $0x12e] sm:$0xff]  ;;  %v1213_v31 = vld [vmem:[#allocation3 + $0x139] sm:$0xff]  ;;  %s1457_s6 = scalar_lea.sflag [#allocation6], %s3810_s30 }
 0x1ea   : > { %v1153_v60 = vmul.f32 %v3771_v63, %v1150_v2  ;;  %v3772_v40 = vmov %v3771_v63  ;;  %v1209_v51 = vmul.f32 %v3773_v10, %v2887_v26  ;;  %v1142_v6 = vadd.f32 %v1140_v1, %v1114_v9 }
 0x1eb   : > { %v1154_v47 = vmul.f32 %v3772_v40, %v1151_v27  ;;  %v1148_v18 = vadd.f32 %v1146_v44, %v1120_v19  ;;  %v1149_v20 = vadd.f32 %v1147_v30, %v1121_v16  ;;  %v3777_v39 = vstv %s3529_s11  ;;  %s3789_s11 = sld [smem:[#allocation108_spill]]  ;;  %v1220_v30 = vld [vmem:[#allocation3 + $0x13a] sm:$0xff] }
 0x1ec   : > { %v1160_v46 = vmul.f32 %v3777_v39, %v2889_v7  ;;  %v1155_v29 = vadd.f32 %v1153_v60, %v1127_v57  ;;  %v3779_v53 = vstv %s3769_s4  ;;  %v3780_v14 = vstv %s3770_s20  ;;  %s1790_s4 = scalar_lea.vmem %s3167_s22, 32  ;;  %s1877_s20 = smov [#allocation9]  }
 0x1ed   : > { %v1156_v36 = vadd.f32 %v1154_v47, %v1128_v12  ;;  %v1167_v17 = vmul.f32 %v3779_v53, %v1164_v59  ;;  %v1174_v26 = vmul.f32 %v3780_v14, %v1171_v49  ;;  %v3781_v34 = vstv %s3774_s8  ;;  %v1221_v59 = vld [vmem:[#allocation3 + $0x142] sm:$0xff]  ;;  %s3165_s5 = scalar_lea.hbm %s3820_s27, %s1669_s21  ;;  %p1791_p6 = scmp.ne.s32.totalorder %s3167_s22, %s1790_s4 }
 0x1ee   : > { %v1162_v58 = vadd.f32 %v1160_v46, %v1134_v23  ;;  %v1181_v33 = vmul.f32 %v3781_v34, %v1178_v41  ;;  %v3782_v28 = vstv %s3775_s7  ;;  %v3783_v32 = vstv %s3776_s19  ;;  %v1227_v49 = vld [vmem:[#allocation3 + $0x13b] sm:$0xff]  ;;  %v1235_v46 = vld [vmem:[#allocation3 + $0x144] sm:$0xff]  ;;  %s1794_s8 = sshll.u32 %s1877_s20, 4  ;;  %s1795_s8 = int_to_ptr.vmem [resolvable:$false] %s1794_s8 }
 0x1ef   : > { %v1188_v48 = vmul.f32 %v3782_v28, %v1185_v25  ;;  %v1195_v7 = vmul.f32 %v3783_v32, %v1192_v35  ;;  %v1169_v13 = vadd.f32 %v1167_v17, %v1141_v54  ;;  %v1176_v19 = vadd.f32 %v1174_v26, %v1148_v18  ;;  %v1234_v41 = vld [vmem:[#allocation3 + $0x13c] sm:$0xff]  ;;  %v1242_v26 = vld [vmem:[#allocation3 + $0x145] sm:$0xff]  ;;  %p1792_p7 = pnand %p1791_p6, %p3821_p8  ;;  %s1796_s7 = scalar_lea.vmem %s1795_s8, 64 }
 0x1f0   : > { %v3784_v21 = vstv %s3778_s15  ;;  %v1163_v50 = vadd.f32 %v3015_v37, %v1135_v52  ;;  %v1183_v11 = vadd.f32 %v1181_v33, %v1155_v29  ;;  %v3785_v9 = vmov %v3779_v53  ;;  %p1797_p11 = scmp.lt.s32.totalorder %s3167_s22, %s1795_s8  ;;  %p1798_p0 = scmp.lt.s32.totalorder %s1796_s7, %s1790_s4 }
 0x1f1   : > { %v1202_v15 = vmul.f32 %v3784_v21, %v1199_v24  ;;  %v1190_v8 = vadd.f32 %v1188_v48, %v1162_v58  ;;  %v1168_v57 = vmul.f32 %v3785_v9, %v1165_v61  ;;  %v3786_v62 = vmov %v3780_v14  ;;  %v1241_v14 = vld [vmem:[#allocation3 + $0x13d] sm:$0xff]  ;;  %p1793_p10 = pneg %p1792_p7 }
 0x1f2   : > { %v1175_v45 = vmul.f32 %v3786_v62, %v1172_v0  ;;  %v1197_v2 = vadd.f32 %v1195_v7, %v1169_v13  ;;  %v3787_v16 = vmov %v3781_v34  ;;  %v3788_v23 = vmov %v3782_v28  ;;  %v1248_v48 = vld [vmem:[#allocation3 + $0x13e] sm:$0xff]  ;;  %p1799_p3 = por %p1798_p0, %p1797_p11 }
 0x1f3   : > { %v1204_v27 = vadd.f32 %v1202_v15, %v1176_v19  ;;  %v1182_v12 = vmul.f32 %v3787_v16, %v1179_v42  ;;  %v1189_v3 = vmul.f32 %v3788_v23, %v1186_v43  ;;  %v1170_v37 = vadd.f32 %v1168_v57, %v1142_v6 }
 0x1f4   : > { %v1177_v52 = vadd.f32 %v1175_v45, %v1149_v20  ;;  %v3790_v1 = vmov %v3783_v32  ;;  %v3791_v44 = vmov %v3784_v21  ;;  %v3794_v60 = vmov %v3773_v10  ;;  %v1228_v10 = vld [vmem:[#allocation3 + $0x143] sm:$0xff]  ;;  %p1800_p5 = pnand %p1799_p3, %p1793_p10 }
 0x1f5   : > { %v1196_v4 = vmul.f32 %v3790_v1, %v1193_v22  ;;  %v1203_v38 = vmul.f32 %v3791_v44, %v1200_v55  ;;  %v1184_v54 = vadd.f32 %v1182_v12, %v1156_v36  ;;  %v1191_v63 = vadd.f32 %v1189_v3, %v1163_v50  ;;  %v1249_v32 = vld [vmem:[#allocation3 + $0x146] sm:$0xff] }
 0x1f6   : > { %v1210_v40 = vmul.f32 %v3794_v60, %v2932_v5  ;;  %v1211_v47 = vadd.f32 %v1209_v51, %v1183_v11  ;;  %v3796_v6 = vstv %s3789_s11  ;;  %v3798_v29 = vstv %s3792_s14 }
 0x1f7   : > { %v1198_v25 = vadd.f32 %v1196_v4, %v1170_v37  ;;  %v1205_v35 = vadd.f32 %v1203_v38, %v1177_v52  ;;  %v1216_v18 = vmul.f32 %v3796_v6, %v1213_v31  ;;  %v3797_v20 = vmov %v3796_v6 }
 0x1f8   : > { %v1217_v39 = vmul.f32 %v3797_v20, %v1214_v56  ;;  %v1212_v24 = vadd.f32 %v1210_v40, %v1184_v54  ;;  %v1223_v36 = vmul.f32 %v3798_v29, %v1220_v30  ;;  %v3799_v53 = vmov %v3798_v29 }
 0x1f9   : > { %v1224_v17 = vmul.f32 %v3799_v53, %v1221_v59  ;;  %v3801_v5 = vstv %s3793_s10  ;;  %v1218_v61 = vadd.f32 %v1216_v18, %v1190_v8  ;;  %v3804_v33 = vstv %s3795_s24 }
 0x1fa   : > { %v1230_v51 = vmul.f32 %v3801_v5, %v1227_v49  ;;  %v1219_v0 = vadd.f32 %v1217_v39, %v1191_v63  ;;  %v3803_v58 = vmov %v3801_v5  ;;  %v1237_v28 = vmul.f32 %v3804_v33, %v1234_v41 }
 0x1fb   : > { %v1231_v34 = vmul.f32 %v3803_v58, %v1228_v10  ;;  %v1225_v7 = vadd.f32 %v1223_v36, %v1197_v2  ;;  %v1226_v42 = vadd.f32 %v1224_v17, %v1198_v25  ;;  %v3805_v43 = vmov %v3804_v33 }
 0x1fc   : > { %v1238_v13 = vmul.f32 %v3805_v43, %v1235_v46  ;;  %v1232_v19 = vadd.f32 %v1230_v51, %v1204_v27  ;;  %v1239_v21 = vadd.f32 %v1237_v28, %v1211_v47  ;;  %v3806_v15 = vstv %s3800_s9 }
 0x1fd   : > { %v1244_v50 = vmul.f32 %v3806_v15, %v1241_v14  ;;  %v3807_v22 = vmov %v3806_v15  ;;  %v1233_v11 = vadd.f32 %v1231_v34, %v1205_v35  ;;  %v3808_v9 = vstv %s3802_s16 }
 0x1fe   : > { %v1245_v55 = vmul.f32 %v3807_v22, %v1242_v26  ;;  %v1240_v8 = vadd.f32 %v1238_v13, %v1212_v24  ;;  %v1251_v57 = vmul.f32 %v3808_v9, %v1248_v48  ;;  %v3809_v62 = vmov %v3808_v9 }
 0x1ff   : > { %v1252_v45 = vmul.f32 %v3809_v62, %v1249_v32  ;;  %v1246_v16 = vadd.f32 %v1244_v50, %v1218_v61  ;;  %v1257_v23 = vadd.f32 %v1239_v21, %v1232_v19  ;;  %v1273_v49 = vlaneseq }
 0x200   : > { %v1247_v12 = vadd.f32 %v1245_v55, %v1219_v0  ;;  %v1253_v3 = vadd.f32 %v1251_v57, %v1225_v7  ;;  %v1258_v31 = vadd.f32 %v1240_v8, %v1233_v11  ;;  %v1876_v54 = vmov 1966171168  }
 0x201   : > { %v1254_v2 = vadd.f32 %v1252_v45, %v1226_v42  ;;  %v1280_v63 = vunpack.c.l.s4 %v1876_v54  ;;  %v1283_v40 = vshrl.u32 %v1273_v49, 7  ;;  %vm1275_vm3 = vcmp.lt.s32.totalorder %v1273_v49, 16 }
 0x202   : > { %v1255_v56 = vadd.f32 %v1253_v3, %v1246_v16  ;;  %vm1304_vm4 = vcmp.ge.s32.totalorder %v1273_v49, 16  ;;  %vm1305_vm5 = vcmp.lt.s32.totalorder %v1273_v49, 32  ;;  %vm1312_vm7 = vcmp.ge.s32.totalorder %v1273_v49, 32 }
 0x203   : > { %v1256_v37 = vadd.f32 %v1254_v2, %v1247_v12  ;;  %v1281_v60 = vunpack.c.0.s8 %v1280_v63  ;;  %vm1306_vm6 = vmand %vm1304_vm4, %vm1305_vm5  ;;  %vm1313_vm8 = vcmp.lt.s32.totalorder %v1273_v49, 48  ;;  %vm1320_vm10 = vcmp.ge.s32.totalorder %v1273_v49, 48 }
 0x204   : > { %v1259_v27 = vadd.f32 %v1257_v23, %v1255_v56  ;;  %vm1314_vm9 = vmand %vm1312_vm7, %vm1313_vm8  ;;  %vm1321_vm11 = vcmp.lt.s32.totalorder %v1273_v49, 64  ;;  %vm1342_vm12 = vcmp.ge.s32.totalorder %v1273_v49, 64  ;;  %vm1343_vm13 = vcmp.lt.s32.totalorder %v1273_v49, 80 }
 0x205   : > { %v1260_v52 = vadd.f32 %v1258_v31, %v1256_v37  ;;  %v1284_v47 = vsub.s32 %v1281_v60, %v1283_v40  ;;  %vm1322_vm14 = vmand %vm1320_vm10, %vm1321_vm11  ;;  %vm1357_vm0 = vcmp.ge.s32.totalorder %v1273_v49, 80  ;;  %vm1358_vm1 = vcmp.lt.s32.totalorder %v1273_v49, 96 }
 0x206   : > { %v1661_v1 = vmul.f32 -1.442695, %v1259_v27  ;;  %vm1344_vm15 = vmand %vm1342_vm12, %vm1343_vm13  ;;  %vm1366_vm4 = vcmp.lt.s32.totalorder %v1273_v49, 112  ;;  %vm1374_vm7 = vcmp.lt.s32.totalorder %v1273_v49, 128 }
 0x207   : > { %v1662_v4 = vmul.f32 -1.442695, %v1260_v52  ;;  %vm1359_vm2 = vmand %vm1357_vm0, %vm1358_vm1 }
 0x208   : > { %1743 = vpow2.f32 %v1661_v1 }
 0x209   : > { %1745 = vpow2.f32 %v1662_v4 }
 0x215   : > { %v1744_v44 = vpop.eup %1743 }
 0x216   : > { %v1746_v38 = vpop.eup %1745  ;;  %v1267_v30 = vadd.f32 1.0, %v1744_v44 }
 0x217   : > { %v1268_v59 = vadd.f32 1.0, %v1746_v38 }
 0x218   : > { %1747 = vrcp.f32 %v1267_v30 }
 0x219   : > { %1749 = vrcp.f32 %v1268_v59 }
 0x225   : > { %v1748_v10 = vpop.eup %1747 }
 0x226   : > { %v1750_v41 = vpop.eup %1749  ;;  %v1285_v25 = vrot.slane %v1748_v10, %v1284_v47  ;;  %1277 = vst.msk [vmem:[%s3116_s13] sm:$0x1] %vm1275_vm3, %v1748_v10  ;;  %v1324_v46 = vcombine.high %v1748_v10, %v1748_v10 }
 0x227   : > { %v1385_v35 = vrot.slane %v1750_v41, %v1284_v47  ;;  %1377 = vst.msk [vmem:[%s3116_s13 + $0x1] sm:$0x1] %vm1275_vm3, %v1750_v41  ;;  %v1415_v36 = vcombine.high %v1750_v41, %v1750_v41  ;;  %vm1365_vm3 = vcmp.ge.s32.totalorder %v1273_v49, 96 }
 0x228   : > { %v1286_v6 = vcombine.high %v1285_v25, %v1285_v25  ;;  %v1293_v39 = vrot.slane %v1285_v25, %v1284_v47  ;;  %v1331_v17 = vrot.slane %v1324_v46, %v1284_v47  ;;  %vm1367_vm5 = vmand %vm1365_vm3, %vm1366_vm4 }
 0x229   : > { %v1386_v18 = vcombine.high %v1385_v35, %v1385_v35  ;;  %v1393_v29 = vrot.slane %v1385_v35, %v1284_v47  ;;  %v1422_v51 = vrot.slane %v1415_v36, %v1284_v47 }
 0x22a   : > { %v1300_v20 = vrot.slane %v1286_v6, %v1284_v47  ;;  %v1308_v53 = vcombine.high %v1293_v39, %v1293_v39  ;;  %v1338_v14 = vrot.slane %v1331_v17, %v1284_v47  ;;  %v1346_v0 = vcombine.high %v1331_v17, %v1331_v17 }
 0x22b   : > { %v1400_v24 = vrot.slane %v1386_v18, %v1284_v47  ;;  %v1405_v5 = vcombine.high %v1393_v29, %v1393_v29  ;;  %v1429_v26 = vrot.slane %v1422_v51, %v1284_v47  ;;  %v1434_v34 = vcombine.high %v1422_v51, %v1422_v51 }
 0x22c   : > { %1301 = vrot.lane.b32.xlu0 %v1300_v20, %s3811_s17  ;;  %v1316_v61 = vcombine.high %v1300_v20, %v1300_v20  ;;  %v1353_v33 = vrot.slane %v1346_v0, %v1284_v47  ;;  %v1361_v48 = vcombine.high %v1338_v14, %v1338_v14 }
 0x22d   : > { %1401 = vrot.lane.b32.xlu1 %v1400_v24, %s3811_s17  ;;  %v1410_v58 = vcombine.high %v1400_v24, %v1400_v24  ;;  %v1441_v28 = vrot.slane %v1434_v34, %v1284_v47  ;;  %v1446_v32 = vcombine.high %v1429_v26, %v1429_v26 }
 0x22e   : > { %v1369_v7 = vcombine.high %v1353_v33, %v1353_v33 }
 0x22f   : > { %v1451_v42 = vcombine.high %v1441_v28, %v1441_v28 }
 0x230   : > { %1309 = vrot.lane.b32.xlu0 %v1308_v53, %s3812_s1 }
 0x231   : > { %1406 = vrot.lane.b32.xlu1 %v1405_v5, %s3812_s1 }
 0x234   : > { %1339 = vrot.lane.b32.xlu0 %v1338_v14, %s3813_s2 }
 0x235   : > { %1430 = vrot.lane.b32.xlu1 %v1429_v26, %s3813_s2 }
 0x238   : > { %1317 = vrot.lane.b32.xlu0 %v1316_v61, %s3814_s26 }
 0x239   : > { %1411 = vrot.lane.b32.xlu1 %v1410_v58, %s3814_s26 }
 0x23c   : > { %1354 = vrot.lane.b32.xlu0 %v1353_v33, %s3815_s0 }
 0x23d   : > { %1442 = vrot.lane.b32.xlu1 %v1441_v28, %s3815_s0 }
 0x240   : > { %1362 = vrot.lane.b32.xlu0 %v1361_v48, %s3816_s18 }
 0x241   : > { %1447 = vrot.lane.b32.xlu1 %v1446_v32, %s3816_s18 }
 0x244   : > { %1370 = vrot.lane.b32.xlu0 %v1369_v7, %s3817_s28 }
 0x245   : > { %1452 = vrot.lane.b32.xlu1 %v1451_v42, %s3817_s28 }
 0x29e   : > { %v1302_v43 = vpop.permute.xlu0 %1301 }
 0x29f   : > { %v1402_v13 = vpop.permute.xlu1 %1401  ;;  %1307 = vst.msk [vmem:[%s3116_s13] sm:$0x1] %vm1306_vm6, %v1302_v43 }
 0x2a0   : > { %1404 = vst.msk [vmem:[%s3116_s13 + $0x1] sm:$0x1] %vm1306_vm6, %v1402_v13  ;;  %vm1373_vm6 = vcmp.ge.s32.totalorder %v1273_v49, 112 }
 0x2a1   : > { %vm1375_vm8 = vmand %vm1373_vm6, %vm1374_vm7 }
 0x2a2   : > { %v1310_v19 = vpop.permute.xlu0 %1309 }
 0x2a3   : > { %v1407_v21 = vpop.permute.xlu1 %1406  ;;  %1315 = vst.msk [vmem:[%s3116_s13] sm:$0x1] %vm1314_vm9, %v1310_v19 }
 0x2a4   : > { %1409 = vst.msk [vmem:[%s3116_s13 + $0x1] sm:$0x1] %vm1314_vm9, %v1407_v21 }
 0x2a6   : > { %v1340_v15 = vpop.permute.xlu0 %1339 }
 0x2a7   : > { %v1431_v50 = vpop.permute.xlu1 %1430 }
 0x2aa   : > { %v1318_v22 = vpop.permute.xlu0 %1317 }
 0x2ab   : > { %v1412_v55 = vpop.permute.xlu1 %1411  ;;  %1323 = vst.msk [vmem:[%s3116_s13] sm:$0x1] %vm1322_vm14, %v1318_v22 }
 0x2ac   : > { %1414 = vst.msk [vmem:[%s3116_s13 + $0x1] sm:$0x1] %vm1322_vm14, %v1412_v55 }
 0x2ad   : > { %1345 = vst.msk [vmem:[%s3116_s13] sm:$0x1] %vm1344_vm15, %v1340_v15  ;;  %1433 = vst.msk [vmem:[%s3116_s13 + $0x1] sm:$0x1] %vm1344_vm15, %v1431_v50 }
 0x2ae   : > { %v1355_v11 = vpop.permute.xlu0 %1354 }
 0x2af   : > { %v1443_v8 = vpop.permute.xlu1 %1442  ;;  %1360 = vst.msk [vmem:[%s3116_s13] sm:$0x1] %vm1359_vm2, %v1355_v11 }
 0x2b0   : > { %1445 = vst.msk [vmem:[%s3116_s13 + $0x1] sm:$0x1] %vm1359_vm2, %v1443_v8 }
 0x2b2   : > { %v1363_v9 = vpop.permute.xlu0 %1362 }
 0x2b3   : > { %v1448_v57 = vpop.permute.xlu1 %1447  ;;  %1368 = vst.msk [vmem:[%s3116_s13] sm:$0x1] %vm1367_vm5, %v1363_v9 }
 0x2b4   : > { %1450 = vst.msk [vmem:[%s3116_s13 + $0x1] sm:$0x1] %vm1367_vm5, %v1448_v57 }
 0x2b6   : > { %v1371_v62 = vpop.permute.xlu0 %1370 }
 0x2b7   : > { %v1453_v45 = vpop.permute.xlu1 %1452  ;;  %1376 = vst.msk [vmem:[%s3116_s13] sm:$0x1] %vm1375_vm8, %v1371_v62 }
 0x2b8   : > { %1455 = vst.msk [vmem:[%s3116_s13 + $0x1] sm:$0x1] %vm1375_vm8, %v1453_v45 }
 0x2b9   : > { %1803 = shalt.err (!%p1800_p5)
}
 0x2ba   : > { %s1804_s19 = scalar_lea.hbm %s3165_s5, 32  ;;  %s1808_s14 = scalar_lea.hbm %s3820_s27, 64 }
 0x2bb   : > { %p1805_p2 = scmp.ne.s32.totalorder %s3165_s5, %s1804_s19  ;;  %p1809_p9 = scmp.lt.s32.totalorder %s3165_s5, %s3820_s27 }
 0x2bc   : > { %p1810_p1 = scmp.lt.s32.totalorder %s1808_s14, %s1804_s19 }
 0x2bd   : > { %p1806_p12 = pnand %p1805_p2, %p3821_p8 }
 0x2be   : > { %p1811_p4 = por %p1810_p1, %p1809_p9 }
 0x2bf   : > { %p1807_p13 = pneg %p1806_p12 }
 0x2c1   : > { %p1812_p6 = pnand %p1811_p4, %p1807_p13 }
 0x2c3   : > { %1815 = shalt.err (!%p1812_p6)
}
 0x2c4   : > { %1676 = dma.vmem_to_hbm [thread:$0]  (%p3821_p8), %s3167_s22, 32, %s3165_s5, %s1457_s6  }
 0x2c5 PF: > { %s3822_s9 = sld [smem:[#allocation13_spill]] }
 0x2c6   : > { %s3823_s16 = sld [smem:[#allocation18_spill]] }
 0x2c7   : > { %s3824_s30 = sld [smem:[#allocation16_spill]] }
 0x2cb   : > { %s1483_s3 = sand.u32 1, %s3822_s9  }
 0x2cc   : > { %p3825_p7 = scmp.ne.s32.totalorder %s3823_s16, 0  ;;  %s1484_s13 = scalar_lea.sflag [#allocation6], %s1483_s3 }
 0x2cd   : > { %p3826_p10 = scmp.ge.s32.totalorder %s3824_s30, 2 }
 0x2cf   : > { %p1687_p11 = pnand %p3826_p10, %p3825_p7 }
 0x2d1   : > { %p1688_p0 = pneg %p1687_p11 }
 0x2d3   : > { %1841 = dma.done.wait (%p1688_p0), %s1484_s13, 32  }
 0x2d4   : > { %1843 = vsyncadd (%p1688_p0), %s1484_s13, 4294967264  ;;  %s3827_s12 = sld [smem:[#allocation19_spill]] }
 0x2d5   : > { %s3828_s9 = sld [smem:[#allocation14_spill]] }
 0x2d6   : > { %s3829_s10 = sld [smem:[#allocation15_spill]] }
 0x2d7   : > { %s3830_s11 = sld [smem:[#allocation20_spill]] }
 0x2da   : > { %p16_p3 = scmp.ge.s32.totalorder %s3827_s12, 4  }
 0x2dc   :  { %18 = sbr.rel (!%p16_p3) target bundleno = 10 (0xa), region = 92 }
 0x2e1   :  { %1489 = vsyncpa [#allocation5], 1 }
 0x2e2   :  { %1491 = vsyncpa [#allocation5 + $0x1], 1 }
 0x2e3   :  { %1492 = vsyncpa [#allocation6], 1 }
 0x2e4   :  { %1494 = vsyncpa [#allocation6 + $0x1], 1 }
 0x2e5   :  { %1495 = vsyncpa [#allocation7], 1 }
 0x2e6   :  { %1497 = vsyncpa [#allocation7 + $0x1], 1 }

</bundles_post_ra>
